<compile_context>
chip_gen: v7x
topology: tpu7x:2x2x1
jax: 0.10.0
libtpu: 0.0.40
codegen_flags: <defaults>
</compile_context>

<pallas_src>
import functools

import jax
import jax.numpy as jnp
from jax.experimental import pallas as pl
from jax.experimental.pallas import tpu as pltpu

_LOG2E = 1.4426950408889634


# --------------------------- hardware-aware sizing ---------------------------

@functools.lru_cache(maxsize=None)
def _hw_budget():
    """Returns (vmem_limit_bytes, big_vmem) — big_vmem means a 128 MiB part (v5e/v6e)."""
    cap = 64 * 1024 * 1024
    try:
        info = pltpu.get_tpu_info()
        cap = int(getattr(info, "vmem_capacity_bytes", cap))
    except Exception:
        pass
    if cap >= 100 * 1024 * 1024:
        return min(cap * 3 // 4, 112 * 1024 * 1024), True
    return 48 * 1024 * 1024, False


def _mm_tile_prefs():
    _, big = _hw_budget()
    return (512, 512, 1024) if big else (256, 256, 512)     # (tm, tn, tk)


def _attn_tile_prefs():
    _, big = _hw_budget()
    return (1024, 1024) if big else (512, 512)               # (tq, tkv)


def _sublane_base(dtype):
    n = jnp.dtype(dtype).itemsize
    if n >= 4:
        return 8
    return 16 if n == 2 else 32


def _pick_tile(size, pref, base):
    """Largest tile <= pref that divides `size` and is a multiple of `base`.
    Falls back to the full dimension (block == array dim is always legal)."""
    if size <= pref:
        return size
    t = (pref // base) * base
    while t >= base:
        if size % t == 0:
            return t
        t -= base
    return size


def _pick_head_group(heads, dim_head):
    """Heads per attention grid step: smallest group whose column window (hp*d) is lane-dense
    (multiple of 128); otherwise all heads (window == inner dim)."""
    for hp in range(1, heads + 1):
        if heads % hp == 0 and (hp * dim_head) % 128 == 0:
            return hp
    return heads


# ------------------------------- Pallas kernels ------------------------------

def _erf_f32(x):
    # Abramowitz & Stegun 7.1.26, |err| <= 1.5e-7 -> matches exact-erf GELU semantics.
    a1, a2, a3, a4, a5 = 0.254829592, -0.284496736, 1.421413741, -1.453152027, 1.061405429
    p = 0.3275911
    s = jnp.where(x >= 0.0, 1.0, -1.0)
    ax = jnp.abs(x)
    t = 1.0 / (1.0 + p * ax)
    poly = ((((a5 * t + a4) * t + a3) * t + a2) * t + a1) * t
    return s * (1.0 - poly * jnp.exp(-ax * ax))


def _matmul_kernel(*refs, has_bias, has_res):
    """Tiled matmul with f32 accumulator scratch; optional bias / residual fused epilogue."""
    x_ref, w_ref = refs[0], refs[1]
    pos = 2
    b_ref = r_ref = None
    if has_bias:
        b_ref = refs[pos]; pos += 1
    if has_res:
        r_ref = refs[pos]; pos += 1
    o_ref, acc_ref = refs[pos], refs[pos + 1]

    kk = pl.program_id(2)

    @pl.when(kk == 0)
    def _init():
        acc_ref[...] = jnp.zeros_like(acc_ref)

    # Operands stay in their input dtype (bf16 in production); accumulate in f32.
    acc_ref[...] += jnp.dot(x_ref[...], w_ref[...], preferred_element_type=jnp.float32)

    @pl.when(kk == pl.num_programs(2) - 1)
    def _finalize():
        out = acc_ref[...]
        if has_bias:
            out = out + b_ref[...].astype(jnp.float32)
        if has_res:
            out = out + r_ref[...].astype(jnp.float32)
        o_ref[...] = out.astype(o_ref.dtype)


def _layernorm_into(x_ref, g_ref, b_ref, xn_ref, eps):
    x = x_ref[...].astype(jnp.float32)
    mu = jnp.mean(x, axis=-1, keepdims=True)
    xc = x - mu
    var = jnp.mean(xc * xc, axis=-1, keepdims=True)
    xn = (xc * jax.lax.rsqrt(var + eps)) * g_ref[...].astype(jnp.float32) \
         + b_ref[...].astype(jnp.float32)
    xn_ref[...] = xn.astype(xn_ref.dtype)


def _ln_matmul_kernel(x_ref, g_ref, b_ref, w_ref, o_ref, xn_ref, *, eps):
    """LayerNorm prologue cached in VMEM (computed once per row block, reused across all
    output-column tiles) fused with a bias-free projection matmul."""
    @pl.when(pl.program_id(1) == 0)
    def _ln():
        _layernorm_into(x_ref, g_ref, b_ref, xn_ref, eps)

    o_ref[...] = jnp.dot(xn_ref[...], w_ref[...],
                         preferred_element_type=jnp.float32).astype(o_ref.dtype)


def _ln_geglu_kernel(x_ref, g_ref, b_ref, wx_ref, bx_ref, wg_ref, bg_ref,
                     o_ref, xn_ref, *, eps):
    """LayerNorm (cached) + GEGLU(w1): o = (xn @ wx + bx) * gelu(xn @ wg + bg)."""
    @pl.when(pl.program_id(1) == 0)
    def _ln():
        _layernorm_into(x_ref, g_ref, b_ref, xn_ref, eps)

    xn = xn_ref[...]
    ax = jnp.dot(xn, wx_ref[...], preferred_element_type=jnp.float32) \
        + bx_ref[...].astype(jnp.float32)
    ag = jnp.dot(xn, wg_ref[...], preferred_element_type=jnp.float32) \
        + bg_ref[...].astype(jnp.float32)
    # TODO(synk): could swap to tanh-approx GELU if the accuracy budget allows (cheaper VPU path).
    gelu = 0.5 * ag * (1.0 + _erf_f32(ag * 0.7071067811865476))
    o_ref[...] = (ax * gelu).astype(o_ref.dtype)


def _flash_attn_kernel(q_ref, k_ref, v_ref, o_ref, m_sc, l_sc, acc_sc, *, hp, d):
    """Flash attention over KV tiles for a group of `hp` heads per grid step.
    Softmax scale and log2(e) are pre-folded into q (exp2 softmax -> EUP, no per-tile scale).
    m/l stats live in lane-padded (tq, hp) scratch; the accumulator update is a single
    lane-dense (tq, hp*d) op per kv tile (no per-head RMW slices)."""
    ki = pl.program_id(3)
    nk = pl.num_programs(3)

    @pl.when(ki == 0)
    def _init():
        m_sc[...] = jnp.full_like(m_sc, -jnp.inf)
        l_sc[...] = jnp.zeros_like(l_sc)
        acc_sc[...] = jnp.zeros_like(acc_sc)

    q = q_ref[0]          # (tq, hp*d), scale*log2e already folded into wq
    k = k_ref[0]
    v = v_ref[0]

    m_prev = m_sc[...]    # (tq, hp)
    l_prev = l_sc[...]

    pv_parts, alpha_parts, m_cols, l_cols = [], [], [], []
    for hh in range(hp):                           # static unroll over heads in the group
        sl = slice(hh * d, (hh + 1) * d)
        s = jax.lax.dot_general(q[:, sl], k[:, sl], (((1,), (1,)), ((), ())),
                                preferred_element_type=jnp.float32)   # (tq, tkv)
        m_p = m_prev[:, hh:hh + 1]
        m_n = jnp.maximum(m_p, jnp.max(s, axis=-1, keepdims=True))
        alpha = jnp.exp2(m_p - m_n)                                   # EUP
        p = jnp.exp2(s - m_n)                                         # EUP
        l_cols.append(alpha * l_prev[:, hh:hh + 1] + jnp.sum(p, axis=-1, keepdims=True))
        m_cols.append(m_n)
        pv_parts.append(jnp.dot(p.astype(v.dtype), v[:, sl],
                                preferred_element_type=jnp.float32))  # (tq, d)
        alpha_parts.append(jnp.broadcast_to(alpha, (alpha.shape[0], d)))

    pv_full = jnp.concatenate(pv_parts, axis=-1) if hp > 1 else pv_parts[0]
    alpha_full = jnp.concatenate(alpha_parts, axis=-1) if hp > 1 else alpha_parts[0]
    acc_sc[...] = alpha_full * acc_sc[...] + pv_full
    m_sc[...] = jnp.concatenate(m_cols, axis=-1) if hp > 1 else m_cols[0]
    l_sc[...] = jnp.concatenate(l_cols, axis=-1) if hp > 1 else l_cols[0]

    @pl.when(ki == nk - 1)
    def _finalize():
        inv = pl.reciprocal(l_sc[...], approx=False)                  # exact (review note)
        inv_parts = [jnp.broadcast_to(inv[:, hh:hh + 1], (inv.shape[0], d)) for hh in range(hp)]
        inv_full = jnp.concatenate(inv_parts, axis=-1) if hp > 1 else inv_parts[0]
        o_ref[0] = (acc_sc[...] * inv_full).astype(o_ref.dtype)


# ------------------------------ kernel wrappers ------------------------------

def linear(x2d, w, b=None, residual=None):
    """Tiled matmul: (R,K)@(K,N) with optional fused bias and residual add."""
    R, K = x2d.shape
    Nout = w.shape[1]
    tm_p, tn_p, tk_p = _mm_tile_prefs()
    base = _sublane_base(x2d.dtype)
    tm = _pick_tile(R, tm_p, base)
    tn = _pick_tile(Nout, tn_p, 128)
    tk = _pick_tile(K, tk_p, 128)
    has_bias = b is not None
    has_res = residual is not None
    vmem_limit, _ = _hw_budget()

    in_specs = [pl.BlockSpec((tm, tk), lambda i, j, k: (i, k)),
                pl.BlockSpec((tk, tn), lambda i, j, k: (k, j))]
    args = [x2d, w]
    if has_bias:
        in_specs.append(pl.BlockSpec((1, tn), lambda i, j, k: (0, j)))
        args.append(b.reshape(1, Nout))
    if has_res:
        in_specs.append(pl.BlockSpec((tm, tn), lambda i, j, k: (i, j)))
        args.append(residual)

    itemsize = x2d.dtype.itemsize
    nbytes = (x2d.size + w.size + R * Nout) * itemsize
    if has_bias:
        nbytes += Nout * itemsize
    if has_res:
        nbytes += R * Nout * itemsize

    return pl.pallas_call(
        functools.partial(_matmul_kernel, has_bias=has_bias, has_res=has_res),
        out_shape=jax.ShapeDtypeStruct((R, Nout), x2d.dtype),
        grid=(R // tm, Nout // tn, K // tk),
        in_specs=in_specs,
        out_specs=pl.BlockSpec((tm, tn), lambda i, j, k: (i, j)),
        scratch_shapes=[pltpu.VMEM((tm, tn), jnp.float32)],
        compiler_params=pltpu.CompilerParams(
            dimension_semantics=("parallel", "parallel", "arbitrary"),
            vmem_limit_bytes=vmem_limit),
        cost_estimate=pl.CostEstimate(flops=int(2 * R * K * Nout),
                                      transcendentals=0,
                                      bytes_accessed=int(nbytes)),
    )(*args)


def ln_linear(x2d, ln_w, ln_b, w, eps=1e-5):
    """LayerNorm fused with a bias-free projection.  Normalized rows are cached in VMEM
    (computed only at j == 0) and reused across output-column tiles."""
    R, K = x2d.shape
    Nout = w.shape[1]
    tm_p, tn_p, _ = _mm_tile_prefs()
    tm = _pick_tile(R, tm_p, _sublane_base(x2d.dtype))
    tn = _pick_tile(Nout, tn_p, 128)
    vmem_limit, _ = _hw_budget()
    itemsize = x2d.dtype.itemsize
    nbytes = (x2d.size + w.size + 2 * K + R * Nout) * itemsize
    return pl.pallas_call(
        functools.partial(_ln_matmul_kernel, eps=eps),
        out_shape=jax.ShapeDtypeStruct((R, Nout), x2d.dtype),
        grid=(R // tm, Nout // tn),
        in_specs=[pl.BlockSpec((tm, K), lambda i, j: (i, 0)),
                  pl.BlockSpec((1, K), lambda i, j: (0, 0)),
                  pl.BlockSpec((1, K), lambda i, j: (0, 0)),
                  pl.BlockSpec((K, tn), lambda i, j: (0, j))],
        out_specs=pl.BlockSpec((tm, tn), lambda i, j: (i, j)),
        scratch_shapes=[pltpu.VMEM((tm, K), x2d.dtype)],
        compiler_params=pltpu.CompilerParams(
            dimension_semantics=("parallel", "arbitrary"),
            vmem_limit_bytes=vmem_limit),
        cost_estimate=pl.CostEstimate(flops=int(2 * R * K * Nout + 7 * R * K),
                                      transcendentals=int(R),
                                      bytes_accessed=int(nbytes)),
    )(x2d, ln_w.reshape(1, K), ln_b.reshape(1, K), w)


def ln_geglu_linear(x2d, ln_w, ln_b, wx, bx, wg, bg, eps=1e-5):
    """LayerNorm (cached in VMEM) + GEGLU projection: (xn@wx+bx) * gelu(xn@wg+bg)."""
    R, K = x2d.shape
    F = wx.shape[1]
    tm_p, tn_p, _ = _mm_tile_prefs()
    tm = _pick_tile(R, tm_p, _sublane_base(x2d.dtype))
    tn = _pick_tile(F, tn_p, 128)
    vmem_limit, _ = _hw_budget()
    itemsize = x2d.dtype.itemsize
    nbytes = (x2d.size + wx.size + wg.size + 2 * F + 2 * K + R * F) * itemsize
    return pl.pallas_call(
        functools.partial(_ln_geglu_kernel, eps=eps),
        out_shape=jax.ShapeDtypeStruct((R, F), x2d.dtype),
        grid=(R // tm, F // tn),
        in_specs=[pl.BlockSpec((tm, K), lambda i, j: (i, 0)),
                  pl.BlockSpec((1, K), lambda i, j: (0, 0)),
                  pl.BlockSpec((1, K), lambda i, j: (0, 0)),
                  pl.BlockSpec((K, tn), lambda i, j: (0, j)),
                  pl.BlockSpec((1, tn), lambda i, j: (0, j)),
                  pl.BlockSpec((K, tn), lambda i, j: (0, j)),
                  pl.BlockSpec((1, tn), lambda i, j: (0, j))],
        out_specs=pl.BlockSpec((tm, tn), lambda i, j: (i, j)),
        scratch_shapes=[pltpu.VMEM((tm, K), x2d.dtype)],
        compiler_params=pltpu.CompilerParams(
            dimension_semantics=("parallel", "arbitrary"),
            vmem_limit_bytes=vmem_limit),
        cost_estimate=pl.CostEstimate(flops=int(4 * R * K * F + 10 * R * F),
                                      transcendentals=int(R * F + R),
                                      bytes_accessed=int(nbytes)),
    )(x2d, ln_w.reshape(1, K), ln_b.reshape(1, K),
      wx, bx.reshape(1, F), wg, bg.reshape(1, F))


def attention(q_src, k_src, v_src, heads, dim_head, *, q_off=0, k_off=0, v_off=0):
    """Flash attention over (B, S, *) layouts.  q/k/v may live inside fused projection
    arrays; *_off are element offsets of the q/k/v column blocks in the last dim.  When the
    head-group window is lane-dense (gw % 128 == 0) the BlockSpec windows directly into the
    fused array; otherwise (tiny inner dims only) a one-time slice is taken."""
    B, Nq = q_src.shape[0], q_src.shape[1]
    Mkv = k_src.shape[1]
    inner = heads * dim_head
    hp = _pick_head_group(heads, dim_head)
    gw = hp * dim_head

    def col_operand(arr, off):
        if gw % 128 == 0:
            return arr, off // gw
        if off == 0 and arr.shape[-1] == inner:   # gw == inner (fallback head group)
            return arr, 0
        return jax.lax.slice_in_dim(arr, off, off + inner, axis=-1), 0

    q_arr, qb = col_operand(q_src, q_off)
    k_arr, kb = col_operand(k_src, k_off)
    v_arr, vb = col_operand(v_src, v_off)

    base = _sublane_base(q_arr.dtype)
    tq_p, tkv_p = _attn_tile_prefs()
    tq = _pick_tile(Nq, tq_p, base)
    tkv = _pick_tile(Mkv, tkv_p, base)
    grid = (B, heads // hp, Nq // tq, Mkv // tkv)
    vmem_limit, _ = _hw_budget()

    itemsize = jnp.dtype(q_arr.dtype).itemsize
    cost = pl.CostEstimate(
        flops=int(4 * B * heads * Nq * Mkv * dim_head),
        transcendentals=int(B * heads * Nq * Mkv),
        bytes_accessed=int(B * (2 * Nq * inner + 2 * Mkv * inner) * itemsize))

    return pl.pallas_call(
        functools.partial(_flash_attn_kernel, hp=hp, d=dim_head),
        out_shape=jax.ShapeDtypeStruct((B, Nq, inner), q_arr.dtype),
        grid=grid,
        in_specs=[
            pl.BlockSpec((1, tq, gw), lambda b, hg, qi, ki, o=qb: (b, qi, o + hg)),
            pl.BlockSpec((1, tkv, gw), lambda b, hg, qi, ki, o=kb: (b, ki, o + hg)),
            pl.BlockSpec((1, tkv, gw), lambda b, hg, qi, ki, o=vb: (b, ki, o + hg)),
        ],
        out_specs=pl.BlockSpec((1, tq, gw), lambda b, hg, qi, ki: (b, qi, hg)),
        scratch_shapes=[
            pltpu.VMEM((tq, hp), jnp.float32),    # running max (log2 space) per head
            pltpu.VMEM((tq, hp), jnp.float32),    # running denom per head
            pltpu.VMEM((tq, gw), jnp.float32),    # lane-dense output accumulator
        ],
        compiler_params=pltpu.CompilerParams(
            dimension_semantics=("parallel", "parallel", "parallel", "arbitrary"),
            vmem_limit_bytes=vmem_limit),
        cost_estimate=cost,
    )(q_arr, k_arr, v_arr)


# ------------------------------- module forward ------------------------------

def prepare_params(params, dim_head):
    """One-time (host-side) weight fusion/splitting:
    - softmax scale * log2(e) folded into wq (exp2 softmax, no per-tile scaling),
    - self-attn Q|K|V and cross-attn K|V weights concatenated,
    - GEGLU w1 split into x/gate halves."""
    qscale = (dim_head ** -0.5) * _LOG2E
    p1, p2, pf = params["attn1"], params["attn2"], params["ff"]
    F = pf["w1"].shape[1] // 2
    return {
        "norm1_w": params["norm1_w"], "norm1_b": params["norm1_b"],
        "norm2_w": params["norm2_w"], "norm2_b": params["norm2_b"],
        "norm3_w": params["norm3_w"], "norm3_b": params["norm3_b"],
        "attn1_wqkv": jnp.concatenate([p1["wq"] * qscale, p1["wk"], p1["wv"]], axis=1),
        "attn1_wo": p1["wo"], "attn1_bo": p1["bo"],
        "attn2_wq": p2["wq"] * qscale,
        "attn2_wkv": jnp.concatenate([p2["wk"], p2["wv"]], axis=1),
        "attn2_wo": p2["wo"], "attn2_bo": p2["bo"],
        "ff_wx": pf["w1"][:, :F], "ff_bx": pf["b1"][:F],
        "ff_wg": pf["w1"][:, F:], "ff_bg": pf["b1"][F:],
        "ff_w2": pf["w2"], "ff_b2": pf["b2"],
    }


def basic_transformer_block(x, context, prep, heads, dim_head):
    """disable_self_attn=False; dropout (p=0) / checkpoint are identity in forward."""
    B, N, D = x.shape
    M = context.shape[1]
    inner = heads * dim_head
    x2 = x.reshape(B * N, D)
    c2 = context.reshape(B * M, context.shape[2])

    # ---- attn1 (self-attention): one LN + one fused QKV projection ----
    qkv = ln_linear(x2, prep["norm1_w"], prep["norm1_b"], prep["attn1_wqkv"])
    qkv3 = qkv.reshape(B, N, 3 * inner)
    o = attention(qkv3, qkv3, qkv3, heads, dim_head,
                  q_off=0, k_off=inner, v_off=2 * inner)
    x2 = linear(o.reshape(B * N, inner), prep["attn1_wo"], b=prep["attn1_bo"], residual=x2)

    # ---- attn2 (cross-attention): LN only on x; context K|V fused, NOT normalized ----
    q = ln_linear(x2, prep["norm2_w"], prep["norm2_b"], prep["attn2_wq"])
    kv = linear(c2, prep["attn2_wkv"])
    o = attention(q.reshape(B, N, inner), kv.reshape(B, M, 2 * inner),
                  kv.reshape(B, M, 2 * inner), heads, dim_head,
                  q_off=0, k_off=0, v_off=inner)
    x2 = linear(o.reshape(B * N, inner), prep["attn2_wo"], b=prep["attn2_bo"], residual=x2)

    # ---- feed-forward: LN + GEGLU(w1) fused, then w2 with fused bias + residual ----
    h = ln_geglu_linear(x2, prep["norm3_w"], prep["norm3_b"],
                        prep["ff_wx"], prep["ff_bx"], prep["ff_wg"], prep["ff_bg"])
    x2 = linear(h, prep["ff_w2"], b=prep["ff_b2"], residual=x2)

    # TODO(synk): the optional attention-mask path, dropout>0 and torch.utils.checkpoint are
    # identity / unused in this forward and are not implemented as kernels.
    return x2.reshape(B, N, D)


# ------------------------------ pure-JAX reference ----------------------------

def reference_block(x, context, params, heads, dim_head):
    def ln(t, w, b, eps=1e-5):
        m = t.mean(-1, keepdims=True)
        v = ((t - m) ** 2).mean(-1, keepdims=True)
        return (t - m) / jnp.sqrt(v + eps) * w + b

    def attn(xq, ctx, p):
        B, N, _ = xq.shape
        M = ctx.shape[1]
        q = xq @ p["wq"]
        k = ctx @ p["wk"]
        v = ctx @ p["wv"]
        q = q.reshape(B, N, heads, dim_head).transpose(0, 2, 1, 3)
        k = k.reshape(B, M, heads, dim_head).transpose(0, 2, 1, 3)
        v = v.reshape(B, M, heads, dim_head).transpose(0, 2, 1, 3)
        sim = jnp.einsum("bhid,bhjd->bhij", q, k) * dim_head ** -0.5
        a = jax.nn.softmax(sim, axis=-1)
        o = jnp.einsum("bhij,bhjd->bhid", a, v)
        o = o.transpose(0, 2, 1, 3).reshape(B, N, heads * dim_head)
        return o @ p["wo"] + p["bo"]

    def ff(t, p):
        proj = t @ p["w1"] + p["b1"]
        inner = proj.shape[-1] // 2
        xh, gate = proj[..., :inner], proj[..., inner:]
        gelu = 0.5 * gate * (1.0 + jax.scipy.special.erf(gate / jnp.sqrt(2.0)))
        return (xh * gelu) @ p["w2"] + p["b2"]

    h1 = ln(x, params["norm1_w"], params["norm1_b"])
    x = attn(h1, h1, params["attn1"]) + x
    x = attn(ln(x, params["norm2_w"], params["norm2_b"]), context, params["attn2"]) + x
    x = ff(ln(x, params["norm3_w"], params["norm3_b"]), params["ff"]) + x
    return x


# -------------------------------- params / main -------------------------------

def init_params(key, dim, context_dim, heads, dim_head, ff_mult=4):
    inner = heads * dim_head
    ff_inner = dim * ff_mult
    ks = jax.random.split(key, 18)

    def w(k, shape, scale=0.05):
        return (scale * jax.random.normal(k, shape)).astype(jnp.float32)

    ones = lambda n: jnp.ones((n,), jnp.float32)
    return {
        "norm1_w": ones(dim), "norm1_b": w(ks[0], (dim,)),
        "norm2_w": ones(dim), "norm2_b": w(ks[1], (dim,)),
        "norm3_w": ones(dim), "norm3_b": w(ks[2], (dim,)),
        "attn1": {"wq": w(ks[3], (dim, inner)), "wk": w(ks[4], (dim, inner)),
                  "wv": w(ks[5], (dim, inner)), "wo": w(ks[6], (inner, dim)),
                  "bo": w(ks[7], (dim,))},
        "attn2": {"wq": w(ks[8], (dim, inner)), "wk": w(ks[9], (context_dim, inner)),
                  "wv": w(ks[10], (context_dim, inner)), "wo": w(ks[11], (inner, dim)),
                  "bo": w(ks[12], (dim,))},
        "ff": {"w1": w(ks[13], (dim, 2 * ff_inner)), "b1": w(ks[14], (2 * ff_inner,)),
               "w2": w(ks[15], (ff_inner, dim)), "b2": w(ks[16], (dim,))},
    }


def _run_case(key, B, N, M, dim, context_dim, n_heads, d_head, tag):
    kx, kc, kp = jax.random.split(key, 3)
    x = jax.random.normal(kx, (B, N, dim), dtype=jnp.float32)
    context = jax.random.normal(kc, (B, M, context_dim), dtype=jnp.float32)
    params = init_params(kp, dim, context_dim, n_heads, d_head)
    prep = prepare_params(params, d_head)

    fwd = jax.jit(lambda x_, c_, p_: basic_transformer_block(x_, c_, p_, n_heads, d_head))
    out = jax.block_until_ready(fwd(x, context, prep))
    ref = jax.block_until_ready(reference_block(x, context, params, n_heads, d_head))
    assert out.shape == (B, N, dim), tag
    assert jnp.allclose(out, ref, atol=5e-3, rtol=5e-3), tag


if __name__ == "__main__":
    # 'highest' keeps the f32 correctness harness exact; in bf16 production runs this (and f32
    # inputs) should be dropped so the MXU runs at native bf16 throughput.
    jax.config.update("jax_default_matmul_precision", "highest")

    key = jax.random.PRNGKey(0)
    k_small, k_med = jax.random.split(key, 2)

    # Small sanity case (single-tile everywhere).
    _run_case(k_small, B=2, N=8, M=8, dim=32, context_dim=16, n_heads=4, d_head=8,
              tag="small")

    # Moderate case that exercises the multi-row-tile matmuls, multi-q-tile and
    # multi-kv-tile online-softmax paths of the flash kernel.
    _run_case(k_med, B=1, N=1536, M=768, dim=64, context_dim=32, n_heads=2, d_head=32,
              tag="medium")

    print("KERNEL_OK")
</pallas_src>

<mosaic_0001>
module attributes {stable_mosaic.version = 11 : i64} {
  func.func @_matmul_kernel(%arg0: i32, %arg1: i32, %arg2: i32, %arg3: memref<16x16xf32, #tpu.memory_space<vmem>>, %arg4: memref<16x64xf32, #tpu.memory_space<vmem>>, %arg5: memref<16x64xf32, #tpu.memory_space<vmem>>, %arg6: memref<16x64xf32, #tpu.memory_space<vmem>>) attributes {dimension_semantics = [#tpu.dimension_semantics<parallel>, #tpu.dimension_semantics<parallel>, #tpu.dimension_semantics<arbitrary>], iteration_bounds = array<i64: 1, 1, 1>, scalar_prefetch = 0 : i64, scratch_operands = 1 : i64, tpu.core_type = #tpu.core_type<tc>, window_params = [{transform_indices = @transform_0, window_bounds = array<i64: 16, 16>}, {transform_indices = @transform_1, window_bounds = array<i64: 16, 64>}, {transform_indices = @transform_2, window_bounds = array<i64: 16, 64>}]} {
    %c0_i32 = arith.constant 0 : i32
    %0 = arith.cmpi eq, %arg2, %c0_i32 : i32
    %1 = arith.extui %0 : i1 to i32
    %c0_i32_0 = arith.constant 0 : i32
    %2 = arith.cmpi ne, %1, %c0_i32_0 : i32
    scf.if %2 {
      %cst_10 = arith.constant 0.000000e+00 : f32
      %12 = vector.broadcast %cst_10 : f32 to vector<16x64xf32>
      %c0_11 = arith.constant 0 : index
      %c0_12 = arith.constant 0 : index
      %13 = vector.load %arg6[%c0_11, %c0_12] : memref<16x64xf32, #tpu.memory_space<vmem>>, vector<16x64xf32>
      tpu.vector_store %arg6[%c0_11, %c0_12], %12 {strides = array<i32>} : memref<16x64xf32, #tpu.memory_space<vmem>>, vector<16x64xf32>,
    } else {
    }
    %c0 = arith.constant 0 : index
    %c0_1 = arith.constant 0 : index
    %3 = vector.load %arg6[%c0, %c0_1] : memref<16x64xf32, #tpu.memory_space<vmem>>, vector<16x64xf32>
    %c0_2 = arith.constant 0 : index
    %c0_3 = arith.constant 0 : index
    %4 = vector.load %arg3[%c0_2, %c0_3] : memref<16x16xf32, #tpu.memory_space<vmem>>, vector<16x16xf32>
    %c0_4 = arith.constant 0 : index
    %c0_5 = arith.constant 0 : index
    %5 = vector.load %arg4[%c0_4, %c0_5] : memref<16x64xf32, #tpu.memory_space<vmem>>, vector<16x64xf32>
    %cst = arith.constant dense<0.000000e+00> : vector<16x64xf32>
    %6 = tpu.matmul %4, %5, %cst {dimension_numbers = #tpu.dot_dimension_numbers<[1], [0], [0], [1], [0, 0, 1, 1], [], []>, precision = #tpu.contract_precision<fp32>} : vector<16x16xf32>, vector<16x64xf32>, vector<16x64xf32> -> vector<16x64xf32>
    %7 = arith.addf %3, %6 : vector<16x64xf32>
    %c0_6 = arith.constant 0 : index
    %c0_7 = arith.constant 0 : index
    %8 = vector.load %arg6[%c0_6, %c0_7] : memref<16x64xf32, #tpu.memory_space<vmem>>, vector<16x64xf32>
    tpu.vector_store %arg6[%c0_6, %c0_7], %7 {strides = array<i32>} : memref<16x64xf32, #tpu.memory_space<vmem>>, vector<16x64xf32>,
    %c0_i32_8 = arith.constant 0 : i32
    %9 = arith.cmpi eq, %arg2, %c0_i32_8 : i32
    %10 = arith.extui %9 : i1 to i32
    %c0_i32_9 = arith.constant 0 : i32
    %11 = arith.cmpi ne, %10, %c0_i32_9 : i32
    scf.if %11 {
      %c0_10 = arith.constant 0 : index
      %c0_11 = arith.constant 0 : index
      %12 = vector.load %arg6[%c0_10, %c0_11] : memref<16x64xf32, #tpu.memory_space<vmem>>, vector<16x64xf32>
      %c0_12 = arith.constant 0 : index
      %c0_13 = arith.constant 0 : index
      %13 = vector.load %arg5[%c0_12, %c0_13] : memref<16x64xf32, #tpu.memory_space<vmem>>, vector<16x64xf32>
      tpu.vector_store %arg5[%c0_12, %c0_13], %12 {strides = array<i32>} : memref<16x64xf32, #tpu.memory_space<vmem>>, vector<16x64xf32>,
    } else {
    }
    return
  }
  func.func @transform_0(%arg0: i32, %arg1: i32, %arg2: i32) -> (i32, i32) {
    %c0_i32 = arith.constant 0 : i32
    return %arg0, %arg2 : i32, i32
  }
  func.func @transform_1(%arg0: i32, %arg1: i32, %arg2: i32) -> (i32, i32) {
    %c0_i32 = arith.constant 0 : i32
    return %arg2, %arg1 : i32, i32
  }
  func.func @transform_2(%arg0: i32, %arg1: i32, %arg2: i32) -> (i32, i32) {
    %c0_i32 = arith.constant 0 : i32
    return %arg0, %arg1 : i32, i32
  }
}

module attributes {stable_mosaic.version = 11 : i64} {
  func.func @_ln_matmul_kernel(%arg0: i32, %arg1: i32, %arg2: memref<16x32xf32, #tpu.memory_space<vmem>>, %arg3: memref<1x32xf32, #tpu.memory_space<vmem>>, %arg4: memref<1x32xf32, #tpu.memory_space<vmem>>, %arg5: memref<32x96xf32, #tpu.memory_space<vmem>>, %arg6: memref<16x96xf32, #tpu.memory_space<vmem>>, %arg7: memref<16x32xf32, #tpu.memory_space<vmem>>) attributes {dimension_semantics = [#tpu.dimension_semantics<parallel>, #tpu.dimension_semantics<arbitrary>], iteration_bounds = array<i64: 1, 1>, scalar_prefetch = 0 : i64, scratch_operands = 1 : i64, tpu.core_type = #tpu.core_type<tc>, window_params = [{transform_indices = @transform_0, window_bounds = array<i64: 16, 32>}, {pipeline_mode = #tpu.pipeline_mode<synchronous>, transform_indices = @transform_1, window_bounds = array<i64: 1, 32>}, {pipeline_mode = #tpu.pipeline_mode<synchronous>, transform_indices = @transform_2, window_bounds = array<i64: 1, 32>}, {transform_indices = @transform_3, window_bounds = array<i64: 32, 96>}, {transform_indices = @transform_4, window_bounds = array<i64: 16, 96>}]} {
    %c0_i32 = arith.constant 0 : i32
    %0 = arith.cmpi eq, %arg1, %c0_i32 : i32
    %1 = arith.extui %0 : i1 to i32
    %c0_i32_0 = arith.constant 0 : i32
    %2 = arith.cmpi ne, %1, %c0_i32_0 : i32
    scf.if %2 {
      %c0_6 = arith.constant 0 : index
      %c0_7 = arith.constant 0 : index
      %7 = vector.load %arg2[%c0_6, %c0_7] : memref<16x32xf32, #tpu.memory_space<vmem>>, vector<16x32xf32>
      %cst_8 = arith.constant dense<0.000000e+00> : vector<16xf32>
      %8 = vector.multi_reduction <add>, %7, %cst_8 [1] : vector<16x32xf32> to vector<16xf32>
      %9 = vector.shape_cast %8 : vector<16xf32> to vector<16x1xf32>
      %cst_9 = arith.constant 3.200000e+01 : f32
      %10 = vector.broadcast %cst_9 : f32 to vector<16x1xf32>
      %11 = arith.divf %9, %10 : vector<16x1xf32>
      %12 = vector.broadcast %11 : vector<16x1xf32> to vector<16x32xf32>
      %13 = arith.subf %7, %12 : vector<16x32xf32>
      %14 = arith.mulf %13, %13 : vector<16x32xf32>
      %cst_10 = arith.constant dense<0.000000e+00> : vector<16xf32>
      %15 = vector.multi_reduction <add>, %14, %cst_10 [1] : vector<16x32xf32> to vector<16xf32>
      %16 = vector.shape_cast %15 : vector<16xf32> to vector<16x1xf32>
      %cst_11 = arith.constant 3.200000e+01 : f32
      %17 = vector.broadcast %cst_11 : f32 to vector<16x1xf32>
      %18 = arith.divf %16, %17 : vector<16x1xf32>
      %cst_12 = arith.constant 9.99999974E-6 : f32
      %19 = vector.broadcast %cst_12 : f32 to vector<16x1xf32>
      %20 = arith.addf %18, %19 : vector<16x1xf32>
      %21 = math.rsqrt %20 : vector<16x1xf32>
      %22 = vector.broadcast %21 : vector<16x1xf32> to vector<16x32xf32>
      %23 = arith.mulf %13, %22 : vector<16x32xf32>
      %c0_13 = arith.constant 0 : index
      %c0_14 = arith.constant 0 : index
      %24 = vector.load %arg3[%c0_13, %c0_14] : memref<1x32xf32, #tpu.memory_space<vmem>>, vector<1x32xf32>
      %25 = vector.broadcast %24 : vector<1x32xf32> to vector<16x32xf32>
      %26 = arith.mulf %23, %25 : vector<16x32xf32>
      %c0_15 = arith.constant 0 : index
      %c0_16 = arith.constant 0 : index
      %27 = vector.load %arg4[%c0_15, %c0_16] : memref<1x32xf32, #tpu.memory_space<vmem>>, vector<1x32xf32>
      %28 = vector.broadcast %27 : vector<1x32xf32> to vector<16x32xf32>
      %29 = arith.addf %26, %28 : vector<16x32xf32>
      %c0_17 = arith.constant 0 : index
      %c0_18 = arith.constant 0 : index
      %30 = vector.load %arg7[%c0_17, %c0_18] : memref<16x32xf32, #tpu.memory_space<vmem>>, vector<16x32xf32>
      tpu.vector_store %arg7[%c0_17, %c0_18], %29 {strides = array<i32>} : memref<16x32xf32, #tpu.memory_space<vmem>>, vector<16x32xf32>,
    } else {
    }
    %c0 = arith.constant 0 : index
    %c0_1 = arith.constant 0 : index
    %3 = vector.load %arg7[%c0, %c0_1] : memref<16x32xf32, #tpu.memory_space<vmem>>, vector<16x32xf32>
    %c0_2 = arith.constant 0 : index
    %c0_3 = arith.constant 0 : index
    %4 = vector.load %arg5[%c0_2, %c0_3] : memref<32x96xf32, #tpu.memory_space<vmem>>, vector<32x96xf32>
    %cst = arith.constant dense<0.000000e+00> : vector<16x96xf32>
    %5 = tpu.matmul %3, %4, %cst {dimension_numbers = #tpu.dot_dimension_numbers<[1], [0], [0], [1], [0, 0, 1, 1], [], []>, precision = #tpu.contract_precision<fp32>} : vector<16x32xf32>, vector<32x96xf32>, vector<16x96xf32> -> vector<16x96xf32>
    %c0_4 = arith.constant 0 : index
    %c0_5 = arith.constant 0 : index
    %6 = vector.load %arg6[%c0_4, %c0_5] : memref<16x96xf32, #tpu.memory_space<vmem>>, vector<16x96xf32>
    tpu.vector_store %arg6[%c0_4, %c0_5], %5 {strides = array<i32>} : memref<16x96xf32, #tpu.memory_space<vmem>>, vector<16x96xf32>,
    return
  }
  func.func @transform_0(%arg0: i32, %arg1: i32) -> (i32, i32) {
    %c0_i32 = arith.constant 0 : i32
    %c0_i32_0 = arith.constant 0 : i32
    return %arg0, %c0_i32 : i32, i32
  }
  func.func @transform_1(%arg0: i32, %arg1: i32) -> (i32, i32) {
    %c0_i32 = arith.constant 0 : i32
    %c0_i32_0 = arith.constant 0 : i32
    %c0_i32_1 = arith.constant 0 : i32
    return %c0_i32, %c0_i32_0 : i32, i32
  }
  func.func @transform_2(%arg0: i32, %arg1: i32) -> (i32, i32) {
    %c0_i32 = arith.constant 0 : i32
    %c0_i32_0 = arith.constant 0 : i32
    %c0_i32_1 = arith.constant 0 : i32
    return %c0_i32, %c0_i32_0 : i32, i32
  }
  func.func @transform_3(%arg0: i32, %arg1: i32) -> (i32, i32) {
    %c0_i32 = arith.constant 0 : i32
    %c0_i32_0 = arith.constant 0 : i32
    return %c0_i32, %arg1 : i32, i32
  }
  func.func @transform_4(%arg0: i32, %arg1: i32) -> (i32, i32) {
    %c0_i32 = arith.constant 0 : i32
    return %arg0, %arg1 : i32, i32
  }
}

module attributes {stable_mosaic.version = 11 : i64} {
  func.func @_flash_attn_kernel(%arg0: i32, %arg1: i32, %arg2: i32, %arg3: i32, %arg4: memref<1x8x32xf32, #tpu.memory_space<vmem>>, %arg5: memref<1x8x32xf32, #tpu.memory_space<vmem>>, %arg6: memref<1x8x32xf32, #tpu.memory_space<vmem>>, %arg7: memref<1x8x32xf32, #tpu.memory_space<vmem>>, %arg8: memref<8x4xf32, #tpu.memory_space<vmem>>, %arg9: memref<8x4xf32, #tpu.memory_space<vmem>>, %arg10: memref<8x32xf32, #tpu.memory_space<vmem>>) attributes {dimension_semantics = [#tpu.dimension_semantics<parallel>, #tpu.dimension_semantics<parallel>, #tpu.dimension_semantics<parallel>, #tpu.dimension_semantics<arbitrary>], iteration_bounds = array<i64: 2, 1, 1, 1>, scalar_prefetch = 0 : i64, scratch_operands = 3 : i64, tpu.core_type = #tpu.core_type<tc>, window_params = [{transform_indices = @transform_0, window_bounds = array<i64: 1, 8, 32>}, {transform_indices = @transform_1, window_bounds = array<i64: 1, 8, 32>}, {transform_indices = @transform_2, window_bounds = array<i64: 1, 8, 32>}, {transform_indices = @transform_3, window_bounds = array<i64: 1, 8, 32>}]} {
    %c0_i32 = arith.constant 0 : i32
    %0 = arith.cmpi eq, %arg3, %c0_i32 : i32
    %1 = arith.extui %0 : i1 to i32
    %c0_i32_0 = arith.constant 0 : i32
    %2 = arith.cmpi ne, %1, %c0_i32_0 : i32
    scf.if %2 {
      %cst_38 = arith.constant 0xFF800000 : f32
      %108 = vector.broadcast %cst_38 : f32 to vector<8x4xf32>
      %c0_39 = arith.constant 0 : index
      %c0_40 = arith.constant 0 : index
      %109 = vector.load %arg8[%c0_39, %c0_40] : memref<8x4xf32, #tpu.memory_space<vmem>>, vector<8x4xf32>
      tpu.vector_store %arg8[%c0_39, %c0_40], %108 {strides = array<i32>} : memref<8x4xf32, #tpu.memory_space<vmem>>, vector<8x4xf32>,
      %cst_41 = arith.constant 0.000000e+00 : f32
      %110 = vector.broadcast %cst_41 : f32 to vector<8x4xf32>
      %c0_42 = arith.constant 0 : index
      %c0_43 = arith.constant 0 : index
      %111 = vector.load %arg9[%c0_42, %c0_43] : memref<8x4xf32, #tpu.memory_space<vmem>>, vector<8x4xf32>
      tpu.vector_store %arg9[%c0_42, %c0_43], %110 {strides = array<i32>} : memref<8x4xf32, #tpu.memory_space<vmem>>, vector<8x4xf32>,
      %cst_44 = arith.constant 0.000000e+00 : f32
      %112 = vector.broadcast %cst_44 : f32 to vector<8x32xf32>
      %c0_45 = arith.constant 0 : index
      %c0_46 = arith.constant 0 : index
      %113 = vector.load %arg10[%c0_45, %c0_46] : memref<8x32xf32, #tpu.memory_space<vmem>>, vector<8x32xf32>
      tpu.vector_store %arg10[%c0_45, %c0_46], %112 {strides = array<i32>} : memref<8x32xf32, #tpu.memory_space<vmem>>, vector<8x32xf32>,
    } else {
    }
    %c0 = arith.constant 0 : index
    %c0_1 = arith.constant 0 : index
    %c0_2 = arith.constant 0 : index
    %3 = vector.load %arg4[%c0, %c0_1, %c0_2] : memref<1x8x32xf32, #tpu.memory_space<vmem>>, vector<1x8x32xf32>
    %4 = vector.shape_cast %3 : vector<1x8x32xf32> to vector<8x32xf32>
    %c0_3 = arith.constant 0 : index
    %c0_4 = arith.constant 0 : index
    %c0_5 = arith.constant 0 : index
    %5 = vector.load %arg5[%c0_3, %c0_4, %c0_5] : memref<1x8x32xf32, #tpu.memory_space<vmem>>, vector<1x8x32xf32>
    %6 = vector.shape_cast %5 : vector<1x8x32xf32> to vector<8x32xf32>
    %c0_6 = arith.constant 0 : index
    %c0_7 = arith.constant 0 : index
    %c0_8 = arith.constant 0 : index
    %7 = vector.load %arg6[%c0_6, %c0_7, %c0_8] : memref<1x8x32xf32, #tpu.memory_space<vmem>>, vector<1x8x32xf32>
    %8 = vector.shape_cast %7 : vector<1x8x32xf32> to vector<8x32xf32>
    %c0_9 = arith.constant 0 : index
    %c0_10 = arith.constant 0 : index
    %9 = vector.load %arg8[%c0_9, %c0_10] : memref<8x4xf32, #tpu.memory_space<vmem>>, vector<8x4xf32>
    %c0_11 = arith.constant 0 : index
    %c0_12 = arith.constant 0 : index
    %10 = vector.load %arg9[%c0_11, %c0_12] : memref<8x4xf32, #tpu.memory_space<vmem>>, vector<8x4xf32>
    %11 = vector.extract_strided_slice %4 {offsets = [0, 0], sizes = [8, 8], strides = [1, 1]} : vector<8x32xf32> to vector<8x8xf32>
    %12 = vector.extract_strided_slice %6 {offsets = [0, 0], sizes = [8, 8], strides = [1, 1]} : vector<8x32xf32> to vector<8x8xf32>
    %cst = arith.constant dense<0.000000e+00> : vector<8x8xf32>
    %13 = tpu.matmul %11, %12, %cst {dimension_numbers = #tpu.dot_dimension_numbers<[1], [1], [0], [0], [0, 0, 1, 0], [], []>, precision = #tpu.contract_precision<fp32>} : vector<8x8xf32>, vector<8x8xf32>, vector<8x8xf32> -> vector<8x8xf32>
    %14 = vector.extract_strided_slice %9 {offsets = [0, 0], sizes = [8, 1], strides = [1, 1]} : vector<8x4xf32> to vector<8x1xf32>
    %cst_13 = arith.constant dense<0xFF800000> : vector<8xf32>
    %15 = vector.multi_reduction <maximumf>, %13, %cst_13 [1] : vector<8x8xf32> to vector<8xf32>
    %16 = vector.shape_cast %15 : vector<8xf32> to vector<8x1xf32>
    %17 = arith.maximumf %14, %16 : vector<8x1xf32>
    %18 = arith.subf %14, %17 : vector<8x1xf32>
    %19 = math.exp2 %18 : vector<8x1xf32>
    %20 = vector.broadcast %17 : vector<8x1xf32> to vector<8x8xf32>
    %21 = arith.subf %13, %20 : vector<8x8xf32>
    %22 = math.exp2 %21 : vector<8x8xf32>
    %23 = vector.extract_strided_slice %10 {offsets = [0, 0], sizes = [8, 1], strides = [1, 1]} : vector<8x4xf32> to vector<8x1xf32>
    %24 = arith.mulf %19, %23 : vector<8x1xf32>
    %cst_14 = arith.constant dense<0.000000e+00> : vector<8xf32>
    %25 = vector.multi_reduction <add>, %22, %cst_14 [1] : vector<8x8xf32> to vector<8xf32>
    %26 = vector.shape_cast %25 : vector<8xf32> to vector<8x1xf32>
    %27 = arith.addf %24, %26 : vector<8x1xf32>
    %28 = vector.extract_strided_slice %8 {offsets = [0, 0], sizes = [8, 8], strides = [1, 1]} : vector<8x32xf32> to vector<8x8xf32>
    %cst_15 = arith.constant dense<0.000000e+00> : vector<8x8xf32>
    %29 = tpu.matmul %22, %28, %cst_15 {dimension_numbers = #tpu.dot_dimension_numbers<[1], [0], [0], [1], [0, 0, 1, 1], [], []>, precision = #tpu.contract_precision<fp32>} : vector<8x8xf32>, vector<8x8xf32>, vector<8x8xf32> -> vector<8x8xf32>
    %30 = vector.shape_cast %19 : vector<8x1xf32> to vector<8x1xf32>
    %31 = vector.broadcast %30 : vector<8x1xf32> to vector<8x8xf32>
    %32 = vector.extract_strided_slice %4 {offsets = [0, 8], sizes = [8, 8], strides = [1, 1]} : vector<8x32xf32> to vector<8x8xf32>
    %33 = vector.extract_strided_slice %6 {offsets = [0, 8], sizes = [8, 8], strides = [1, 1]} : vector<8x32xf32> to vector<8x8xf32>
    %cst_16 = arith.constant dense<0.000000e+00> : vector<8x8xf32>
    %34 = tpu.matmul %32, %33, %cst_16 {dimension_numbers = #tpu.dot_dimension_numbers<[1], [1], [0], [0], [0, 0, 1, 0], [], []>, precision = #tpu.contract_precision<fp32>} : vector<8x8xf32>, vector<8x8xf32>, vector<8x8xf32> -> vector<8x8xf32>
    %35 = vector.extract_strided_slice %9 {offsets = [0, 1], sizes = [8, 1], strides = [1, 1]} : vector<8x4xf32> to vector<8x1xf32>
    %cst_17 = arith.constant dense<0xFF800000> : vector<8xf32>
    %36 = vector.multi_reduction <maximumf>, %34, %cst_17 [1] : vector<8x8xf32> to vector<8xf32>
    %37 = vector.shape_cast %36 : vector<8xf32> to vector<8x1xf32>
    %38 = arith.maximumf %35, %37 : vector<8x1xf32>
    %39 = arith.subf %35, %38 : vector<8x1xf32>
    %40 = math.exp2 %39 : vector<8x1xf32>
    %41 = vector.broadcast %38 : vector<8x1xf32> to vector<8x8xf32>
    %42 = arith.subf %34, %41 : vector<8x8xf32>
    %43 = math.exp2 %42 : vector<8x8xf32>
    %44 = vector.extract_strided_slice %10 {offsets = [0, 1], sizes = [8, 1], strides = [1, 1]} : vector<8x4xf32> to vector<8x1xf32>
    %45 = arith.mulf %40, %44 : vector<8x1xf32>
    %cst_18 = arith.constant dense<0.000000e+00> : vector<8xf32>
    %46 = vector.multi_reduction <add>, %43, %cst_18 [1] : vector<8x8xf32> to vector<8xf32>
    %47 = vector.shape_cast %46 : vector<8xf32> to vector<8x1xf32>
    %48 = arith.addf %45, %47 : vector<8x1xf32>
    %49 = vector.extract_strided_slice %8 {offsets = [0, 8], sizes = [8, 8], strides = [1, 1]} : vector<8x32xf32> to vector<8x8xf32>
    %cst_19 = arith.constant dense<0.000000e+00> : vector<8x8xf32>
    %50 = tpu.matmul %43, %49, %cst_19 {dimension_numbers = #tpu.dot_dimension_numbers<[1], [0], [0], [1], [0, 0, 1, 1], [], []>, precision = #tpu.contract_precision<fp32>} : vector<8x8xf32>, vector<8x8xf32>, vector<8x8xf32> -> vector<8x8xf32>
    %51 = vector.shape_cast %40 : vector<8x1xf32> to vector<8x1xf32>
    %52 = vector.broadcast %51 : vector<8x1xf32> to vector<8x8xf32>
    %53 = vector.extract_strided_slice %4 {offsets = [0, 16], sizes = [8, 8], strides = [1, 1]} : vector<8x32xf32> to vector<8x8xf32>
    %54 = vector.extract_strided_slice %6 {offsets = [0, 16], sizes = [8, 8], strides = [1, 1]} : vector<8x32xf32> to vector<8x8xf32>
    %cst_20 = arith.constant dense<0.000000e+00> : vector<8x8xf32>
    %55 = tpu.matmul %53, %54, %cst_20 {dimension_numbers = #tpu.dot_dimension_numbers<[1], [1], [0], [0], [0, 0, 1, 0], [], []>, precision = #tpu.contract_precision<fp32>} : vector<8x8xf32>, vector<8x8xf32>, vector<8x8xf32> -> vector<8x8xf32>
    %56 = vector.extract_strided_slice %9 {offsets = [0, 2], sizes = [8, 1], strides = [1, 1]} : vector<8x4xf32> to vector<8x1xf32>
    %cst_21 = arith.constant dense<0xFF800000> : vector<8xf32>
    %57 = vector.multi_reduction <maximumf>, %55, %cst_21 [1] : vector<8x8xf32> to vector<8xf32>
    %58 = vector.shape_cast %57 : vector<8xf32> to vector<8x1xf32>
    %59 = arith.maximumf %56, %58 : vector<8x1xf32>
    %60 = arith.subf %56, %59 : vector<8x1xf32>
    %61 = math.exp2 %60 : vector<8x1xf32>
    %62 = vector.broadcast %59 : vector<8x1xf32> to vector<8x8xf32>
    %63 = arith.subf %55, %62 : vector<8x8xf32>
    %64 = math.exp2 %63 : vector<8x8xf32>
    %65 = vector.extract_strided_slice %10 {offsets = [0, 2], sizes = [8, 1], strides = [1, 1]} : vector<8x4xf32> to vector<8x1xf32>
    %66 = arith.mulf %61, %65 : vector<8x1xf32>
    %cst_22 = arith.constant dense<0.000000e+00> : vector<8xf32>
    %67 = vector.multi_reduction <add>, %64, %cst_22 [1] : vector<8x8xf32> to vector<8xf32>
    %68 = vector.shape_cast %67 : vector<8xf32> to vector<8x1xf32>
    %69 = arith.addf %66, %68 : vector<8x1xf32>
    %70 = vector.extract_strided_slice %8 {offsets = [0, 16], sizes = [8, 8], strides = [1, 1]} : vector<8x32xf32> to vector<8x8xf32>
    %cst_23 = arith.constant dense<0.000000e+00> : vector<8x8xf32>
    %71 = tpu.matmul %64, %70, %cst_23 {dimension_numbers = #tpu.dot_dimension_numbers<[1], [0], [0], [1], [0, 0, 1, 1], [], []>, precision = #tpu.contract_precision<fp32>} : vector<8x8xf32>, vector<8x8xf32>, vector<8x8xf32> -> vector<8x8xf32>
    %72 = vector.shape_cast %61 : vector<8x1xf32> to vector<8x1xf32>
    %73 = vector.broadcast %72 : vector<8x1xf32> to vector<8x8xf32>
    %74 = vector.extract_strided_slice %4 {offsets = [0, 24], sizes = [8, 8], strides = [1, 1]} : vector<8x32xf32> to vector<8x8xf32>
    %75 = vector.extract_strided_slice %6 {offsets = [0, 24], sizes = [8, 8], strides = [1, 1]} : vector<8x32xf32> to vector<8x8xf32>
    %cst_24 = arith.constant dense<0.000000e+00> : vector<8x8xf32>
    %76 = tpu.matmul %74, %75, %cst_24 {dimension_numbers = #tpu.dot_dimension_numbers<[1], [1], [0], [0], [0, 0, 1, 0], [], []>, precision = #tpu.contract_precision<fp32>} : vector<8x8xf32>, vector<8x8xf32>, vector<8x8xf32> -> vector<8x8xf32>
    %77 = vector.extract_strided_slice %9 {offsets = [0, 3], sizes = [8, 1], strides = [1, 1]} : vector<8x4xf32> to vector<8x1xf32>
    %cst_25 = arith.constant dense<0xFF800000> : vector<8xf32>
    %78 = vector.multi_reduction <maximumf>, %76, %cst_25 [1] : vector<8x8xf32> to vector<8xf32>
    %79 = vector.shape_cast %78 : vector<8xf32> to vector<8x1xf32>
    %80 = arith.maximumf %77, %79 : vector<8x1xf32>
    %81 = arith.subf %77, %80 : vector<8x1xf32>
    %82 = math.exp2 %81 : vector<8x1xf32>
    %83 = vector.broadcast %80 : vector<8x1xf32> to vector<8x8xf32>
    %84 = arith.subf %76, %83 : vector<8x8xf32>
    %85 = math.exp2 %84 : vector<8x8xf32>
    %86 = vector.extract_strided_slice %10 {offsets = [0, 3], sizes = [8, 1], strides = [1, 1]} : vector<8x4xf32> to vector<8x1xf32>
    %87 = arith.mulf %82, %86 : vector<8x1xf32>
    %cst_26 = arith.constant dense<0.000000e+00> : vector<8xf32>
    %88 = vector.multi_reduction <add>, %85, %cst_26 [1] : vector<8x8xf32> to vector<8xf32>
    %89 = vector.shape_cast %88 : vector<8xf32> to vector<8x1xf32>
    %90 = arith.addf %87, %89 : vector<8x1xf32>
    %91 = vector.extract_strided_slice %8 {offsets = [0, 24], sizes = [8, 8], strides = [1, 1]} : vector<8x32xf32> to vector<8x8xf32>
    %cst_27 = arith.constant dense<0.000000e+00> : vector<8x8xf32>
    %92 = tpu.matmul %85, %91, %cst_27 {dimension_numbers = #tpu.dot_dimension_numbers<[1], [0], [0], [1], [0, 0, 1, 1], [], []>, precision = #tpu.contract_precision<fp32>} : vector<8x8xf32>, vector<8x8xf32>, vector<8x8xf32> -> vector<8x8xf32>
    %93 = vector.shape_cast %82 : vector<8x1xf32> to vector<8x1xf32>
    %94 = vector.broadcast %93 : vector<8x1xf32> to vector<8x8xf32>
    %95 = tpu.concatenate %29, %50, %71, %92 in 1 : vector<8x8xf32>, vector<8x8xf32>, vector<8x8xf32>, vector<8x8xf32> -> vector<8x32xf32>
    %96 = tpu.concatenate %31, %52, %73, %94 in 1 : vector<8x8xf32>, vector<8x8xf32>, vector<8x8xf32>, vector<8x8xf32> -> vector<8x32xf32>
    %c0_28 = arith.constant 0 : index
    %c0_29 = arith.constant 0 : index
    %97 = vector.load %arg10[%c0_28, %c0_29] : memref<8x32xf32, #tpu.memory_space<vmem>>, vector<8x32xf32>
    %98 = arith.mulf %96, %97 : vector<8x32xf32>
    %99 = arith.addf %98, %95 : vector<8x32xf32>
    %c0_30 = arith.constant 0 : index
    %c0_31 = arith.constant 0 : index
    %100 = vector.load %arg10[%c0_30, %c0_31] : memref<8x32xf32, #tpu.memory_space<vmem>>, vector<8x32xf32>
    tpu.vector_store %arg10[%c0_30, %c0_31], %99 {strides = array<i32>} : memref<8x32xf32, #tpu.memory_space<vmem>>, vector<8x32xf32>,
    %101 = tpu.concatenate %17, %38, %59, %80 in 1 : vector<8x1xf32>, vector<8x1xf32>, vector<8x1xf32>, vector<8x1xf32> -> vector<8x4xf32>
    %c0_32 = arith.constant 0 : index
    %c0_33 = arith.constant 0 : index
    %102 = vector.load %arg8[%c0_32, %c0_33] : memref<8x4xf32, #tpu.memory_space<vmem>>, vector<8x4xf32>
    tpu.vector_store %arg8[%c0_32, %c0_33], %101 {strides = array<i32>} : memref<8x4xf32, #tpu.memory_space<vmem>>, vector<8x4xf32>,
    %103 = tpu.concatenate %27, %48, %69, %90 in 1 : vector<8x1xf32>, vector<8x1xf32>, vector<8x1xf32>, vector<8x1xf32> -> vector<8x4xf32>
    %c0_34 = arith.constant 0 : index
    %c0_35 = arith.constant 0 : index
    %104 = vector.load %arg9[%c0_34, %c0_35] : memref<8x4xf32, #tpu.memory_space<vmem>>, vector<8x4xf32>
    tpu.vector_store %arg9[%c0_34, %c0_35], %103 {strides = array<i32>} : memref<8x4xf32, #tpu.memory_space<vmem>>, vector<8x4xf32>,
    %c0_i32_36 = arith.constant 0 : i32
    %105 = arith.cmpi eq, %arg3, %c0_i32_36 : i32
    %106 = arith.extui %105 : i1 to i32
    %c0_i32_37 = arith.constant 0 : i32
    %107 = arith.cmpi ne, %106, %c0_i32_37 : i32
    scf.if %107 {
      %c0_38 = arith.constant 0 : index
      %c0_39 = arith.constant 0 : index
      %108 = vector.load %arg9[%c0_38, %c0_39] : memref<8x4xf32, #tpu.memory_space<vmem>>, vector<8x4xf32>
      %109 = tpu.reciprocal %108 : vector<8x4xf32> -> vector<8x4xf32>
      %110 = vector.extract_strided_slice %109 {offsets = [0, 0], sizes = [8, 1], strides = [1, 1]} : vector<8x4xf32> to vector<8x1xf32>
      %111 = vector.shape_cast %110 : vector<8x1xf32> to vector<8x1xf32>
      %112 = vector.broadcast %111 : vector<8x1xf32> to vector<8x8xf32>
      %113 = vector.extract_strided_slice %109 {offsets = [0, 1], sizes = [8, 1], strides = [1, 1]} : vector<8x4xf32> to vector<8x1xf32>
      %114 = vector.shape_cast %113 : vector<8x1xf32> to vector<8x1xf32>
      %115 = vector.broadcast %114 : vector<8x1xf32> to vector<8x8xf32>
      %116 = vector.extract_strided_slice %109 {offsets = [0, 2], sizes = [8, 1], strides = [1, 1]} : vector<8x4xf32> to vector<8x1xf32>
      %117 = vector.shape_cast %116 : vector<8x1xf32> to vector<8x1xf32>
      %118 = vector.broadcast %117 : vector<8x1xf32> to vector<8x8xf32>
      %119 = vector.extract_strided_slice %109 {offsets = [0, 3], sizes = [8, 1], strides = [1, 1]} : vector<8x4xf32> to vector<8x1xf32>
      %120 = vector.shape_cast %119 : vector<8x1xf32> to vector<8x1xf32>
      %121 = vector.broadcast %120 : vector<8x1xf32> to vector<8x8xf32>
      %122 = tpu.concatenate %112, %115, %118, %121 in 1 : vector<8x8xf32>, vector<8x8xf32>, vector<8x8xf32>, vector<8x8xf32> -> vector<8x32xf32>
      %c0_40 = arith.constant 0 : index
      %c0_41 = arith.constant 0 : index
      %123 = vector.load %arg10[%c0_40, %c0_41] : memref<8x32xf32, #tpu.memory_space<vmem>>, vector<8x32xf32>
      %124 = arith.mulf %123, %122 : vector<8x32xf32>
      %c0_42 = arith.constant 0 : index
      %c0_43 = arith.constant 0 : index
      %c0_44 = arith.constant 0 : index
      %125 = vector.load %arg7[%c0_42, %c0_43, %c0_44] : memref<1x8x32xf32, #tpu.memory_space<vmem>>, vector<1x8x32xf32>
      %126 = vector.shape_cast %125 : vector<1x8x32xf32> to vector<8x32xf32>
      %127 = vector.shape_cast %124 : vector<8x32xf32> to vector<1x8x32xf32>
      tpu.vector_store %arg7[%c0_42, %c0_43, %c0_44], %127 {strides = array<i32>} : memref<1x8x32xf32, #tpu.memory_space<vmem>>, vector<1x8x32xf32>,
    } else {
    }
    return
  }
  func.func @transform_0(%arg0: i32, %arg1: i32, %arg2: i32, %arg3: i32) -> (i32, i32, i32) {
    %c0_i32 = arith.constant 0 : i32
    %0 = arith.addi %c0_i32, %arg1 : i32
    %c0_i32_0 = arith.constant 0 : i32
    return %arg0, %arg2, %0 : i32, i32, i32
  }
  func.func @transform_1(%arg0: i32, %arg1: i32, %arg2: i32, %arg3: i32) -> (i32, i32, i32) {
    %c0_i32 = arith.constant 0 : i32
    %0 = arith.addi %c0_i32, %arg1 : i32
    %c0_i32_0 = arith.constant 0 : i32
    return %arg0, %arg3, %0 : i32, i32, i32
  }
  func.func @transform_2(%arg0: i32, %arg1: i32, %arg2: i32, %arg3: i32) -> (i32, i32, i32) {
    %c0_i32 = arith.constant 0 : i32
    %0 = arith.addi %c0_i32, %arg1 : i32
    %c0_i32_0 = arith.constant 0 : i32
    return %arg0, %arg3, %0 : i32, i32, i32
  }
  func.func @transform_3(%arg0: i32, %arg1: i32, %arg2: i32, %arg3: i32) -> (i32, i32, i32) {
    %c0_i32 = arith.constant 0 : i32
    return %arg0, %arg2, %arg1 : i32, i32, i32
  }
}

module attributes {stable_mosaic.version = 11 : i64} {
  func.func @_matmul_kernel(%arg0: i32, %arg1: i32, %arg2: i32, %arg3: memref<16x32xf32, #tpu.memory_space<vmem>>, %arg4: memref<32x32xf32, #tpu.memory_space<vmem>>, %arg5: memref<1x32xf32, #tpu.memory_space<vmem>>, %arg6: memref<16x32xf32, #tpu.memory_space<vmem>>, %arg7: memref<16x32xf32, #tpu.memory_space<vmem>>, %arg8: memref<16x32xf32, #tpu.memory_space<vmem>>) attributes {dimension_semantics = [#tpu.dimension_semantics<parallel>, #tpu.dimension_semantics<parallel>, #tpu.dimension_semantics<arbitrary>], iteration_bounds = array<i64: 1, 1, 1>, scalar_prefetch = 0 : i64, scratch_operands = 1 : i64, tpu.core_type = #tpu.core_type<tc>, window_params = [{transform_indices = @transform_0, window_bounds = array<i64: 16, 32>}, {transform_indices = @transform_1, window_bounds = array<i64: 32, 32>}, {transform_indices = @transform_2, window_bounds = array<i64: 1, 32>}, {transform_indices = @transform_3, window_bounds = array<i64: 16, 32>}, {transform_indices = @transform_4, window_bounds = array<i64: 16, 32>}]} {
    %c0_i32 = arith.constant 0 : i32
    %0 = arith.cmpi eq, %arg2, %c0_i32 : i32
    %1 = arith.extui %0 : i1 to i32
    %c0_i32_0 = arith.constant 0 : i32
    %2 = arith.cmpi ne, %1, %c0_i32_0 : i32
    scf.if %2 {
      %cst_10 = arith.constant 0.000000e+00 : f32
      %12 = vector.broadcast %cst_10 : f32 to vector<16x32xf32>
      %c0_11 = arith.constant 0 : index
      %c0_12 = arith.constant 0 : index
      %13 = vector.load %arg8[%c0_11, %c0_12] : memref<16x32xf32, #tpu.memory_space<vmem>>, vector<16x32xf32>
      tpu.vector_store %arg8[%c0_11, %c0_12], %12 {strides = array<i32>} : memref<16x32xf32, #tpu.memory_space<vmem>>, vector<16x32xf32>,
    } else {
    }
    %c0 = arith.constant 0 : index
    %c0_1 = arith.constant 0 : index
    %3 = vector.load %arg8[%c0, %c0_1] : memref<16x32xf32, #tpu.memory_space<vmem>>, vector<16x32xf32>
    %c0_2 = arith.constant 0 : index
    %c0_3 = arith.constant 0 : index
    %4 = vector.load %arg3[%c0_2, %c0_3] : memref<16x32xf32, #tpu.memory_space<vmem>>, vector<16x32xf32>
    %c0_4 = arith.constant 0 : index
    %c0_5 = arith.constant 0 : index
    %5 = vector.load %arg4[%c0_4, %c0_5] : memref<32x32xf32, #tpu.memory_space<vmem>>, vector<32x32xf32>
    %cst = arith.constant dense<0.000000e+00> : vector<16x32xf32>
    %6 = tpu.matmul %4, %5, %cst {dimension_numbers = #tpu.dot_dimension_numbers<[1], [0], [0], [1], [0, 0, 1, 1], [], []>, precision = #tpu.contract_precision<fp32>} : vector<16x32xf32>, vector<32x32xf32>, vector<16x32xf32> -> vector<16x32xf32>
    %7 = arith.addf %3, %6 : vector<16x32xf32>
    %c0_6 = arith.constant 0 : index
    %c0_7 = arith.constant 0 : index
    %8 = vector.load %arg8[%c0_6, %c0_7] : memref<16x32xf32, #tpu.memory_space<vmem>>, vector<16x32xf32>
    tpu.vector_store %arg8[%c0_6, %c0_7], %7 {strides = array<i32>} : memref<16x32xf32, #tpu.memory_space<vmem>>, vector<16x32xf32>,
    %c0_i32_8 = arith.constant 0 : i32
    %9 = arith.cmpi eq, %arg2, %c0_i32_8 : i32
    %10 = arith.extui %9 : i1 to i32
    %c0_i32_9 = arith.constant 0 : i32
    %11 = arith.cmpi ne, %10, %c0_i32_9 : i32
    scf.if %11 {
      %c0_10 = arith.constant 0 : index
      %c0_11 = arith.constant 0 : index
      %12 = vector.load %arg8[%c0_10, %c0_11] : memref<16x32xf32, #tpu.memory_space<vmem>>, vector<16x32xf32>
      %c0_12 = arith.constant 0 : index
      %c0_13 = arith.constant 0 : index
      %13 = vector.load %arg5[%c0_12, %c0_13] : memref<1x32xf32, #tpu.memory_space<vmem>>, vector<1x32xf32>
      %14 = vector.broadcast %13 : vector<1x32xf32> to vector<16x32xf32>
      %15 = arith.addf %12, %14 : vector<16x32xf32>
      %c0_14 = arith.constant 0 : index
      %c0_15 = arith.constant 0 : index
      %16 = vector.load %arg6[%c0_14, %c0_15] : memref<16x32xf32, #tpu.memory_space<vmem>>, vector<16x32xf32>
      %17 = arith.addf %15, %16 : vector<16x32xf32>
      %c0_16 = arith.constant 0 : index
      %c0_17 = arith.constant 0 : index
      %18 = vector.load %arg7[%c0_16, %c0_17] : memref<16x32xf32, #tpu.memory_space<vmem>>, vector<16x32xf32>
      tpu.vector_store %arg7[%c0_16, %c0_17], %17 {strides = array<i32>} : memref<16x32xf32, #tpu.memory_space<vmem>>, vector<16x32xf32>,
    } else {
    }
    return
  }
  func.func @transform_0(%arg0: i32, %arg1: i32, %arg2: i32) -> (i32, i32) {
    %c0_i32 = arith.constant 0 : i32
    return %arg0, %arg2 : i32, i32
  }
  func.func @transform_1(%arg0: i32, %arg1: i32, %arg2: i32) -> (i32, i32) {
    %c0_i32 = arith.constant 0 : i32
    return %arg2, %arg1 : i32, i32
  }
  func.func @transform_2(%arg0: i32, %arg1: i32, %arg2: i32) -> (i32, i32) {
    %c0_i32 = arith.constant 0 : i32
    %c0_i32_0 = arith.constant 0 : i32
    return %c0_i32, %arg1 : i32, i32
  }
  func.func @transform_3(%arg0: i32, %arg1: i32, %arg2: i32) -> (i32, i32) {
    %c0_i32 = arith.constant 0 : i32
    return %arg0, %arg1 : i32, i32
  }
  func.func @transform_4(%arg0: i32, %arg1: i32, %arg2: i32) -> (i32, i32) {
    %c0_i32 = arith.constant 0 : i32
    return %arg0, %arg1 : i32, i32
  }
}

module attributes {stable_mosaic.version = 11 : i64} {
  func.func @_ln_geglu_kernel(%arg0: i32, %arg1: i32, %arg2: memref<16x32xf32, #tpu.memory_space<vmem>>, %arg3: memref<1x32xf32, #tpu.memory_space<vmem>>, %arg4: memref<1x32xf32, #tpu.memory_space<vmem>>, %arg5: memref<32x128xf32, #tpu.memory_space<vmem>>, %arg6: memref<1x128xf32, #tpu.memory_space<vmem>>, %arg7: memref<32x128xf32, #tpu.memory_space<vmem>>, %arg8: memref<1x128xf32, #tpu.memory_space<vmem>>, %arg9: memref<16x128xf32, #tpu.memory_space<vmem>>, %arg10: memref<16x32xf32, #tpu.memory_space<vmem>>) attributes {dimension_semantics = [#tpu.dimension_semantics<parallel>, #tpu.dimension_semantics<arbitrary>], iteration_bounds = array<i64: 1, 1>, scalar_prefetch = 0 : i64, scratch_operands = 1 : i64, tpu.core_type = #tpu.core_type<tc>, window_params = [{transform_indices = @transform_0, window_bounds = array<i64: 16, 32>}, {pipeline_mode = #tpu.pipeline_mode<synchronous>, transform_indices = @transform_1, window_bounds = array<i64: 1, 32>}, {pipeline_mode = #tpu.pipeline_mode<synchronous>, transform_indices = @transform_2, window_bounds = array<i64: 1, 32>}, {transform_indices = @transform_3, window_bounds = array<i64: 32, 128>}, {transform_indices = @transform_4, window_bounds = array<i64: 1, 128>}, {transform_indices = @transform_5, window_bounds = array<i64: 32, 128>}, {transform_indices = @transform_6, window_bounds = array<i64: 1, 128>}, {transform_indices = @transform_7, window_bounds = array<i64: 16, 128>}]} {
    %c0_i32 = arith.constant 0 : i32
    %0 = arith.cmpi eq, %arg1, %c0_i32 : i32
    %1 = arith.extui %0 : i1 to i32
    %c0_i32_0 = arith.constant 0 : i32
    %2 = arith.cmpi ne, %1, %c0_i32_0 : i32
    scf.if %2 {
      %c0_29 = arith.constant 0 : index
      %c0_30 = arith.constant 0 : index
      %57 = vector.load %arg2[%c0_29, %c0_30] : memref<16x32xf32, #tpu.memory_space<vmem>>, vector<16x32xf32>
      %cst_31 = arith.constant dense<0.000000e+00> : vector<16xf32>
      %58 = vector.multi_reduction <add>, %57, %cst_31 [1] : vector<16x32xf32> to vector<16xf32>
      %59 = vector.shape_cast %58 : vector<16xf32> to vector<16x1xf32>
      %cst_32 = arith.constant 3.200000e+01 : f32
      %60 = vector.broadcast %cst_32 : f32 to vector<16x1xf32>
      %61 = arith.divf %59, %60 : vector<16x1xf32>
      %62 = vector.broadcast %61 : vector<16x1xf32> to vector<16x32xf32>
      %63 = arith.subf %57, %62 : vector<16x32xf32>
      %64 = arith.mulf %63, %63 : vector<16x32xf32>
      %cst_33 = arith.constant dense<0.000000e+00> : vector<16xf32>
      %65 = vector.multi_reduction <add>, %64, %cst_33 [1] : vector<16x32xf32> to vector<16xf32>
      %66 = vector.shape_cast %65 : vector<16xf32> to vector<16x1xf32>
      %cst_34 = arith.constant 3.200000e+01 : f32
      %67 = vector.broadcast %cst_34 : f32 to vector<16x1xf32>
      %68 = arith.divf %66, %67 : vector<16x1xf32>
      %cst_35 = arith.constant 9.99999974E-6 : f32
      %69 = vector.broadcast %cst_35 : f32 to vector<16x1xf32>
      %70 = arith.addf %68, %69 : vector<16x1xf32>
      %71 = math.rsqrt %70 : vector<16x1xf32>
      %72 = vector.broadcast %71 : vector<16x1xf32> to vector<16x32xf32>
      %73 = arith.mulf %63, %72 : vector<16x32xf32>
      %c0_36 = arith.constant 0 : index
      %c0_37 = arith.constant 0 : index
      %74 = vector.load %arg3[%c0_36, %c0_37] : memref<1x32xf32, #tpu.memory_space<vmem>>, vector<1x32xf32>
      %75 = vector.broadcast %74 : vector<1x32xf32> to vector<16x32xf32>
      %76 = arith.mulf %73, %75 : vector<16x32xf32>
      %c0_38 = arith.constant 0 : index
      %c0_39 = arith.constant 0 : index
      %77 = vector.load %arg4[%c0_38, %c0_39] : memref<1x32xf32, #tpu.memory_space<vmem>>, vector<1x32xf32>
      %78 = vector.broadcast %77 : vector<1x32xf32> to vector<16x32xf32>
      %79 = arith.addf %76, %78 : vector<16x32xf32>
      %c0_40 = arith.constant 0 : index
      %c0_41 = arith.constant 0 : index
      %80 = vector.load %arg10[%c0_40, %c0_41] : memref<16x32xf32, #tpu.memory_space<vmem>>, vector<16x32xf32>
      tpu.vector_store %arg10[%c0_40, %c0_41], %79 {strides = array<i32>} : memref<16x32xf32, #tpu.memory_space<vmem>>, vector<16x32xf32>,
    } else {
    }
    %c0 = arith.constant 0 : index
    %c0_1 = arith.constant 0 : index
    %3 = vector.load %arg10[%c0, %c0_1] : memref<16x32xf32, #tpu.memory_space<vmem>>, vector<16x32xf32>
    %c0_2 = arith.constant 0 : index
    %c0_3 = arith.constant 0 : index
    %4 = vector.load %arg5[%c0_2, %c0_3] : memref<32x128xf32, #tpu.memory_space<vmem>>, vector<32x128xf32>
    %cst = arith.constant dense<0.000000e+00> : vector<16x128xf32>
    %5 = tpu.matmul %3, %4, %cst {dimension_numbers = #tpu.dot_dimension_numbers<[1], [0], [0], [1], [0, 0, 1, 1], [], []>, precision = #tpu.contract_precision<fp32>} : vector<16x32xf32>, vector<32x128xf32>, vector<16x128xf32> -> vector<16x128xf32>
    %c0_4 = arith.constant 0 : index
    %c0_5 = arith.constant 0 : index
    %6 = vector.load %arg6[%c0_4, %c0_5] : memref<1x128xf32, #tpu.memory_space<vmem>>, vector<1x128xf32>
    %7 = vector.broadcast %6 : vector<1x128xf32> to vector<16x128xf32>
    %8 = arith.addf %5, %7 : vector<16x128xf32>
    %c0_6 = arith.constant 0 : index
    %c0_7 = arith.constant 0 : index
    %9 = vector.load %arg7[%c0_6, %c0_7] : memref<32x128xf32, #tpu.memory_space<vmem>>, vector<32x128xf32>
    %cst_8 = arith.constant dense<0.000000e+00> : vector<16x128xf32>
    %10 = tpu.matmul %3, %9, %cst_8 {dimension_numbers = #tpu.dot_dimension_numbers<[1], [0], [0], [1], [0, 0, 1, 1], [], []>, precision = #tpu.contract_precision<fp32>} : vector<16x32xf32>, vector<32x128xf32>, vector<16x128xf32> -> vector<16x128xf32>
    %c0_9 = arith.constant 0 : index
    %c0_10 = arith.constant 0 : index
    %11 = vector.load %arg8[%c0_9, %c0_10] : memref<1x128xf32, #tpu.memory_space<vmem>>, vector<1x128xf32>
    %12 = vector.broadcast %11 : vector<1x128xf32> to vector<16x128xf32>
    %13 = arith.addf %10, %12 : vector<16x128xf32>
    %cst_11 = arith.constant 5.000000e-01 : f32
    %14 = vector.broadcast %cst_11 : f32 to vector<16x128xf32>
    %15 = arith.mulf %14, %13 : vector<16x128xf32>
    %cst_12 = arith.constant 0.707106769 : f32
    %16 = vector.broadcast %cst_12 : f32 to vector<16x128xf32>
    %17 = arith.mulf %13, %16 : vector<16x128xf32>
    %cst_13 = arith.constant 0.000000e+00 : f32
    %18 = vector.broadcast %cst_13 : f32 to vector<16x128xf32>
    %19 = arith.cmpf oge, %17, %18 : vector<16x128xf32>
    %cst_14 = arith.constant 1.000000e+00 : f32
    %cst_15 = arith.constant -1.000000e+00 : f32
    %20 = vector.broadcast %cst_14 : f32 to vector<16x128xf32>
    %21 = vector.broadcast %cst_15 : f32 to vector<16x128xf32>
    %22 = arith.select %19, %20, %21 : vector<16x128xi1>, vector<16x128xf32>
    %23 = math.absf %17 : vector<16x128xf32>
    %cst_16 = arith.constant 0.327591091 : f32
    %24 = vector.broadcast %cst_16 : f32 to vector<16x128xf32>
    %25 = arith.mulf %24, %23 : vector<16x128xf32>
    %cst_17 = arith.constant 1.000000e+00 : f32
    %26 = vector.broadcast %cst_17 : f32 to vector<16x128xf32>
    %27 = arith.addf %26, %25 : vector<16x128xf32>
    %cst_18 = arith.constant 1.000000e+00 : f32
    %28 = vector.broadcast %cst_18 : f32 to vector<16x128xf32>
    %29 = arith.divf %28, %27 : vector<16x128xf32>
    %cst_19 = arith.constant 1.06140542 : f32
    %30 = vector.broadcast %cst_19 : f32 to vector<16x128xf32>
    %31 = arith.mulf %30, %29 : vector<16x128xf32>
    %cst_20 = arith.constant -1.45315206 : f32
    %32 = vector.broadcast %cst_20 : f32 to vector<16x128xf32>
    %33 = arith.addf %31, %32 : vector<16x128xf32>
    %34 = arith.mulf %33, %29 : vector<16x128xf32>
    %cst_21 = arith.constant 1.42141378 : f32
    %35 = vector.broadcast %cst_21 : f32 to vector<16x128xf32>
    %36 = arith.addf %34, %35 : vector<16x128xf32>
    %37 = arith.mulf %36, %29 : vector<16x128xf32>
    %cst_22 = arith.constant -0.284496725 : f32
    %38 = vector.broadcast %cst_22 : f32 to vector<16x128xf32>
    %39 = arith.addf %37, %38 : vector<16x128xf32>
    %40 = arith.mulf %39, %29 : vector<16x128xf32>
    %cst_23 = arith.constant 0.254829586 : f32
    %41 = vector.broadcast %cst_23 : f32 to vector<16x128xf32>
    %42 = arith.addf %40, %41 : vector<16x128xf32>
    %43 = arith.mulf %42, %29 : vector<16x128xf32>
    %cst_24 = arith.constant 0.000000e+00 : f32
    %44 = vector.broadcast %cst_24 : f32 to vector<16x128xf32>
    %45 = arith.subf %44, %23 : vector<16x128xf32>
    %46 = arith.mulf %45, %23 : vector<16x128xf32>
    %47 = math.exp %46 : vector<16x128xf32>
    %48 = arith.mulf %43, %47 : vector<16x128xf32>
    %cst_25 = arith.constant 1.000000e+00 : f32
    %49 = vector.broadcast %cst_25 : f32 to vector<16x128xf32>
    %50 = arith.subf %49, %48 : vector<16x128xf32>
    %51 = arith.mulf %22, %50 : vector<16x128xf32>
    %cst_26 = arith.constant 1.000000e+00 : f32
    %52 = vector.broadcast %cst_26 : f32 to vector<16x128xf32>
    %53 = arith.addf %52, %51 : vector<16x128xf32>
    %54 = arith.mulf %15, %53 : vector<16x128xf32>
    %55 = arith.mulf %8, %54 : vector<16x128xf32>
    %c0_27 = arith.constant 0 : index
    %c0_28 = arith.constant 0 : index
    %56 = vector.load %arg9[%c0_27, %c0_28] : memref<16x128xf32, #tpu.memory_space<vmem>>, vector<16x128xf32>
    tpu.vector_store %arg9[%c0_27, %c0_28], %55 {strides = array<i32>} : memref<16x128xf32, #tpu.memory_space<vmem>>, vector<16x128xf32>,
    return
  }
  func.func @transform_0(%arg0: i32, %arg1: i32) -> (i32, i32) {
    %c0_i32 = arith.constant 0 : i32
    %c0_i32_0 = arith.constant 0 : i32
    return %arg0, %c0_i32 : i32, i32
  }
  func.func @transform_1(%arg0: i32, %arg1: i32) -> (i32, i32) {
    %c0_i32 = arith.constant 0 : i32
    %c0_i32_0 = arith.constant 0 : i32
    %c0_i32_1 = arith.constant 0 : i32
    return %c0_i32, %c0_i32_0 : i32, i32
  }
  func.func @transform_2(%arg0: i32, %arg1: i32) -> (i32, i32) {
    %c0_i32 = arith.constant 0 : i32
    %c0_i32_0 = arith.constant 0 : i32
    %c0_i32_1 = arith.constant 0 : i32
    return %c0_i32, %c0_i32_0 : i32, i32
  }
  func.func @transform_3(%arg0: i32, %arg1: i32) -> (i32, i32) {
    %c0_i32 = arith.constant 0 : i32
    %c0_i32_0 = arith.constant 0 : i32
    return %c0_i32, %arg1 : i32, i32
  }
  func.func @transform_4(%arg0: i32, %arg1: i32) -> (i32, i32) {
    %c0_i32 = arith.constant 0 : i32
    %c0_i32_0 = arith.constant 0 : i32
    return %c0_i32, %arg1 : i32, i32
  }
  func.func @transform_5(%arg0: i32, %arg1: i32) -> (i32, i32) {
    %c0_i32 = arith.constant 0 : i32
    %c0_i32_0 = arith.constant 0 : i32
    return %c0_i32, %arg1 : i32, i32
  }
  func.func @transform_6(%arg0: i32, %arg1: i32) -> (i32, i32) {
    %c0_i32 = arith.constant 0 : i32
    %c0_i32_0 = arith.constant 0 : i32
    return %c0_i32, %arg1 : i32, i32
  }
  func.func @transform_7(%arg0: i32, %arg1: i32) -> (i32, i32) {
    %c0_i32 = arith.constant 0 : i32
    return %arg0, %arg1 : i32, i32
  }
}

module attributes {stable_mosaic.version = 11 : i64} {
  func.func @_matmul_kernel(%arg0: i32, %arg1: i32, %arg2: i32, %arg3: memref<16x128xf32, #tpu.memory_space<vmem>>, %arg4: memref<128x32xf32, #tpu.memory_space<vmem>>, %arg5: memref<1x32xf32, #tpu.memory_space<vmem>>, %arg6: memref<16x32xf32, #tpu.memory_space<vmem>>, %arg7: memref<16x32xf32, #tpu.memory_space<vmem>>, %arg8: memref<16x32xf32, #tpu.memory_space<vmem>>) attributes {dimension_semantics = [#tpu.dimension_semantics<parallel>, #tpu.dimension_semantics<parallel>, #tpu.dimension_semantics<arbitrary>], iteration_bounds = array<i64: 1, 1, 1>, scalar_prefetch = 0 : i64, scratch_operands = 1 : i64, tpu.core_type = #tpu.core_type<tc>, window_params = [{transform_indices = @transform_0, window_bounds = array<i64: 16, 128>}, {transform_indices = @transform_1, window_bounds = array<i64: 128, 32>}, {transform_indices = @transform_2, window_bounds = array<i64: 1, 32>}, {transform_indices = @transform_3, window_bounds = array<i64: 16, 32>}, {transform_indices = @transform_4, window_bounds = array<i64: 16, 32>}]} {
    %c0_i32 = arith.constant 0 : i32
    %0 = arith.cmpi eq, %arg2, %c0_i32 : i32
    %1 = arith.extui %0 : i1 to i32
    %c0_i32_0 = arith.constant 0 : i32
    %2 = arith.cmpi ne, %1, %c0_i32_0 : i32
    scf.if %2 {
      %cst_10 = arith.constant 0.000000e+00 : f32
      %12 = vector.broadcast %cst_10 : f32 to vector<16x32xf32>
      %c0_11 = arith.constant 0 : index
      %c0_12 = arith.constant 0 : index
      %13 = vector.load %arg8[%c0_11, %c0_12] : memref<16x32xf32, #tpu.memory_space<vmem>>, vector<16x32xf32>
      tpu.vector_store %arg8[%c0_11, %c0_12], %12 {strides = array<i32>} : memref<16x32xf32, #tpu.memory_space<vmem>>, vector<16x32xf32>,
    } else {
    }
    %c0 = arith.constant 0 : index
    %c0_1 = arith.constant 0 : index
    %3 = vector.load %arg8[%c0, %c0_1] : memref<16x32xf32, #tpu.memory_space<vmem>>, vector<16x32xf32>
    %c0_2 = arith.constant 0 : index
    %c0_3 = arith.constant 0 : index
    %4 = vector.load %arg3[%c0_2, %c0_3] : memref<16x128xf32, #tpu.memory_space<vmem>>, vector<16x128xf32>
    %c0_4 = arith.constant 0 : index
    %c0_5 = arith.constant 0 : index
    %5 = vector.load %arg4[%c0_4, %c0_5] : memref<128x32xf32, #tpu.memory_space<vmem>>, vector<128x32xf32>
    %cst = arith.constant dense<0.000000e+00> : vector<16x32xf32>
    %6 = tpu.matmul %4, %5, %cst {dimension_numbers = #tpu.dot_dimension_numbers<[1], [0], [0], [1], [0, 0, 1, 1], [], []>, precision = #tpu.contract_precision<fp32>} : vector<16x128xf32>, vector<128x32xf32>, vector<16x32xf32> -> vector<16x32xf32>
    %7 = arith.addf %3, %6 : vector<16x32xf32>
    %c0_6 = arith.constant 0 : index
    %c0_7 = arith.constant 0 : index
    %8 = vector.load %arg8[%c0_6, %c0_7] : memref<16x32xf32, #tpu.memory_space<vmem>>, vector<16x32xf32>
    tpu.vector_store %arg8[%c0_6, %c0_7], %7 {strides = array<i32>} : memref<16x32xf32, #tpu.memory_space<vmem>>, vector<16x32xf32>,
    %c0_i32_8 = arith.constant 0 : i32
    %9 = arith.cmpi eq, %arg2, %c0_i32_8 : i32
    %10 = arith.extui %9 : i1 to i32
    %c0_i32_9 = arith.constant 0 : i32
    %11 = arith.cmpi ne, %10, %c0_i32_9 : i32
    scf.if %11 {
      %c0_10 = arith.constant 0 : index
      %c0_11 = arith.constant 0 : index
      %12 = vector.load %arg8[%c0_10, %c0_11] : memref<16x32xf32, #tpu.memory_space<vmem>>, vector<16x32xf32>
      %c0_12 = arith.constant 0 : index
      %c0_13 = arith.constant 0 : index
      %13 = vector.load %arg5[%c0_12, %c0_13] : memref<1x32xf32, #tpu.memory_space<vmem>>, vector<1x32xf32>
      %14 = vector.broadcast %13 : vector<1x32xf32> to vector<16x32xf32>
      %15 = arith.addf %12, %14 : vector<16x32xf32>
      %c0_14 = arith.constant 0 : index
      %c0_15 = arith.constant 0 : index
      %16 = vector.load %arg6[%c0_14, %c0_15] : memref<16x32xf32, #tpu.memory_space<vmem>>, vector<16x32xf32>
      %17 = arith.addf %15, %16 : vector<16x32xf32>
      %c0_16 = arith.constant 0 : index
      %c0_17 = arith.constant 0 : index
      %18 = vector.load %arg7[%c0_16, %c0_17] : memref<16x32xf32, #tpu.memory_space<vmem>>, vector<16x32xf32>
      tpu.vector_store %arg7[%c0_16, %c0_17], %17 {strides = array<i32>} : memref<16x32xf32, #tpu.memory_space<vmem>>, vector<16x32xf32>,
    } else {
    }
    return
  }
  func.func @transform_0(%arg0: i32, %arg1: i32, %arg2: i32) -> (i32, i32) {
    %c0_i32 = arith.constant 0 : i32
    return %arg0, %arg2 : i32, i32
  }
  func.func @transform_1(%arg0: i32, %arg1: i32, %arg2: i32) -> (i32, i32) {
    %c0_i32 = arith.constant 0 : i32
    return %arg2, %arg1 : i32, i32
  }
  func.func @transform_2(%arg0: i32, %arg1: i32, %arg2: i32) -> (i32, i32) {
    %c0_i32 = arith.constant 0 : i32
    %c0_i32_0 = arith.constant 0 : i32
    return %c0_i32, %arg1 : i32, i32
  }
  func.func @transform_3(%arg0: i32, %arg1: i32, %arg2: i32) -> (i32, i32) {
    %c0_i32 = arith.constant 0 : i32
    return %arg0, %arg1 : i32, i32
  }
  func.func @transform_4(%arg0: i32, %arg1: i32, %arg2: i32) -> (i32, i32) {
    %c0_i32 = arith.constant 0 : i32
    return %arg0, %arg1 : i32, i32
  }
}

module attributes {stable_mosaic.version = 11 : i64} {
  func.func @_ln_matmul_kernel(%arg0: i32, %arg1: i32, %arg2: memref<16x32xf32, #tpu.memory_space<vmem>>, %arg3: memref<1x32xf32, #tpu.memory_space<vmem>>, %arg4: memref<1x32xf32, #tpu.memory_space<vmem>>, %arg5: memref<32x32xf32, #tpu.memory_space<vmem>>, %arg6: memref<16x32xf32, #tpu.memory_space<vmem>>, %arg7: memref<16x32xf32, #tpu.memory_space<vmem>>) attributes {dimension_semantics = [#tpu.dimension_semantics<parallel>, #tpu.dimension_semantics<arbitrary>], iteration_bounds = array<i64: 1, 1>, scalar_prefetch = 0 : i64, scratch_operands = 1 : i64, tpu.core_type = #tpu.core_type<tc>, window_params = [{transform_indices = @transform_0, window_bounds = array<i64: 16, 32>}, {pipeline_mode = #tpu.pipeline_mode<synchronous>, transform_indices = @transform_1, window_bounds = array<i64: 1, 32>}, {pipeline_mode = #tpu.pipeline_mode<synchronous>, transform_indices = @transform_2, window_bounds = array<i64: 1, 32>}, {transform_indices = @transform_3, window_bounds = array<i64: 32, 32>}, {transform_indices = @transform_4, window_bounds = array<i64: 16, 32>}]} {
    %c0_i32 = arith.constant 0 : i32
    %0 = arith.cmpi eq, %arg1, %c0_i32 : i32
    %1 = arith.extui %0 : i1 to i32
    %c0_i32_0 = arith.constant 0 : i32
    %2 = arith.cmpi ne, %1, %c0_i32_0 : i32
    scf.if %2 {
      %c0_6 = arith.constant 0 : index
      %c0_7 = arith.constant 0 : index
      %7 = vector.load %arg2[%c0_6, %c0_7] : memref<16x32xf32, #tpu.memory_space<vmem>>, vector<16x32xf32>
      %cst_8 = arith.constant dense<0.000000e+00> : vector<16xf32>
      %8 = vector.multi_reduction <add>, %7, %cst_8 [1] : vector<16x32xf32> to vector<16xf32>
      %9 = vector.shape_cast %8 : vector<16xf32> to vector<16x1xf32>
      %cst_9 = arith.constant 3.200000e+01 : f32
      %10 = vector.broadcast %cst_9 : f32 to vector<16x1xf32>
      %11 = arith.divf %9, %10 : vector<16x1xf32>
      %12 = vector.broadcast %11 : vector<16x1xf32> to vector<16x32xf32>
      %13 = arith.subf %7, %12 : vector<16x32xf32>
      %14 = arith.mulf %13, %13 : vector<16x32xf32>
      %cst_10 = arith.constant dense<0.000000e+00> : vector<16xf32>
      %15 = vector.multi_reduction <add>, %14, %cst_10 [1] : vector<16x32xf32> to vector<16xf32>
      %16 = vector.shape_cast %15 : vector<16xf32> to vector<16x1xf32>
      %cst_11 = arith.constant 3.200000e+01 : f32
      %17 = vector.broadcast %cst_11 : f32 to vector<16x1xf32>
      %18 = arith.divf %16, %17 : vector<16x1xf32>
      %cst_12 = arith.constant 9.99999974E-6 : f32
      %19 = vector.broadcast %cst_12 : f32 to vector<16x1xf32>
      %20 = arith.addf %18, %19 : vector<16x1xf32>
      %21 = math.rsqrt %20 : vector<16x1xf32>
      %22 = vector.broadcast %21 : vector<16x1xf32> to vector<16x32xf32>
      %23 = arith.mulf %13, %22 : vector<16x32xf32>
      %c0_13 = arith.constant 0 : index
      %c0_14 = arith.constant 0 : index
      %24 = vector.load %arg3[%c0_13, %c0_14] : memref<1x32xf32, #tpu.memory_space<vmem>>, vector<1x32xf32>
      %25 = vector.broadcast %24 : vector<1x32xf32> to vector<16x32xf32>
      %26 = arith.mulf %23, %25 : vector<16x32xf32>
      %c0_15 = arith.constant 0 : index
      %c0_16 = arith.constant 0 : index
      %27 = vector.load %arg4[%c0_15, %c0_16] : memref<1x32xf32, #tpu.memory_space<vmem>>, vector<1x32xf32>
      %28 = vector.broadcast %27 : vector<1x32xf32> to vector<16x32xf32>
      %29 = arith.addf %26, %28 : vector<16x32xf32>
      %c0_17 = arith.constant 0 : index
      %c0_18 = arith.constant 0 : index
      %30 = vector.load %arg7[%c0_17, %c0_18] : memref<16x32xf32, #tpu.memory_space<vmem>>, vector<16x32xf32>
      tpu.vector_store %arg7[%c0_17, %c0_18], %29 {strides = array<i32>} : memref<16x32xf32, #tpu.memory_space<vmem>>, vector<16x32xf32>,
    } else {
    }
    %c0 = arith.constant 0 : index
    %c0_1 = arith.constant 0 : index
    %3 = vector.load %arg7[%c0, %c0_1] : memref<16x32xf32, #tpu.memory_space<vmem>>, vector<16x32xf32>
    %c0_2 = arith.constant 0 : index
    %c0_3 = arith.constant 0 : index
    %4 = vector.load %arg5[%c0_2, %c0_3] : memref<32x32xf32, #tpu.memory_space<vmem>>, vector<32x32xf32>
    %cst = arith.constant dense<0.000000e+00> : vector<16x32xf32>
    %5 = tpu.matmul %3, %4, %cst {dimension_numbers = #tpu.dot_dimension_numbers<[1], [0], [0], [1], [0, 0, 1, 1], [], []>, precision = #tpu.contract_precision<fp32>} : vector<16x32xf32>, vector<32x32xf32>, vector<16x32xf32> -> vector<16x32xf32>
    %c0_4 = arith.constant 0 : index
    %c0_5 = arith.constant 0 : index
    %6 = vector.load %arg6[%c0_4, %c0_5] : memref<16x32xf32, #tpu.memory_space<vmem>>, vector<16x32xf32>
    tpu.vector_store %arg6[%c0_4, %c0_5], %5 {strides = array<i32>} : memref<16x32xf32, #tpu.memory_space<vmem>>, vector<16x32xf32>,
    return
  }
  func.func @transform_0(%arg0: i32, %arg1: i32) -> (i32, i32) {
    %c0_i32 = arith.constant 0 : i32
    %c0_i32_0 = arith.constant 0 : i32
    return %arg0, %c0_i32 : i32, i32
  }
  func.func @transform_1(%arg0: i32, %arg1: i32) -> (i32, i32) {
    %c0_i32 = arith.constant 0 : i32
    %c0_i32_0 = arith.constant 0 : i32
    %c0_i32_1 = arith.constant 0 : i32
    return %c0_i32, %c0_i32_0 : i32, i32
  }
  func.func @transform_2(%arg0: i32, %arg1: i32) -> (i32, i32) {
    %c0_i32 = arith.constant 0 : i32
    %c0_i32_0 = arith.constant 0 : i32
    %c0_i32_1 = arith.constant 0 : i32
    return %c0_i32, %c0_i32_0 : i32, i32
  }
  func.func @transform_3(%arg0: i32, %arg1: i32) -> (i32, i32) {
    %c0_i32 = arith.constant 0 : i32
    %c0_i32_0 = arith.constant 0 : i32
    return %c0_i32, %arg1 : i32, i32
  }
  func.func @transform_4(%arg0: i32, %arg1: i32) -> (i32, i32) {
    %c0_i32 = arith.constant 0 : i32
    return %arg0, %arg1 : i32, i32
  }
}

</mosaic_0001>

<bundles_post_ra>
// kernel: _lambda_.13
= control target key start
LH: loop header
LB: loop body
LE: loop exit
PB: predicated region body
PF: predicated region fallthrough
CT: control target
= control target key end

     0   :  { %vm24_vm0 = vcmask 130048   ;;  %vm15_vm1 = vcmask 523264   ;;  %v650_v30 = vmov 0.0   ;;  %s690_s1 = inlined_call_operand.vmem [shape: f32[16,64], index: 1, kind: input, shape index: {}]   ;;  %s691_s0 = inlined_call_operand.vmem [shape: f32[16,16], index: 0, kind: input, shape index: {}]   ;;  %s692_s2 = inlined_call_operand.vmem [shape: f32[16,64], index: 2, kind: output, shape index: {}]  }
   0x1   :  { %v22_v0 = vld [vmem:[%s690_s1] sm:$0xff]  ;;  %v23_v1 = vld [vmem:[%s690_s1 + $0x8] sm:$0xff]  ;;  %17 = vst.msk [vmem:[#allocation2 + $0x8] sm:$0xff] %vm15_vm1, %v650_v30  ;;  %16 = vst.msk [vmem:[#allocation2] sm:$0xff] %vm15_vm1, %v650_v30 }
   0x2   :  { %v20_v2 = vld [vmem:[%s691_s0] sm:$0xff]  ;;  %v32_v3 = vand.u32 4294901760, %v22_v0  ;;  %v35_v4 = vand.u32 4294901760, %v23_v1  ;;  %v21_v5 = vld [vmem:[%s691_s0 + $0x8] sm:$0xff] }
   0x3   :  { %v26_v6 = vsel %vm24_vm0, %v20_v2, 0  ;;  %v29_v7 = vsel %vm24_vm0, %v21_v5, 0 }
   0x4   :  { %v98_v8 = vand.u32 4294901760, %v26_v6  ;;  %v615_v9 = vpack.c.bf16 %v35_v4, %v32_v3  ;;  %v108_v10 = vand.u32 4294901760, %v29_v7  ;;  %v120_v11 = vsub.f32 %v22_v0, %v32_v3 }
   0x5   :  { %v127_v12 = vsub.f32 %v23_v1, %v35_v4 }
   0x6   :  { %v99_v13 = vsub.f32 %v26_v6, %v98_v8  ;;  %628 = vmatprep.subr.bf16.mxu0 %v615_v9  ;;  %616 = vmatprep.subr.bf16.mxu1 %v615_v9  ;;  %v109_v14 = vsub.f32 %v29_v7, %v108_v10  ;;  %v121_v15 = vand.u32 4294901760, %v120_v11 }
   0x7   :  { %v128_v16 = vand.u32 4294901760, %v127_v12  ;;  %630 = vmatpush3.bf16.msra.mxu0 %v615_v9  ;;  %618 = vmatpush3.bf16.msra.mxu1 %v615_v9  ;;  %v623_v29 = vpack.c.bf16 %v127_v12, %v120_v11 }
   0x8   :  { %v100_v17 = vand.u32 4294901760, %v99_v13  ;;  %v110_v18 = vand.u32 4294901760, %v109_v14  ;;  %v122_v19 = vsub.f32 %v120_v11, %v121_v15  ;;  %v19_v33 = vld [vmem:[#allocation2 + $0x8] sm:$0xff]  ;;  %v18_v36 = vld [vmem:[#allocation2] sm:$0xff] }
   0x9   :  { %v129_v20 = vsub.f32 %v127_v12, %v128_v16  ;;  %v631_v21 = vpack.c.bf16 %v128_v16, %v121_v15 }
   0xa   :  { %598 = vmatprep.mubr.f32.mxu0 %v100_v17  ;;  %v101_v22 = vsub.f32 %v99_v13, %v100_v17  ;;  %v111_v23 = vsub.f32 %v109_v14, %v110_v18  ;;  %v123_v24 = vand.u32 4294901760, %v122_v19 }
   0xb   :  { %599 = vmatmul.mubr.f32.vlgmr.msra.gmra.mrb[0].mxu0 %v110_v18  ;;  %v130_v25 = vand.u32 4294901760, %v129_v20  ;;  %632 = vmatprep.subr.bf16.mxu0 %v631_v21 }
   0xc   :  { %v102_v26 = vand.u32 4294901760, %v101_v22  ;;  %634 = vmatpush3.bf16.msra.mxu0 %v631_v21  ;;  %605 = vmatprep.mubr.f32.mxu0 %v98_v8  ;;  %v112_v27 = vand.u32 4294901760, %v111_v23 }
   0xd   :  { %v619_v28 = vpack.c.bf16 %v130_v25, %v123_v24  ;;  %636 = vmatprep.subr.bf16.mxu0 %v615_v9 }
   0xe   :  { %577 = vmatprep.mubr.f32.mxu1 %v102_v26 }
   0xf   :  { %578 = vmatmul.mubr.f32.vlgmr.msra.gmra.mrb[0].mxu1 %v112_v27  ;;  %620 = vmatprep.subr.bf16.mxu1 %v619_v28 }
  0x10   :  { %622 = vmatpush3.bf16.msra.mxu1 %v619_v28  ;;  %584 = vmatprep.mubr.f32.mxu1 %v98_v8 }
  0x11   :  { %624 = vmatprep.subr.bf16.mxu1 %v623_v29 }
  0x13   :  { %606 = vmatmul.mubr.f32.vlgmr.msra.gmra.mrb[0].mxu0 %v108_v10 }
  0x14   :  { %638 = vmatpush3.bf16.msra.mxu0 %v615_v9  ;;  %612 = vmatprep.mubr.f32.mxu0 %v98_v8 }
  0x17   :  { %585 = vmatmul.mubr.f32.vlgmr.msra.gmra.mrb[0].mxu1 %v108_v10 }
  0x18   :  { %626 = vmatpush3.bf16.msra.mxu1 %v623_v29  ;;  %591 = vmatprep.mubr.f32.mxu1 %v99_v13 }
  0x1b   :  { %613 = vmatmul.mubr.f32.vlgmr.msra.gmra.mrb[0].mxu0 %v108_v10 }
  0x1f   :  { %592 = vmatmul.mubr.f32.vlgmr.msra.gmra.mrb[0].mxu1 %v109_v14 }
  0xee   :  { %v614_v31 = vpop.f32.mrb[0].mxu0 }
  0xef   :  { %v523_v32 = vpop.f32.mrb[1].mxu0 }
  0xf2   :  { %v593_v34 = vpop.f32.mrb[0].mxu1 }
  0xf3   :  { %v639_v35 = vadd.f32 %v614_v31, %v593_v34  ;;  %v277_v37 = vpop.f32.mrb[1].mxu1 }
  0xf4   :  { %v640_v38 = vadd.f32 %v523_v32, %v277_v37 }
  0xf5   :  { %v534_v39 = vadd.f32 %v639_v35, %v19_v33 }
  0xf6   :  { %v533_v40 = vadd.f32 %v640_v38, %v18_v36 }
  0xf7   :  { %537 = vst.msk [vmem:[#allocation2 + $0x8] sm:$0xff] %vm15_vm1, %v534_v39 }
  0xf8   :  { %536 = vst.msk [vmem:[#allocation2] sm:$0xff] %vm15_vm1, %v533_v40 }
  0xfe   :  { %v542_v41 = vld [vmem:[#allocation2 + $0x8] sm:$0xff] }
  0xff   :  { %544 = vst.msk [vmem:[%s692_s2 + $0x8] sm:$0xff] %vm15_vm1, %v542_v41  ;;  %v541_v42 = vld [vmem:[#allocation2] sm:$0xff] }
 0x100   :  { %543 = vst.msk [vmem:[%s692_s2] sm:$0xff] %vm15_vm1, %v541_v42 }

// kernel: _lambda_.9
= control target key start
LH: loop header
LB: loop body
LE: loop exit
PB: predicated region body
PF: predicated region fallthrough
CT: control target
= control target key end

     0   :  { %vm23_vm0 = vcmask 261120   ;;  %vm612_vm1 = vcmask 785408   ;;  %s874_s0 = inlined_call_operand.vmem [shape: f32[16,32], index: 0, kind: input, shape index: {}]   ;;  %s875_s3 = inlined_call_operand.vmem [shape: f32[32,96], index: 3, kind: input, shape index: {}]   ;;  %s876_s1 = inlined_call_operand.vmem [shape: f32[1,32], index: 1, kind: input, shape index: {}]   ;;  %s877_s2 = inlined_call_operand.vmem [shape: f32[1,32], index: 2, kind: input, shape index: {}]   ;;  %s878_s4 = inlined_call_operand.vmem [shape: f32[16,96], index: 4, kind: output, shape index: {}]  }
   0x1   :  { %v21_v0 = vld [vmem:[%s874_s0] sm:$0xff]  ;;  %v22_v1 = vld [vmem:[%s874_s0 + $0x8] sm:$0xff]  ;;  %v75_v16 = vld [vmem:[%s875_s3 + $0x10] sm:$0xff] }
   0x2   :  { %v24_v2 = vsel %vm23_vm0, %v21_v0, 0.0  ;;  %v27_v3 = vsel %vm23_vm0, %v22_v1, 0.0  ;;  %v73_v14 = vld [vmem:[%s875_s3] sm:$0xff]  ;;  %v74_v15 = vld [vmem:[%s875_s3 + $0x8] sm:$0xff]  ;;  %v76_v19 = vld [vmem:[%s875_s3 + $0x18] sm:$0xff]  ;;  %v91_v20 = vand.u32 4294901760, %v75_v16 }
   0x3   :  { %25 = vadd.xlane.f32.xlu0 %v24_v2  ;;  %v85_v17 = vand.u32 4294901760, %v73_v14  ;;  %v88_v18 = vand.u32 4294901760, %v74_v15  ;;  %v94_v21 = vand.u32 4294901760, %v76_v19  ;;  %v619_v53 = vld [vmem:[%s876_s1] ss:$0 sm:$0xff] }
   0x4   :  { %v189_v31 = vsub.f32 %v75_v16, %v91_v20  ;;  %v620_v55 = vld [vmem:[%s877_s2] ss:$0 sm:$0xff] }
   0x5   :  { %v840_v22 = vpack.c.bf16 %v88_v18, %v85_v17  ;;  %v842_v23 = vpack.c.bf16 %v94_v21, %v91_v20  ;;  %v175_v24 = vsub.f32 %v73_v14, %v85_v17  ;;  %v182_v25 = vsub.f32 %v74_v15, %v88_v18 }
   0x6   :  { %v196_v32 = vsub.f32 %v76_v19, %v94_v21  ;;  %v190_v35 = vand.u32 4294901760, %v189_v31 }
   0x7   :  { %28 = vadd.xlane.f32.xlu0 %v27_v3  ;;  %748 = vmatprep.subr.bf16.mxu0 %v840_v22  ;;  %v176_v26 = vand.u32 4294901760, %v175_v24  ;;  %v183_v27 = vand.u32 4294901760, %v182_v25  ;;  %v739_v44 = vpack.c.bf16 %v182_v25, %v175_v24 }
   0x8   :  { %724 = vmatprep.subr.bf16.mxu1 %v840_v22  ;;  %750 = vmatpush3.bf16.msra.mxu0 %v840_v22  ;;  %v197_v36 = vand.u32 4294901760, %v196_v32  ;;  %v191_v39 = vsub.f32 %v189_v31, %v190_v35  ;;  %v743_v45 = vpack.c.bf16 %v196_v32, %v189_v31 }
   0x9   :  { %726 = vmatpush3.bf16.msra.mxu1 %v840_v22  ;;  %752 = vmatprep.subr.bf16.mxu0 %v842_v23  ;;  %v755_v28 = vpack.c.bf16 %v183_v27, %v176_v26  ;;  %v177_v29 = vsub.f32 %v175_v24, %v176_v26  ;;  %v184_v30 = vsub.f32 %v182_v25, %v183_v27 }
   0xa   :  { %728 = vmatprep.subr.bf16.mxu1 %v842_v23  ;;  %v759_v38 = vpack.c.bf16 %v197_v36, %v190_v35  ;;  %v198_v40 = vsub.f32 %v196_v32, %v197_v36  ;;  %v192_v41 = vand.u32 4294901760, %v191_v39 }
   0xb   :  { %v178_v33 = vand.u32 4294901760, %v177_v29  ;;  %v185_v34 = vand.u32 4294901760, %v184_v30 }
   0xc   :  { %754 = vmatpush3.bf16.msra.mxu0 %v842_v23  ;;  %v199_v42 = vand.u32 4294901760, %v198_v40 }
   0xd   :  { %730 = vmatpush3.bf16.msra.mxu1 %v842_v23  ;;  %756 = vmatprep.subr.bf16.mxu0 %v755_v28  ;;  %v731_v37 = vpack.c.bf16 %v185_v34, %v178_v33 }
   0xe   :  { %v735_v43 = vpack.c.bf16 %v199_v42, %v192_v41 }
   0xf   :  { %732 = vmatprep.subr.bf16.mxu1 %v731_v37 }
  0x90   :  { %v26_v4 = vpop.xlane.xlu0 %25 }
  0x91   :  { %v31_v5 = vmul.f32 0.03125, %v26_v4 }
  0x93   :  { %v818_v6 = vsub.f32 %v21_v0, %v31_v5 }
  0x94   :  { %v29_v7 = vpop.xlane.xlu0 %28 }
  0x95   :  { %v32_v8 = vmul.f32 0.03125, %v29_v7  ;;  %v35_v9 = vmul.f32 %v818_v6, %v818_v6 }
  0x97   :  { %v822_v10 = vsub.f32 %v22_v1, %v32_v8  ;;  %v37_v11 = vsel %vm23_vm0, %v35_v9, 0.0 }
  0x98   :  { %38 = vadd.xlane.f32.xlu1 %v37_v11 }
  0x99   :  { %v36_v12 = vmul.f32 %v822_v10, %v822_v10 }
  0x9b   :  { %v40_v13 = vsel %vm23_vm0, %v36_v12, 0.0 }
  0x9c   :  { %41 = vadd.xlane.f32.xlu1 %v40_v13 }
 0x125   :  { %v39_v46 = vpop.xlane.xlu1 %38 }
 0x126   :  { %v43_v47 = vmul.f32 0.03125, %v39_v46 }
 0x128   :  { %v45_v48 = vadd.f32 1e-05, %v43_v47 }
 0x129   :  { %v42_v49 = vpop.xlane.xlu1 %41 }
 0x12a   :  { %781 = vrsqrt.f32 %v45_v48  ;;  %v44_v50 = vmul.f32 0.03125, %v42_v49 }
 0x12c   :  { %v46_v51 = vadd.f32 1e-05, %v44_v50 }
 0x12e   :  { %783 = vrsqrt.f32 %v46_v51 }
 0x134   :  { %v782_v52 = vpop.eup %781 }
 0x135   :  { %v49_v54 = vmul.f32 %v782_v52, %v818_v6 }
 0x137   :  { %v58_v56 = vmul.f32 %v619_v53, %v49_v54 }
 0x138   :  { %v784_v57 = vpop.eup %783 }
 0x139   :  { %v67_v58 = vadd.f32 %v620_v55, %v58_v56  ;;  %v50_v59 = vmul.f32 %v784_v57, %v822_v10 }
 0x13b   :  { %69 = vst.msk [vmem:[#allocation2] sm:$0xff] %vm23_vm0, %v67_v58  ;;  %v59_v60 = vmul.f32 %v619_v53, %v50_v59 }
 0x13d   :  { %v68_v61 = vadd.f32 %v620_v55, %v59_v60 }
 0x13f   :  { %70 = vst.msk [vmem:[#allocation2 + $0x8] sm:$0xff] %vm23_vm0, %v68_v61 }
 0x142   :  { %v71_v62 = vld [vmem:[#allocation2] sm:$0xff] }
 0x143   :  { %v79_v63 = vsel %vm23_vm0, %v71_v62, 0 }
 0x144   :  { %v153_v0 = vand.u32 4294901760, %v79_v63 }
 0x146   :  { %v154_v1 = vsub.f32 %v79_v63, %v153_v0  ;;  %v72_v2 = vld [vmem:[#allocation2 + $0x8] sm:$0xff] }
 0x147   :  { %v82_v3 = vsel %vm23_vm0, %v72_v2, 0 }
 0x148   :  { %v155_v4 = vand.u32 4294901760, %v154_v1  ;;  %v163_v5 = vand.u32 4294901760, %v82_v3 }
 0x14a   :  { %698 = vmatprep.mubr.f32.mxu0 %v155_v4  ;;  %v156_v6 = vsub.f32 %v154_v1, %v155_v4  ;;  %v164_v7 = vsub.f32 %v82_v3, %v163_v5 }
 0x14c   :  { %v157_v8 = vand.u32 4294901760, %v156_v6  ;;  %v165_v9 = vand.u32 4294901760, %v164_v7 }
 0x14e   :  { %665 = vmatprep.mubr.f32.mxu1 %v157_v8  ;;  %699 = vmatmul.mubr.f32.vlgmr.msra.gmra.mrb[0].mxu0 %v165_v9  ;;  %v166_v10 = vsub.f32 %v164_v7, %v165_v9 }
 0x14f   :  { %758 = vmatpush3.bf16.msra.mxu0 %v755_v28  ;;  %709 = vmatprep.mubr.f32.mxu0 %v153_v0 }
 0x150   :  { %v167_v11 = vand.u32 4294901760, %v166_v10  ;;  %760 = vmatprep.subr.bf16.mxu0 %v759_v38 }
 0x152   :  { %666 = vmatmul.mubr.f32.vlgmr.msra.gmra.mrb[0].mxu1 %v167_v11 }
 0x153   :  { %734 = vmatpush3.bf16.msra.mxu1 %v731_v37  ;;  %676 = vmatprep.mubr.f32.mxu1 %v153_v0 }
 0x154   :  { %762 = vmatpush3.bf16.msra.mxu0 %v759_v38  ;;  %736 = vmatprep.subr.bf16.mxu1 %v735_v43 }
 0x155   :  { %764 = vmatprep.subr.bf16.mxu0 %v840_v22 }
 0x157   :  { %738 = vmatpush3.bf16.msra.mxu1 %v735_v43  ;;  %710 = vmatmul.mubr.f32.vlgmr.msra.gmra.mrb[0].mxu0 %v163_v5 }
 0x158   :  { %766 = vmatpush3.bf16.msra.mxu0 %v840_v22  ;;  %720 = vmatprep.mubr.f32.mxu0 %v153_v0 }
 0x159   :  { %740 = vmatprep.subr.bf16.mxu1 %v739_v44  ;;  %768 = vmatprep.subr.bf16.mxu0 %v842_v23 }
 0x15a   :  { %677 = vmatmul.mubr.f32.vlgmr.msra.gmra.mrb[0].mxu1 %v163_v5 }
 0x15b   :  { %742 = vmatpush3.bf16.msra.mxu1 %v739_v44  ;;  %687 = vmatprep.mubr.f32.mxu1 %v154_v1 }
 0x15c   :  { %770 = vmatpush3.bf16.msra.mxu0 %v842_v23  ;;  %744 = vmatprep.subr.bf16.mxu1 %v743_v45 }
 0x15f   :  { %746 = vmatpush3.bf16.msra.mxu1 %v743_v45  ;;  %721 = vmatmul.mubr.f32.vlgmr.msra.gmra.mrb[0].mxu0 %v163_v5 }
 0x162   :  { %688 = vmatmul.mubr.f32.vlgmr.msra.gmra.mrb[0].mxu1 %v164_v7 }
 0x232   :  { %v722_v12 = vpop.f32.mrb[0].mxu0 }
 0x233   :  { %v602_v13 = vpop.f32.mrb[1].mxu0 }
 0x235   :  { %v689_v14 = vpop.f32.mrb[0].mxu1 }
 0x236   :  { %v771_v15 = vadd.f32 %v722_v12, %v689_v14  ;;  %v346_v16 = vpop.f32.mrb[1].mxu1 }
 0x237   :  { %v772_v17 = vadd.f32 %v602_v13, %v346_v16 }
 0x238   :  { %614 = vst.msk [vmem:[%s878_s4 + $0x8] sm:$0xff] %vm612_vm1, %v771_v15 }
 0x239   :  { %613 = vst.msk [vmem:[%s878_s4] sm:$0xff] %vm612_vm1, %v772_v17 }

// kernel: _lambda_.11
= control target key start
LH: loop header
LB: loop body
LE: loop exit
PB: predicated region body
PF: predicated region fallthrough
CT: control target
= control target key end

     0   :  { %vm21_vm0 = vcmask 261120   ;;  %v757_v46 = vmov 0.0   ;;  %s836_s1 = inlined_call_operand.vmem [shape: f32[32,32], index: 1, kind: input, shape index: {}]   ;;  %s837_s0 = inlined_call_operand.vmem [shape: f32[16,32], index: 0, kind: input, shape index: {}]   ;;  %s838_s2 = inlined_call_operand.vmem [shape: f32[1,32], index: 2, kind: input, shape index: {}]   ;;  %s839_s3 = inlined_call_operand.vmem [shape: f32[16,32], index: 3, kind: input, shape index: {}]   ;;  %s840_s4 = inlined_call_operand.vmem [shape: f32[16,32], index: 4, kind: output, shape index: {}]  }
   0x1   :  { %v28_v0 = vld [vmem:[%s836_s1] sm:$0xff]  ;;  %v29_v1 = vld [vmem:[%s836_s1 + $0x8] sm:$0xff]  ;;  %v30_v2 = vld [vmem:[%s836_s1 + $0x10] sm:$0xff]  ;;  %23 = vst.msk [vmem:[#allocation2 + $0x8] sm:$0xff] %vm21_vm0, %v757_v46 }
   0x2   :  { %v40_v3 = vand.u32 4294901760, %v28_v0  ;;  %v43_v4 = vand.u32 4294901760, %v29_v1  ;;  %v31_v5 = vld [vmem:[%s836_s1 + $0x18] sm:$0xff]  ;;  %v46_v6 = vand.u32 4294901760, %v30_v2  ;;  %v26_v7 = vld [vmem:[%s837_s0] sm:$0xff]  ;;  %v27_v8 = vld [vmem:[%s837_s0 + $0x8] sm:$0xff] }
   0x3   :  { %v49_v9 = vand.u32 4294901760, %v31_v5  ;;  %v34_v10 = vsel %vm21_vm0, %v26_v7, 0  ;;  %v37_v11 = vsel %vm21_vm0, %v27_v8, 0  ;;  %22 = vst.msk [vmem:[#allocation2] sm:$0xff] %vm21_vm0, %v757_v46  ;;  %v595_v57 = vld [vmem:[%s838_s2] ss:$0 sm:$0xff] }
   0x4   :  { %v698_v12 = vpack.c.bf16 %v43_v4, %v40_v3  ;;  %v803_v13 = vand.u32 4294901760, %v34_v10  ;;  %v805_v14 = vand.u32 4294901760, %v37_v11  ;;  %v130_v15 = vsub.f32 %v28_v0, %v40_v3  ;;  %v586_v59 = vld [vmem:[%s839_s3 + $0x8] sm:$0xff]  ;;  %v585_v62 = vld [vmem:[%s839_s3] sm:$0xff] }
   0x5   :  { %v702_v16 = vpack.c.bf16 %v49_v9, %v46_v6  ;;  %v137_v17 = vsub.f32 %v29_v1, %v43_v4  ;;  %v144_v18 = vsub.f32 %v30_v2, %v46_v6  ;;  %v151_v19 = vsub.f32 %v31_v5, %v49_v9 }
   0x6   :  { %699 = vmatprep.subr.bf16.mxu1 %v698_v12  ;;  %723 = vmatprep.subr.bf16.mxu0 %v698_v12  ;;  %v109_v20 = vsub.f32 %v34_v10, %v803_v13  ;;  %v119_v21 = vsub.f32 %v37_v11, %v805_v14  ;;  %v131_v22 = vand.u32 4294901760, %v130_v15 }
   0x7   :  { %701 = vmatpush3.bf16.msra.mxu1 %v698_v12  ;;  %725 = vmatpush3.bf16.msra.mxu0 %v698_v12  ;;  %v138_v23 = vand.u32 4294901760, %v137_v17  ;;  %v145_v24 = vand.u32 4294901760, %v144_v18  ;;  %v152_v25 = vand.u32 4294901760, %v151_v19  ;;  %v714_v44 = vpack.c.bf16 %v137_v17, %v130_v15 }
   0x8   :  { %703 = vmatprep.subr.bf16.mxu1 %v702_v16  ;;  %727 = vmatprep.subr.bf16.mxu0 %v702_v16  ;;  %v110_v26 = vand.u32 4294901760, %v109_v20  ;;  %v120_v27 = vand.u32 4294901760, %v119_v21  ;;  %v132_v28 = vsub.f32 %v130_v15, %v131_v22  ;;  %v718_v45 = vpack.c.bf16 %v151_v19, %v144_v18  ;;  %v25_v48 = vld [vmem:[#allocation2 + $0x8] sm:$0xff] }
   0x9   :  { %v139_v29 = vsub.f32 %v137_v17, %v138_v23  ;;  %v730_v30 = vpack.c.bf16 %v138_v23, %v131_v22  ;;  %v146_v31 = vsub.f32 %v144_v18, %v145_v24  ;;  %v153_v32 = vsub.f32 %v151_v19, %v152_v25 }
   0xa   :  { %v111_v33 = vsub.f32 %v109_v20, %v110_v26  ;;  %673 = vmatprep.mubr.f32.mxu0 %v110_v26  ;;  %v121_v34 = vsub.f32 %v119_v21, %v120_v27  ;;  %v133_v35 = vand.u32 4294901760, %v132_v28  ;;  %v734_v43 = vpack.c.bf16 %v152_v25, %v145_v24  ;;  %v24_v52 = vld [vmem:[#allocation2] sm:$0xff] }
   0xb   :  { %705 = vmatpush3.bf16.msra.mxu1 %v702_v16  ;;  %729 = vmatpush3.bf16.msra.mxu0 %v702_v16  ;;  %v140_v36 = vand.u32 4294901760, %v139_v29  ;;  %v147_v37 = vand.u32 4294901760, %v146_v31  ;;  %v154_v38 = vand.u32 4294901760, %v153_v32 }
   0xc   :  { %v112_v39 = vand.u32 4294901760, %v111_v33  ;;  %v122_v40 = vand.u32 4294901760, %v121_v34  ;;  %731 = vmatprep.subr.bf16.mxu0 %v730_v30 }
   0xd   :  { %v706_v41 = vpack.c.bf16 %v140_v36, %v133_v35  ;;  %v710_v42 = vpack.c.bf16 %v154_v38, %v147_v37 }
   0xe   :  { %640 = vmatprep.mubr.f32.mxu1 %v112_v39  ;;  %674 = vmatmul.mubr.f32.vlgmr.msra.gmra.mrb[0].mxu0 %v120_v27 }
   0xf   :  { %641 = vmatmul.mubr.f32.vlgmr.msra.gmra.mrb[0].mxu1 %v122_v40  ;;  %707 = vmatprep.subr.bf16.mxu1 %v706_v41 }
  0x10   :  { %709 = vmatpush3.bf16.msra.mxu1 %v706_v41  ;;  %733 = vmatpush3.bf16.msra.mxu0 %v730_v30 }
  0x11   :  { %711 = vmatprep.subr.bf16.mxu1 %v710_v42  ;;  %735 = vmatprep.subr.bf16.mxu0 %v734_v43 }
  0x12   :  { %651 = vmatprep.mubr.f32.mxu1 %v803_v13  ;;  %684 = vmatprep.mubr.f32.mxu0 %v803_v13 }
  0x14   :  { %713 = vmatpush3.bf16.msra.mxu1 %v710_v42  ;;  %737 = vmatpush3.bf16.msra.mxu0 %v734_v43 }
  0x15   :  { %715 = vmatprep.subr.bf16.mxu1 %v714_v44  ;;  %739 = vmatprep.subr.bf16.mxu0 %v698_v12 }
  0x17   :  { %652 = vmatmul.mubr.f32.vlgmr.msra.gmra.mrb[0].mxu1 %v805_v14  ;;  %685 = vmatmul.mubr.f32.vlgmr.msra.gmra.mrb[0].mxu0 %v805_v14 }
  0x18   :  { %717 = vmatpush3.bf16.msra.mxu1 %v714_v44  ;;  %741 = vmatpush3.bf16.msra.mxu0 %v698_v12 }
  0x19   :  { %719 = vmatprep.subr.bf16.mxu1 %v718_v45  ;;  %743 = vmatprep.subr.bf16.mxu0 %v702_v16 }
  0x1a   :  { %662 = vmatprep.mubr.f32.mxu1 %v109_v20  ;;  %695 = vmatprep.mubr.f32.mxu0 %v803_v13 }
  0x1c   :  { %721 = vmatpush3.bf16.msra.mxu1 %v718_v45  ;;  %745 = vmatpush3.bf16.msra.mxu0 %v702_v16 }
  0x1f   :  { %663 = vmatmul.mubr.f32.vlgmr.msra.gmra.mrb[0].mxu1 %v119_v21  ;;  %696 = vmatmul.mubr.f32.vlgmr.msra.gmra.mrb[0].mxu0 %v805_v14 }
  0xf2   :  { %v664_v47 = vpop.f32.mrb[0].mxu1  ;;  %v697_v49 = vpop.f32.mrb[0].mxu0 }
  0xf3   :  { %v746_v50 = vadd.f32 %v697_v49, %v664_v47  ;;  %v301_v51 = vpop.f32.mrb[1].mxu1  ;;  %v557_v53 = vpop.f32.mrb[1].mxu0 }
  0xf4   :  { %v747_v54 = vadd.f32 %v557_v53, %v301_v51 }
  0xf5   :  { %v568_v55 = vadd.f32 %v746_v50, %v25_v48 }
  0xf6   :  { %v567_v56 = vadd.f32 %v747_v54, %v24_v52 }
  0xf7   :  { %570 = vst.msk [vmem:[#allocation2 + $0x8] sm:$0xff] %vm21_vm0, %v568_v55 }
  0xf8   :  { %569 = vst.msk [vmem:[#allocation2] sm:$0xff] %vm21_vm0, %v567_v56 }
  0xfe   :  { %v575_v58 = vld [vmem:[#allocation2 + $0x8] sm:$0xff] }
  0xff   :  { %v584_v60 = vadd.f32 %v595_v57, %v575_v58  ;;  %v574_v61 = vld [vmem:[#allocation2] sm:$0xff] }
 0x100   :  { %v583_v63 = vadd.f32 %v595_v57, %v574_v61 }
 0x101   :  { %v588_v0 = vadd.f32 %v586_v59, %v584_v60 }
 0x102   :  { %v587_v1 = vadd.f32 %v585_v62, %v583_v63 }
 0x103   :  { %590 = vst.msk [vmem:[%s840_s4 + $0x8] sm:$0xff] %vm21_vm0, %v588_v0 }
 0x104   :  { %589 = vst.msk [vmem:[%s840_s4] sm:$0xff] %vm21_vm0, %v587_v1 }

// kernel: _lambda_.17
= control target key start
LH: loop header
LB: loop body
LE: loop exit
PB: predicated region body
PF: predicated region fallthrough
CT: control target
= control target key end

     0   :  { %s1695_s0 = inlined_call_operand.vmem [shape: f32[16,128], index: 0, kind: input, shape index: {}]   ;;  %s1696_s1 = inlined_call_operand.vmem [shape: f32[128,32], index: 1, kind: input, shape index: {}]   ;;  %s1697_s2 = inlined_call_operand.vmem [shape: f32[1,32], index: 2, kind: input, shape index: {}]   ;;  %s1698_s3 = inlined_call_operand.vmem [shape: f32[16,32], index: 3, kind: input, shape index: {}]   ;;  %s1699_s4 = inlined_call_operand.hbm [shape: f32[16,32], index: 4, kind: output, shape index: {}]  }
   0x1   :  { %v29_v0 = vld [vmem:[%s1696_s1] sm:$0xff]  ;;  %v30_v1 = vld [vmem:[%s1696_s1 + $0x8] sm:$0xff]  ;;  %v31_v2 = vld [vmem:[%s1696_s1 + $0x10] sm:$0xff] }
   0x2   :  { %v46_v3 = vand.u32 4294901760, %v29_v0  ;;  %v49_v4 = vand.u32 4294901760, %v30_v1  ;;  %v1360_v5 = vld [vmem:[%s1696_s1 + $0x18] sm:$0xff]  ;;  %v52_v6 = vand.u32 4294901760, %v31_v2  ;;  %v1365_v7 = vld [vmem:[%s1696_s1 + $0x20] sm:$0xff]  ;;  %v1370_v8 = vld [vmem:[%s1696_s1 + $0x28] sm:$0xff] }
   0x3   :  { %v55_v9 = vand.u32 4294901760, %v1360_v5  ;;  %v58_v11 = vand.u32 4294901760, %v1365_v7  ;;  %v61_v12 = vand.u32 4294901760, %v1370_v8  ;;  %v1382_v14 = vld [vmem:[%s1696_s1 + $0x30] sm:$0xff]  ;;  %v1387_v15 = vld [vmem:[%s1696_s1 + $0x38] sm:$0xff]  ;;  %v27_v16 = vld [vmem:[%s1695_s0] sm:$0xff] }
   0x4   :  { %v1373_v10 = vpack.c.bf16 %v49_v4, %v46_v3  ;;  %v1396_v17 = vand.u32 4294901760, %v27_v16 }
   0x5   :  { %v1377_v13 = vpack.c.bf16 %v55_v9, %v52_v6 }
   0x6   :  { %1090 = vmatprep.subr.bf16.mxu1 %v1373_v10  ;;  %1186 = vmatprep.subr.bf16.mxu0 %v1373_v10 }
   0x7   :  { %1092 = vmatpush3.bf16.msra.mxu1 %v1373_v10  ;;  %1188 = vmatpush3.bf16.msra.mxu0 %v1373_v10 }
   0x8   :  { %9 = vsyncpa [#allocation4], 0  ;;  %1094 = vmatprep.subr.bf16.mxu1 %v1377_v13  ;;  %1190 = vmatprep.subr.bf16.mxu0 %v1377_v13  ;;  %v1404_v18 = vpack.c.bf16 %v61_v12, %v58_v11  ;;  %v64_v19 = vand.u32 4294901760, %v1382_v14  ;;  %v67_v20 = vand.u32 4294901760, %v1387_v15  ;;  %v1411_v21 = vld [vmem:[%s1696_s1 + $0x40] sm:$0xff]  ;;  %v1416_v22 = vld [vmem:[%s1696_s1 + $0x48] sm:$0xff]  ;;  %v1419_v23 = vsub.f32 %v27_v16, %v1396_v17 }
   0x9   :  { %v70_v26 = vand.u32 4294901760, %v1411_v21  ;;  %v73_v27 = vand.u32 4294901760, %v1416_v22  ;;  %v1437_v28 = vld [vmem:[%s1696_s1 + $0x50] sm:$0xff]  ;;  %v1442_v29 = vld [vmem:[%s1696_s1 + $0x58] sm:$0xff]  ;;  %v28_v33 = vld [vmem:[%s1695_s0 + $0x8] sm:$0xff]  ;;  %v1470_v38 = vsub.f32 %v29_v0, %v46_v3  ;;  %v1472_v39 = vsub.f32 %v30_v1, %v49_v4  ;;  %s1320_s27 = smov [#allocation3]  }
   0xa   :  { %v128_v24 = vand.u32 4294901760, %v1419_v23  ;;  %v1430_v25 = vpack.c.bf16 %v67_v20, %v64_v19  ;;  %v76_v31 = vand.u32 4294901760, %v1437_v28  ;;  %v79_v35 = vand.u32 4294901760, %v1442_v29  ;;  %v1463_v36 = vld [vmem:[%s1696_s1 + $0x60] sm:$0xff]  ;;  %v1468_v37 = vld [vmem:[%s1696_s1 + $0x68] sm:$0xff]  ;;  %v1483_v43 = vld [vmem:[%s1696_s1 + $0x70] sm:$0xff] }
   0xb   :  { %1096 = vmatpush3.bf16.msra.mxu1 %v1377_v13  ;;  %1192 = vmatpush3.bf16.msra.mxu0 %v1377_v13  ;;  %v1457_v34 = vpack.c.bf16 %v73_v27, %v70_v26  ;;  %v1474_v40 = vand.u32 4294901760, %v28_v33  ;;  %v82_v41 = vand.u32 4294901760, %v1463_v36  ;;  %v85_v42 = vand.u32 4294901760, %v1468_v37  ;;  %v1488_v44 = vld [vmem:[%s1696_s1 + $0x78] sm:$0xff]  ;;  %s759_s28 = sshll.u32 %s1320_s27, 4  ;;  %s760_s28 = int_to_ptr.vmem [resolvable:$true] %s759_s28 }
   0xc   :  { %1098 = vmatprep.subr.bf16.mxu1 %v1404_v18  ;;  %1194 = vmatprep.subr.bf16.mxu0 %v1404_v18  ;;  %v129_v30 = vsub.f32 %v1419_v23, %v128_v24  ;;  %v1490_v45 = vsub.f32 %v31_v2, %v52_v6  ;;  %v1498_v46 = vpack.c.bf16 %v79_v35, %v76_v31  ;;  %v149_v47 = vand.u32 4294901760, %v1470_v38  ;;  %p1300_p1 = scmp.lt.s32.totalorder %s760_s28, %s760_s28 }
   0xd   :  { %1016 = vmatprep.mubr.f32.mxu0 %v128_v24  ;;  %v156_v48 = vand.u32 4294901760, %v1472_v39  ;;  %v1503_v49 = vsub.f32 %v1360_v5, %v55_v9  ;;  %v88_v50 = vand.u32 4294901760, %v1483_v43  ;;  %v91_v51 = vand.u32 4294901760, %v1488_v44 }
   0xe   :  { %v130_v32 = vand.u32 4294901760, %v129_v30  ;;  %v1508_v52 = vsub.f32 %v28_v33, %v1474_v40  ;;  %v1516_v53 = vpack.c.bf16 %v85_v42, %v82_v41  ;;  %v163_v54 = vand.u32 4294901760, %v1490_v45 }
   0xf   :  { %1100 = vmatpush3.bf16.msra.mxu1 %v1404_v18  ;;  %1196 = vmatpush3.bf16.msra.mxu0 %v1404_v18  ;;  %v1522_v55 = vsub.f32 %v1365_v7, %v58_v11  ;;  %v150_v56 = vsub.f32 %v1470_v38, %v149_v47  ;;  %v157_v57 = vsub.f32 %v1472_v39, %v156_v48  ;;  %v170_v58 = vand.u32 4294901760, %v1503_v49 }
  0x10   :  { %1102 = vmatprep.subr.bf16.mxu1 %v1430_v25  ;;  %1198 = vmatprep.subr.bf16.mxu0 %v1430_v25  ;;  %v1532_v59 = vsub.f32 %v1370_v8, %v61_v12  ;;  %v1538_v60 = vpack.c.bf16 %v91_v51, %v88_v50  ;;  %v138_v61 = vand.u32 4294901760, %v1508_v52  ;;  %v164_v62 = vsub.f32 %v1490_v45, %v163_v54 }
  0x11   :  { %911 = vmatprep.mubr.f32.mxu1 %v130_v32  ;;  %v177_v63 = vand.u32 4294901760, %v1522_v55  ;;  %v1548_v0 = vsub.f32 %v1382_v14, %v64_v19  ;;  %v1553_v1 = vsub.f32 %v1387_v15, %v67_v20  ;;  %v151_v2 = vand.u32 4294901760, %v150_v56 }
  0x12   :  { %v158_v3 = vand.u32 4294901760, %v157_v57  ;;  %v171_v4 = vsub.f32 %v1503_v49, %v170_v58  ;;  %v184_v5 = vand.u32 4294901760, %v1532_v59  ;;  %v1217_v6 = vpack.c.bf16 %v156_v48, %v149_v47 }
  0x13   :  { %1104 = vmatpush3.bf16.msra.mxu1 %v1430_v25  ;;  %1200 = vmatpush3.bf16.msra.mxu0 %v1430_v25  ;;  %v139_v7 = vsub.f32 %v1508_v52, %v138_v61  ;;  %v1563_v8 = vsub.f32 %v1411_v21, %v70_v26  ;;  %v165_v9 = vand.u32 4294901760, %v164_v62  ;;  %v178_v11 = vsub.f32 %v1522_v55, %v177_v63 }
  0x14   :  { %1106 = vmatprep.subr.bf16.mxu1 %v1457_v34  ;;  %1202 = vmatprep.subr.bf16.mxu0 %v1457_v34  ;;  %v191_v12 = vand.u32 4294901760, %v1548_v0  ;;  %v198_v14 = vand.u32 4294901760, %v1553_v1  ;;  %v1121_v15 = vpack.c.bf16 %v158_v3, %v151_v2  ;;  %v172_v16 = vand.u32 4294901760, %v171_v4 }
  0x15   :  { %v185_v19 = vsub.f32 %v1532_v59, %v184_v5  ;;  %v1576_v20 = vsub.f32 %v1416_v22, %v73_v27  ;;  %v140_v21 = vand.u32 4294901760, %v139_v7  ;;  %v1221_v24 = vpack.c.bf16 %v170_v58, %v163_v54 }
  0x16   :  { %v205_v26 = vand.u32 4294901760, %v1563_v8  ;;  %v1582_v30 = vsub.f32 %v1437_v28, %v76_v31  ;;  %v192_v32 = vsub.f32 %v1548_v0, %v191_v12  ;;  %v199_v33 = vsub.f32 %v1553_v1, %v198_v14 }
  0x17   :  { %1108 = vmatpush3.bf16.msra.mxu1 %v1457_v34  ;;  %1204 = vmatpush3.bf16.msra.mxu0 %v1457_v34  ;;  %v1591_v22 = vsub.f32 %v1442_v29, %v79_v35  ;;  %v1125_v27 = vpack.c.bf16 %v172_v16, %v165_v9  ;;  %v179_v47 = vand.u32 4294901760, %v178_v11  ;;  %v186_v48 = vand.u32 4294901760, %v185_v19 }
  0x18   :  { %1110 = vmatprep.subr.bf16.mxu1 %v1498_v46  ;;  %1206 = vmatprep.subr.bf16.mxu0 %v1498_v46  ;;  %v212_v28 = vand.u32 4294901760, %v1576_v20  ;;  %v1225_v31 = vpack.c.bf16 %v184_v5, %v177_v63  ;;  %v206_v54 = vsub.f32 %v1563_v8, %v205_v26  ;;  %v1598_v56 = vsub.f32 %v1463_v36, %v82_v41 }
  0x19   :  { %v193_v29 = vand.u32 4294901760, %v192_v32  ;;  %v200_v35 = vand.u32 4294901760, %v199_v33  ;;  %v219_v57 = vand.u32 4294901760, %v1582_v30  ;;  %v226_v58 = vand.u32 4294901760, %v1591_v22 }
  0x1a   :  { %v1129_v62 = vpack.c.bf16 %v186_v48, %v179_v47  ;;  %v1606_v63 = vsub.f32 %v1468_v37, %v85_v42  ;;  %v1229_v36 = vpack.c.bf16 %v198_v14, %v191_v12  ;;  %v207_v41 = vand.u32 4294901760, %v206_v54 }
  0x1b   :  { %1112 = vmatpush3.bf16.msra.mxu1 %v1498_v46  ;;  %1208 = vmatpush3.bf16.msra.mxu0 %v1498_v46  ;;  %v1133_v2 = vpack.c.bf16 %v200_v35, %v193_v29  ;;  %v220_v3 = vsub.f32 %v1582_v30, %v219_v57  ;;  %v227_v4 = vsub.f32 %v1591_v22, %v226_v58  ;;  %v233_v5 = vand.u32 4294901760, %v1598_v56 }
  0x1c   :  { %1114 = vmatprep.subr.bf16.mxu1 %v1516_v53  ;;  %1210 = vmatprep.subr.bf16.mxu0 %v1516_v53  ;;  %v240_v37 = vand.u32 4294901760, %v1606_v63  ;;  %v1617_v42 = vsub.f32 %v1483_v43, %v88_v50  ;;  %v1622_v7 = vsub.f32 %v1488_v44, %v91_v51  ;;  %v1233_v9 = vpack.c.bf16 %v212_v28, %v205_v26 }
  0x1d   :  { %v221_v11 = vand.u32 4294901760, %v220_v3  ;;  %v228_v12 = vand.u32 4294901760, %v227_v4  ;;  %v234_v14 = vsub.f32 %v1598_v56, %v233_v5  ;;  %v1237_v51 = vpack.c.bf16 %v226_v58, %v219_v57 }
  0x1e   :  { %v241_v16 = vsub.f32 %v1606_v63, %v240_v37  ;;  %v247_v43 = vand.u32 4294901760, %v1617_v42  ;;  %v254_v50 = vand.u32 4294901760, %v1622_v7  ;;  %v1241_v33 = vpack.c.bf16 %v240_v37, %v233_v5 }
  0x1f   :  { %1116 = vmatpush3.bf16.msra.mxu1 %v1516_v53  ;;  %1212 = vmatpush3.bf16.msra.mxu0 %v1516_v53  ;;  %v1141_v44 = vpack.c.bf16 %v228_v12, %v221_v11  ;;  %v235_v19 = vand.u32 4294901760, %v234_v14  ;;  %v1157_v54 = vpack.c.bf16 %v1503_v49, %v1490_v45  ;;  %vm22_vm0 = vcmask 261120  }
  0x20   :  { %1118 = vmatprep.subr.bf16.mxu1 %v1538_v60  ;;  %1214 = vmatprep.subr.bf16.mxu0 %v1538_v60  ;;  %v255_v26 = vsub.f32 %v1622_v7, %v254_v50 }
  0x22   :  { %v256_v47 = vand.u32 4294901760, %v255_v26 }
  0x23   :  { %1120 = vmatpush3.bf16.msra.mxu1 %v1538_v60  ;;  %1216 = vmatpush3.bf16.msra.mxu0 %v1538_v60 }
  0x24   :  { %1122 = vmatprep.subr.bf16.mxu1 %v1121_v15  ;;  %1218 = vmatprep.subr.bf16.mxu0 %v1217_v6 }
  0x26   :  { %912 = vmatmul.mubr.f32.vlgmr.msra.gmra.mrb[0].mxu1 %v140_v21  ;;  %1017 = vmatmul.mubr.f32.vlgmr.msra.gmra.mrb[0].mxu0 %v138_v61  ;;  %v213_v61 = vsub.f32 %v1576_v20, %v212_v28  ;;  %v242_v21 = vand.u32 4294901760, %v241_v16  ;;  %v1245_v28 = vpack.c.bf16 %v254_v50, %v247_v43 }
  0x27   :  { %1124 = vmatpush3.bf16.msra.mxu1 %v1121_v15  ;;  %1220 = vmatpush3.bf16.msra.mxu0 %v1217_v6 }
  0x28   :  { %1126 = vmatprep.subr.bf16.mxu1 %v1125_v27  ;;  %1222 = vmatprep.subr.bf16.mxu0 %v1221_v24  ;;  %v214_v6 = vand.u32 4294901760, %v213_v61  ;;  %v1145_v32 = vpack.c.bf16 %v242_v21, %v235_v19 }
  0x29   :  { %946 = vmatprep.mubr.f32.mxu1 %v1396_v17  ;;  %1051 = vmatprep.mubr.f32.mxu0 %v1396_v17 }
  0x2a   :  { %v1137_v15 = vpack.c.bf16 %v214_v6, %v207_v41 }
  0x2b   :  { %1128 = vmatpush3.bf16.msra.mxu1 %v1125_v27  ;;  %1224 = vmatpush3.bf16.msra.mxu0 %v1221_v24  ;;  %v248_v24 = vsub.f32 %v1617_v42, %v247_v43 }
  0x2c   :  { %1130 = vmatprep.subr.bf16.mxu1 %v1129_v62  ;;  %1226 = vmatprep.subr.bf16.mxu0 %v1225_v31 }
  0x2d   :  { %v249_v27 = vand.u32 4294901760, %v248_v24 }
  0x2f   :  { %1132 = vmatpush3.bf16.msra.mxu1 %v1129_v62  ;;  %1228 = vmatpush3.bf16.msra.mxu0 %v1225_v31  ;;  %v1149_v48 = vpack.c.bf16 %v256_v47, %v249_v27  ;;  %v1153_v31 = vpack.c.bf16 %v1472_v39, %v1470_v38  ;;  %v1161_v38 = vpack.c.bf16 %v1532_v59, %v1522_v55 }
  0x30   :  { %1134 = vmatprep.subr.bf16.mxu1 %v1133_v2  ;;  %1230 = vmatprep.subr.bf16.mxu0 %v1229_v36  ;;  %v1165_v39 = vpack.c.bf16 %v1553_v1, %v1548_v0  ;;  %v749_v1 = vld [vmem:[%s1698_s3 + $0x8] sm:$0xff] }
  0x33   :  { %1136 = vmatpush3.bf16.msra.mxu1 %v1133_v2  ;;  %1232 = vmatpush3.bf16.msra.mxu0 %v1229_v36 }
  0x34   :  { %1138 = vmatprep.subr.bf16.mxu1 %v1137_v15  ;;  %1234 = vmatprep.subr.bf16.mxu0 %v1233_v9 }
  0x37   :  { %1140 = vmatpush3.bf16.msra.mxu1 %v1137_v15  ;;  %1236 = vmatpush3.bf16.msra.mxu0 %v1233_v9 }
  0x38   :  { %1142 = vmatprep.subr.bf16.mxu1 %v1141_v44  ;;  %1238 = vmatprep.subr.bf16.mxu0 %v1237_v51 }
  0x3b   :  { %1144 = vmatpush3.bf16.msra.mxu1 %v1141_v44  ;;  %1240 = vmatpush3.bf16.msra.mxu0 %v1237_v51 }
  0x3c   :  { %1146 = vmatprep.subr.bf16.mxu1 %v1145_v32  ;;  %1242 = vmatprep.subr.bf16.mxu0 %v1241_v33 }
  0x3f   :  { %1148 = vmatpush3.bf16.msra.mxu1 %v1145_v32  ;;  %1244 = vmatpush3.bf16.msra.mxu0 %v1241_v33 }
  0x40   :  { %1150 = vmatprep.subr.bf16.mxu1 %v1149_v48  ;;  %1246 = vmatprep.subr.bf16.mxu0 %v1245_v28 }
  0x43   :  { %1152 = vmatpush3.bf16.msra.mxu1 %v1149_v48  ;;  %1248 = vmatpush3.bf16.msra.mxu0 %v1245_v28 }
  0x44   :  { %1154 = vmatprep.subr.bf16.mxu1 %v1153_v31  ;;  %1250 = vmatprep.subr.bf16.mxu0 %v1373_v10 }
  0x46   :  { %947 = vmatmul.mubr.f32.vlgmr.msra.gmra.mrb[0].mxu1 %v1474_v40  ;;  %1052 = vmatmul.mubr.f32.vlgmr.msra.gmra.mrb[0].mxu0 %v1474_v40 }
  0x47   :  { %1156 = vmatpush3.bf16.msra.mxu1 %v1153_v31  ;;  %1252 = vmatpush3.bf16.msra.mxu0 %v1373_v10  ;;  %v1169_v10 = vpack.c.bf16 %v1576_v20, %v1563_v8 }
  0x48   :  { %1158 = vmatprep.subr.bf16.mxu1 %v1157_v54  ;;  %1254 = vmatprep.subr.bf16.mxu0 %v1377_v13 }
  0x49   :  { %981 = vmatprep.mubr.f32.mxu1 %v1419_v23  ;;  %1086 = vmatprep.mubr.f32.mxu0 %v1396_v17  ;;  %v1177_v17 = vpack.c.bf16 %v1606_v63, %v1598_v56  ;;  %v1319_v23 = vmov 0.0  }
  0x4a   :  { %24 = vst.msk [vmem:[#allocation2 + $0x8] sm:$0xff] %vm22_vm0, %v1319_v23  ;;  %23 = vst.msk [vmem:[#allocation2] sm:$0xff] %vm22_vm0, %v1319_v23 }
  0x4b   :  { %1160 = vmatpush3.bf16.msra.mxu1 %v1157_v54  ;;  %1256 = vmatpush3.bf16.msra.mxu0 %v1377_v13  ;;  %v1173_v13 = vpack.c.bf16 %v1591_v22, %v1582_v30  ;;  %v748_v30 = vld [vmem:[%s1698_s3] sm:$0xff] }
  0x4c   :  { %1162 = vmatprep.subr.bf16.mxu1 %v1161_v38  ;;  %1258 = vmatprep.subr.bf16.mxu0 %v1404_v18 }
  0x4f   :  { %1164 = vmatpush3.bf16.msra.mxu1 %v1161_v38  ;;  %1260 = vmatpush3.bf16.msra.mxu0 %v1404_v18  ;;  %v1181_v18 = vpack.c.bf16 %v1622_v7, %v1617_v42 }
  0x50   :  { %1166 = vmatprep.subr.bf16.mxu1 %v1165_v39  ;;  %1262 = vmatprep.subr.bf16.mxu0 %v1430_v25 }
  0x53   :  { %1168 = vmatpush3.bf16.msra.mxu1 %v1165_v39  ;;  %1264 = vmatpush3.bf16.msra.mxu0 %v1430_v25 }
  0x54   :  { %1170 = vmatprep.subr.bf16.mxu1 %v1169_v10  ;;  %1266 = vmatprep.subr.bf16.mxu0 %v1457_v34 }
  0x57   :  { %1172 = vmatpush3.bf16.msra.mxu1 %v1169_v10  ;;  %1268 = vmatpush3.bf16.msra.mxu0 %v1457_v34  ;;  %v26_v34 = vld [vmem:[#allocation2 + $0x8] sm:$0xff] }
  0x58   :  { %1174 = vmatprep.subr.bf16.mxu1 %v1173_v13  ;;  %1270 = vmatprep.subr.bf16.mxu0 %v1498_v46 }
  0x5b   :  { %1176 = vmatpush3.bf16.msra.mxu1 %v1173_v13  ;;  %1272 = vmatpush3.bf16.msra.mxu0 %v1498_v46 }
  0x5c   :  { %1178 = vmatprep.subr.bf16.mxu1 %v1177_v17  ;;  %1274 = vmatprep.subr.bf16.mxu0 %v1516_v53 }
  0x5f   :  { %1180 = vmatpush3.bf16.msra.mxu1 %v1177_v17  ;;  %1276 = vmatpush3.bf16.msra.mxu0 %v1516_v53  ;;  %v25_v53 = vld [vmem:[#allocation2] sm:$0xff] }
  0x60   :  { %1182 = vmatprep.subr.bf16.mxu1 %v1181_v18  ;;  %1278 = vmatprep.subr.bf16.mxu0 %v1538_v60 }
  0x63   :  { %1184 = vmatpush3.bf16.msra.mxu1 %v1181_v18  ;;  %1280 = vmatpush3.bf16.msra.mxu0 %v1538_v60 }
  0x66   :  { %982 = vmatmul.mubr.f32.vlgmr.msra.gmra.mrb[0].mxu1 %v1508_v52  ;;  %1087 = vmatmul.mubr.f32.vlgmr.msra.gmra.mrb[0].mxu0 %v1474_v40  ;;  %v770_v40 = vld [vmem:[%s1697_s2] ss:$0 sm:$0xff]  ;;  %s1295_s2 = scalar_lea.vmem %s760_s28, 256 }
  0x67   :  { %p1296_p0 = scmp.ne.s32.totalorder %s760_s28, %s1295_s2  ;;  %p1301_p2 = scmp.lt.s32.totalorder %s1295_s2, %s1295_s2 }
  0x69   :  { %p1302_p3 = por %p1301_p2, %p1300_p1 }
  0x6b   :  { %p1303_p4 = pnand %p1302_p3, %p1296_p0 }
 0x139   :  { %v983_v25 = vpop.f32.mrb[0].mxu1  ;;  %v1088_v45 = vpop.f32.mrb[0].mxu0 }
 0x13a   :  { %v1281_v46 = vadd.f32 %v1088_v45, %v983_v25  ;;  %v403_v49 = vpop.f32.mrb[1].mxu1  ;;  %v719_v55 = vpop.f32.mrb[1].mxu0 }
 0x13b   :  { %v1282_v59 = vadd.f32 %v719_v55, %v403_v49 }
 0x13c   :  { %v730_v0 = vadd.f32 %v1281_v46, %v26_v34 }
 0x13d   :  { %v729_v60 = vadd.f32 %v1282_v59, %v25_v53 }
 0x13e   :  { %733 = vst.msk [vmem:[#allocation2 + $0x8] sm:$0xff] %vm22_vm0, %v730_v0 }
 0x13f   :  { %732 = vst.msk [vmem:[#allocation2] sm:$0xff] %vm22_vm0, %v729_v60 }
 0x145   :  { %v738_v52 = vld [vmem:[#allocation2 + $0x8] sm:$0xff] }
 0x146   :  { %v737_v8 = vld [vmem:[#allocation2] sm:$0xff]  ;;  %v747_v20 = vadd.f32 %v770_v40, %v738_v52 }
 0x147   :  { %v746_v22 = vadd.f32 %v770_v40, %v737_v8 }
 0x148   :  { %v751_v56 = vadd.f32 %v749_v1, %v747_v20 }
 0x149   :  { %v750_v29 = vadd.f32 %v748_v30, %v746_v22 }
 0x14a   :  { %753 = vst.msk [vmem:[#allocation3 + $0x8] sm:$0xff] %vm22_vm0, %v751_v56 }
 0x14b   :  { %752 = vst.msk [vmem:[#allocation3] sm:$0xff] %vm22_vm0, %v750_v29 }
 0x14c   :  { %1306 = shalt.err (!%p1303_p4)
}
 0x14d   :  { %s1307_s7 = scalar_lea.hbm %s1699_s4, 256 }
 0x14e   :  { %p1308_p5 = scmp.ne.s32.totalorder %s1699_s4, %s1307_s7  ;;  %p1311_p6 = scmp.lt.u32.totalorder %s1307_s7, %s1699_s4 }
 0x150   :  { %p1313_p7 = pnand %p1311_p6, %p1308_p5 }
 0x152   :  { %1316 = shalt.err (!%p1313_p7)
}
 0x153   :  { %s1321_s11 = smov 128   ;;  %s1322_s12 = smov 8  }
 0x154   :  { %765 = dma.vmem_to_hbm [thread:$0]  %s760_s28, 256, %s1699_s4, [#allocation4], %s1321_s11, %s1321_s11, %s1322_s12  }
 0x155   :  { %1317 = dma.done.wait [#allocation4], 256  }
 0x156   :  { %1318 = vsyncadd [#allocation4], 4294967040 }
 0x157   :  { %769 = vsyncpa [#allocation4], 1 }

// kernel: _lambda_.12
= control target key start
LH: loop header
LB: loop body
LE: loop exit
PB: predicated region body
PF: predicated region fallthrough
CT: control target
= control target key end

     0   :  { %vm23_vm0 = vcmask 261120   ;;  %s875_s0 = inlined_call_operand.vmem [shape: f32[16,32], index: 0, kind: input, shape index: {}]   ;;  %s876_s3 = inlined_call_operand.vmem [shape: f32[32,32], index: 3, kind: input, shape index: {}]   ;;  %s877_s1 = inlined_call_operand.vmem [shape: f32[1,32], index: 1, kind: input, shape index: {}]   ;;  %s878_s2 = inlined_call_operand.vmem [shape: f32[1,32], index: 2, kind: input, shape index: {}]   ;;  %s879_s4 = inlined_call_operand.vmem [shape: f32[16,32], index: 4, kind: output, shape index: {}]  }
   0x1   :  { %v21_v0 = vld [vmem:[%s875_s0] sm:$0xff]  ;;  %v22_v1 = vld [vmem:[%s875_s0 + $0x8] sm:$0xff]  ;;  %v75_v16 = vld [vmem:[%s876_s3 + $0x10] sm:$0xff] }
   0x2   :  { %v24_v2 = vsel %vm23_vm0, %v21_v0, 0.0  ;;  %v27_v3 = vsel %vm23_vm0, %v22_v1, 0.0  ;;  %v73_v14 = vld [vmem:[%s876_s3] sm:$0xff]  ;;  %v74_v15 = vld [vmem:[%s876_s3 + $0x8] sm:$0xff]  ;;  %v76_v19 = vld [vmem:[%s876_s3 + $0x18] sm:$0xff]  ;;  %v91_v20 = vand.u32 4294901760, %v75_v16 }
   0x3   :  { %25 = vadd.xlane.f32.xlu0 %v24_v2  ;;  %v85_v17 = vand.u32 4294901760, %v73_v14  ;;  %v88_v18 = vand.u32 4294901760, %v74_v15  ;;  %v94_v21 = vand.u32 4294901760, %v76_v19  ;;  %v618_v53 = vld [vmem:[%s877_s1] ss:$0 sm:$0xff] }
   0x4   :  { %v189_v31 = vsub.f32 %v75_v16, %v91_v20  ;;  %v619_v55 = vld [vmem:[%s878_s2] ss:$0 sm:$0xff] }
   0x5   :  { %v839_v22 = vpack.c.bf16 %v88_v18, %v85_v17  ;;  %v841_v23 = vpack.c.bf16 %v94_v21, %v91_v20  ;;  %v175_v24 = vsub.f32 %v73_v14, %v85_v17  ;;  %v182_v25 = vsub.f32 %v74_v15, %v88_v18 }
   0x6   :  { %v196_v32 = vsub.f32 %v76_v19, %v94_v21  ;;  %v190_v35 = vand.u32 4294901760, %v189_v31 }
   0x7   :  { %28 = vadd.xlane.f32.xlu0 %v27_v3  ;;  %747 = vmatprep.subr.bf16.mxu0 %v839_v22  ;;  %v176_v26 = vand.u32 4294901760, %v175_v24  ;;  %v183_v27 = vand.u32 4294901760, %v182_v25  ;;  %v738_v44 = vpack.c.bf16 %v182_v25, %v175_v24 }
   0x8   :  { %723 = vmatprep.subr.bf16.mxu1 %v839_v22  ;;  %749 = vmatpush3.bf16.msra.mxu0 %v839_v22  ;;  %v197_v36 = vand.u32 4294901760, %v196_v32  ;;  %v191_v39 = vsub.f32 %v189_v31, %v190_v35  ;;  %v742_v45 = vpack.c.bf16 %v196_v32, %v189_v31 }
   0x9   :  { %725 = vmatpush3.bf16.msra.mxu1 %v839_v22  ;;  %751 = vmatprep.subr.bf16.mxu0 %v841_v23  ;;  %v754_v28 = vpack.c.bf16 %v183_v27, %v176_v26  ;;  %v177_v29 = vsub.f32 %v175_v24, %v176_v26  ;;  %v184_v30 = vsub.f32 %v182_v25, %v183_v27 }
   0xa   :  { %727 = vmatprep.subr.bf16.mxu1 %v841_v23  ;;  %v758_v38 = vpack.c.bf16 %v197_v36, %v190_v35  ;;  %v198_v40 = vsub.f32 %v196_v32, %v197_v36  ;;  %v192_v41 = vand.u32 4294901760, %v191_v39 }
   0xb   :  { %v178_v33 = vand.u32 4294901760, %v177_v29  ;;  %v185_v34 = vand.u32 4294901760, %v184_v30 }
   0xc   :  { %753 = vmatpush3.bf16.msra.mxu0 %v841_v23  ;;  %v199_v42 = vand.u32 4294901760, %v198_v40 }
   0xd   :  { %729 = vmatpush3.bf16.msra.mxu1 %v841_v23  ;;  %755 = vmatprep.subr.bf16.mxu0 %v754_v28  ;;  %v730_v37 = vpack.c.bf16 %v185_v34, %v178_v33 }
   0xe   :  { %v734_v43 = vpack.c.bf16 %v199_v42, %v192_v41 }
   0xf   :  { %731 = vmatprep.subr.bf16.mxu1 %v730_v37 }
  0x90   :  { %v26_v4 = vpop.xlane.xlu0 %25 }
  0x91   :  { %v31_v5 = vmul.f32 0.03125, %v26_v4 }
  0x93   :  { %v817_v6 = vsub.f32 %v21_v0, %v31_v5 }
  0x94   :  { %v29_v7 = vpop.xlane.xlu0 %28 }
  0x95   :  { %v32_v8 = vmul.f32 0.03125, %v29_v7  ;;  %v35_v9 = vmul.f32 %v817_v6, %v817_v6 }
  0x97   :  { %v821_v10 = vsub.f32 %v22_v1, %v32_v8  ;;  %v37_v11 = vsel %vm23_vm0, %v35_v9, 0.0 }
  0x98   :  { %38 = vadd.xlane.f32.xlu1 %v37_v11 }
  0x99   :  { %v36_v12 = vmul.f32 %v821_v10, %v821_v10 }
  0x9b   :  { %v40_v13 = vsel %vm23_vm0, %v36_v12, 0.0 }
  0x9c   :  { %41 = vadd.xlane.f32.xlu1 %v40_v13 }
 0x125   :  { %v39_v46 = vpop.xlane.xlu1 %38 }
 0x126   :  { %v43_v47 = vmul.f32 0.03125, %v39_v46 }
 0x128   :  { %v45_v48 = vadd.f32 1e-05, %v43_v47 }
 0x129   :  { %v42_v49 = vpop.xlane.xlu1 %41 }
 0x12a   :  { %780 = vrsqrt.f32 %v45_v48  ;;  %v44_v50 = vmul.f32 0.03125, %v42_v49 }
 0x12c   :  { %v46_v51 = vadd.f32 1e-05, %v44_v50 }
 0x12e   :  { %782 = vrsqrt.f32 %v46_v51 }
 0x134   :  { %v781_v52 = vpop.eup %780 }
 0x135   :  { %v49_v54 = vmul.f32 %v781_v52, %v817_v6 }
 0x137   :  { %v58_v56 = vmul.f32 %v618_v53, %v49_v54 }
 0x138   :  { %v783_v57 = vpop.eup %782 }
 0x139   :  { %v67_v58 = vadd.f32 %v619_v55, %v58_v56  ;;  %v50_v59 = vmul.f32 %v783_v57, %v821_v10 }
 0x13b   :  { %69 = vst.msk [vmem:[#allocation2] sm:$0xff] %vm23_vm0, %v67_v58  ;;  %v59_v60 = vmul.f32 %v618_v53, %v50_v59 }
 0x13d   :  { %v68_v61 = vadd.f32 %v619_v55, %v59_v60 }
 0x13f   :  { %70 = vst.msk [vmem:[#allocation2 + $0x8] sm:$0xff] %vm23_vm0, %v68_v61 }
 0x142   :  { %v71_v62 = vld [vmem:[#allocation2] sm:$0xff] }
 0x143   :  { %v79_v63 = vsel %vm23_vm0, %v71_v62, 0 }
 0x144   :  { %v153_v0 = vand.u32 4294901760, %v79_v63 }
 0x146   :  { %v154_v1 = vsub.f32 %v79_v63, %v153_v0  ;;  %v72_v2 = vld [vmem:[#allocation2 + $0x8] sm:$0xff] }
 0x147   :  { %v82_v3 = vsel %vm23_vm0, %v72_v2, 0 }
 0x148   :  { %v155_v4 = vand.u32 4294901760, %v154_v1  ;;  %v163_v5 = vand.u32 4294901760, %v82_v3 }
 0x14a   :  { %697 = vmatprep.mubr.f32.mxu0 %v155_v4  ;;  %v156_v6 = vsub.f32 %v154_v1, %v155_v4  ;;  %v164_v7 = vsub.f32 %v82_v3, %v163_v5 }
 0x14c   :  { %v157_v8 = vand.u32 4294901760, %v156_v6  ;;  %v165_v9 = vand.u32 4294901760, %v164_v7 }
 0x14e   :  { %664 = vmatprep.mubr.f32.mxu1 %v157_v8  ;;  %698 = vmatmul.mubr.f32.vlgmr.msra.gmra.mrb[0].mxu0 %v165_v9  ;;  %v166_v10 = vsub.f32 %v164_v7, %v165_v9 }
 0x14f   :  { %757 = vmatpush3.bf16.msra.mxu0 %v754_v28  ;;  %708 = vmatprep.mubr.f32.mxu0 %v153_v0 }
 0x150   :  { %v167_v11 = vand.u32 4294901760, %v166_v10  ;;  %759 = vmatprep.subr.bf16.mxu0 %v758_v38 }
 0x152   :  { %665 = vmatmul.mubr.f32.vlgmr.msra.gmra.mrb[0].mxu1 %v167_v11 }
 0x153   :  { %733 = vmatpush3.bf16.msra.mxu1 %v730_v37  ;;  %675 = vmatprep.mubr.f32.mxu1 %v153_v0 }
 0x154   :  { %761 = vmatpush3.bf16.msra.mxu0 %v758_v38  ;;  %735 = vmatprep.subr.bf16.mxu1 %v734_v43 }
 0x155   :  { %763 = vmatprep.subr.bf16.mxu0 %v839_v22 }
 0x157   :  { %737 = vmatpush3.bf16.msra.mxu1 %v734_v43  ;;  %709 = vmatmul.mubr.f32.vlgmr.msra.gmra.mrb[0].mxu0 %v163_v5 }
 0x158   :  { %765 = vmatpush3.bf16.msra.mxu0 %v839_v22  ;;  %719 = vmatprep.mubr.f32.mxu0 %v153_v0 }
 0x159   :  { %739 = vmatprep.subr.bf16.mxu1 %v738_v44  ;;  %767 = vmatprep.subr.bf16.mxu0 %v841_v23 }
 0x15a   :  { %676 = vmatmul.mubr.f32.vlgmr.msra.gmra.mrb[0].mxu1 %v163_v5 }
 0x15b   :  { %741 = vmatpush3.bf16.msra.mxu1 %v738_v44  ;;  %686 = vmatprep.mubr.f32.mxu1 %v154_v1 }
 0x15c   :  { %769 = vmatpush3.bf16.msra.mxu0 %v841_v23  ;;  %743 = vmatprep.subr.bf16.mxu1 %v742_v45 }
 0x15f   :  { %745 = vmatpush3.bf16.msra.mxu1 %v742_v45  ;;  %720 = vmatmul.mubr.f32.vlgmr.msra.gmra.mrb[0].mxu0 %v163_v5 }
 0x162   :  { %687 = vmatmul.mubr.f32.vlgmr.msra.gmra.mrb[0].mxu1 %v164_v7 }
 0x232   :  { %v721_v12 = vpop.f32.mrb[0].mxu0 }
 0x233   :  { %v602_v13 = vpop.f32.mrb[1].mxu0 }
 0x235   :  { %v688_v14 = vpop.f32.mrb[0].mxu1 }
 0x236   :  { %v770_v15 = vadd.f32 %v721_v12, %v688_v14  ;;  %v346_v16 = vpop.f32.mrb[1].mxu1 }
 0x237   :  { %v771_v17 = vadd.f32 %v602_v13, %v346_v16 }
 0x238   :  { %613 = vst.msk [vmem:[%s879_s4 + $0x8] sm:$0xff] %vm23_vm0, %v770_v15 }
 0x239   :  { %612 = vst.msk [vmem:[%s879_s4] sm:$0xff] %vm23_vm0, %v771_v17 }

// kernel: _lambda_.16
= control target key start
LH: loop header
LB: loop body
LE: loop exit
PB: predicated region body
PF: predicated region fallthrough
CT: control target
= control target key end

     0   :  { %vm32_vm0 = vcmask 261120   ;;  %s1757_s0 = inlined_call_operand.vmem [shape: f32[16,32], index: 0, kind: input, shape index: {}]   ;;  %s1758_s5 = inlined_call_operand.vmem [shape: f32[32,128], index: 5, kind: input, shape index: {}]   ;;  %s1759_s3 = inlined_call_operand.vmem [shape: f32[32,128], index: 3, kind: input, shape index: {}]   ;;  %s1760_s1 = inlined_call_operand.vmem [shape: f32[1,32], index: 1, kind: input, shape index: {}]   ;;  %s1761_s2 = inlined_call_operand.vmem [shape: f32[1,32], index: 2, kind: input, shape index: {}]   ;;  %s1762_s6 = inlined_call_operand.vmem [shape: f32[1,128], index: 6, kind: input, shape index: {}]   ;;  %s1763_s4 = inlined_call_operand.vmem [shape: f32[1,128], index: 4, kind: input, shape index: {}]   ;;  %s1764_s7 = inlined_call_operand.vmem [shape: f32[16,128], index: 7, kind: output, shape index: {}]  }
   0x1   :  { %v30_v0 = vld [vmem:[%s1757_s0] sm:$0xff]  ;;  %v31_v1 = vld [vmem:[%s1757_s0 + $0x8] sm:$0xff]  ;;  %v630_v21 = vld [vmem:[%s1758_s5 + $0x10] sm:$0xff] }
   0x2   :  { %v33_v2 = vsel %vm32_vm0, %v30_v0, 0.0  ;;  %v36_v3 = vsel %vm32_vm0, %v31_v1, 0.0  ;;  %v628_v14 = vld [vmem:[%s1758_s5] sm:$0xff]  ;;  %v629_v15 = vld [vmem:[%s1758_s5 + $0x8] sm:$0xff]  ;;  %v631_v22 = vld [vmem:[%s1758_s5 + $0x18] sm:$0xff]  ;;  %v646_v24 = vand.u32 4294901760, %v630_v21 }
   0x3   :  { %34 = vadd.xlane.f32.xlu0 %v33_v2  ;;  %v82_v16 = vld [vmem:[%s1759_s3] sm:$0xff]  ;;  %v640_v17 = vand.u32 4294901760, %v628_v14  ;;  %v643_v18 = vand.u32 4294901760, %v629_v15  ;;  %v83_v19 = vld [vmem:[%s1759_s3 + $0x8] sm:$0xff]  ;;  %v649_v25 = vand.u32 4294901760, %v631_v22  ;;  %v84_v26 = vld [vmem:[%s1759_s3 + $0x10] sm:$0xff] }
   0x4   :  { %v101_v20 = vand.u32 4294901760, %v82_v16  ;;  %v104_v23 = vand.u32 4294901760, %v83_v19  ;;  %v85_v27 = vld [vmem:[%s1759_s3 + $0x18] sm:$0xff]  ;;  %v107_v29 = vand.u32 4294901760, %v84_v26  ;;  %v744_v46 = vsub.f32 %v630_v21, %v646_v24 }
   0x5   :  { %v1653_v28 = vpack.c.bf16 %v643_v18, %v640_v17  ;;  %v110_v30 = vand.u32 4294901760, %v85_v27  ;;  %v1657_v32 = vpack.c.bf16 %v649_v25, %v646_v24  ;;  %v730_v34 = vsub.f32 %v628_v14, %v640_v17 }
   0x6   :  { %v1655_v31 = vpack.c.bf16 %v104_v23, %v101_v20  ;;  %v737_v35 = vsub.f32 %v629_v15, %v643_v18  ;;  %v191_v36 = vsub.f32 %v82_v16, %v101_v20  ;;  %v198_v37 = vsub.f32 %v83_v19, %v104_v23  ;;  %v1229_v23 = vld [vmem:[%s1760_s1] ss:$0 sm:$0xff] }
   0x7   :  { %37 = vadd.xlane.f32.xlu0 %v36_v3  ;;  %1486 = vmatprep.subr.bf16.mxu1 %v1653_v28  ;;  %v1660_v33 = vpack.c.bf16 %v110_v30, %v107_v29  ;;  %v731_v38 = vand.u32 4294901760, %v730_v34  ;;  %v751_v47 = vsub.f32 %v631_v22, %v649_v25  ;;  %v205_v48 = vsub.f32 %v84_v26, %v107_v29  ;;  %v1230_v25 = vld [vmem:[%s1761_s2] ss:$0 sm:$0xff] }
   0x8   :  { %1438 = vmatprep.subr.bf16.mxu0 %v1655_v31  ;;  %1488 = vmatpush3.bf16.msra.mxu1 %v1653_v28  ;;  %v738_v39 = vand.u32 4294901760, %v737_v35  ;;  %v192_v40 = vand.u32 4294901760, %v191_v36  ;;  %v199_v41 = vand.u32 4294901760, %v198_v37  ;;  %v212_v49 = vsub.f32 %v85_v27, %v110_v30 }
   0x9   :  { %1440 = vmatpush3.bf16.msra.mxu0 %v1655_v31  ;;  %1490 = vmatprep.subr.bf16.mxu1 %v1657_v32  ;;  %v732_v42 = vsub.f32 %v730_v34, %v731_v38  ;;  %v745_v54 = vand.u32 4294901760, %v744_v46  ;;  %v752_v55 = vand.u32 4294901760, %v751_v47  ;;  %v206_v56 = vand.u32 4294901760, %v205_v48 }
   0xa   :  { %1442 = vmatprep.subr.bf16.mxu0 %v1660_v33  ;;  %v739_v43 = vsub.f32 %v737_v35, %v738_v39  ;;  %v193_v44 = vsub.f32 %v191_v36, %v192_v40  ;;  %v200_v45 = vsub.f32 %v198_v37, %v199_v41  ;;  %v213_v57 = vand.u32 4294901760, %v212_v49 }
   0xb   :  { %v733_v50 = vand.u32 4294901760, %v732_v42  ;;  %v746_v60 = vsub.f32 %v744_v46, %v745_v54  ;;  %v753_v61 = vsub.f32 %v751_v47, %v752_v55  ;;  %v207_v62 = vsub.f32 %v205_v48, %v206_v56 }
   0xc   :  { %1492 = vmatpush3.bf16.msra.mxu1 %v1657_v32  ;;  %v740_v51 = vand.u32 4294901760, %v739_v43  ;;  %v194_v52 = vand.u32 4294901760, %v193_v44  ;;  %v201_v53 = vand.u32 4294901760, %v200_v45  ;;  %v214_v63 = vsub.f32 %v212_v49, %v213_v57 }
   0xd   :  { %1444 = vmatpush3.bf16.msra.mxu0 %v1660_v33  ;;  %v208_v2 = vand.u32 4294901760, %v207_v62  ;;  %v1677_v14 = vpack.c.bf16 %v752_v55, %v745_v54  ;;  %v1679_v15 = vpack.c.bf16 %v213_v57, %v206_v56 }
   0xe   :  { %v1493_v58 = vpack.c.bf16 %v740_v51, %v733_v50  ;;  %v1445_v59 = vpack.c.bf16 %v201_v53, %v194_v52  ;;  %v215_v3 = vand.u32 4294901760, %v214_v63 }
  0x10   :  { %1494 = vmatprep.subr.bf16.mxu1 %v1493_v58  ;;  %1446 = vmatprep.subr.bf16.mxu0 %v1445_v59 }
  0x90   :  { %v35_v4 = vpop.xlane.xlu0 %34 }
  0x91   :  { %v40_v5 = vmul.f32 0.03125, %v35_v4 }
  0x93   :  { %v1619_v6 = vsub.f32 %v30_v0, %v40_v5  ;;  %v747_v0 = vand.u32 4294901760, %v746_v60  ;;  %v1449_v5 = vpack.c.bf16 %v215_v3, %v208_v2 }
  0x94   :  { %v38_v7 = vpop.xlane.xlu0 %37 }
  0x95   :  { %v41_v8 = vmul.f32 0.03125, %v38_v7  ;;  %v44_v9 = vmul.f32 %v1619_v6, %v1619_v6  ;;  %v1501_v7 = vpack.c.bf16 %v737_v35, %v730_v34 }
  0x97   :  { %v1623_v10 = vsub.f32 %v31_v1, %v41_v8  ;;  %v46_v11 = vsel %vm32_vm0, %v44_v9, 0.0  ;;  %v754_v1 = vand.u32 4294901760, %v753_v61  ;;  %v1453_v8 = vpack.c.bf16 %v198_v37, %v191_v36 }
  0x98   :  { %47 = vadd.xlane.f32.xlu1 %v46_v11  ;;  %v1669_v9 = vpack.c.bf16 %v751_v47, %v744_v46  ;;  %v1671_v11 = vpack.c.bf16 %v212_v49, %v205_v48 }
  0x99   :  { %v45_v12 = vmul.f32 %v1623_v10, %v1623_v10  ;;  %v1497_v4 = vpack.c.bf16 %v754_v1, %v747_v0 }
  0x9b   :  { %v49_v13 = vsel %vm32_vm0, %v45_v12, 0.0  ;;  %v1673_v12 = vpack.c.bf16 %v738_v39, %v731_v38 }
  0x9c   :  { %50 = vadd.xlane.f32.xlu1 %v49_v13  ;;  %v1675_v13 = vpack.c.bf16 %v199_v41, %v192_v40 }
 0x125   :  { %v48_v16 = vpop.xlane.xlu1 %47 }
 0x126   :  { %v52_v17 = vmul.f32 0.03125, %v48_v16 }
 0x128   :  { %v54_v18 = vadd.f32 1e-05, %v52_v17 }
 0x129   :  { %v51_v19 = vpop.xlane.xlu1 %50 }
 0x12a   :  { %1558 = vrsqrt.f32 %v54_v18  ;;  %v53_v20 = vmul.f32 0.03125, %v51_v19 }
 0x12c   :  { %v55_v21 = vadd.f32 1e-05, %v53_v20 }
 0x12e   :  { %1560 = vrsqrt.f32 %v55_v21 }
 0x134   :  { %v1559_v22 = vpop.eup %1558 }
 0x135   :  { %v58_v24 = vmul.f32 %v1559_v22, %v1619_v6 }
 0x137   :  { %v67_v26 = vmul.f32 %v1229_v23, %v58_v24 }
 0x138   :  { %v1561_v27 = vpop.eup %1560 }
 0x139   :  { %v76_v29 = vadd.f32 %v1230_v25, %v67_v26  ;;  %v59_v30 = vmul.f32 %v1561_v27, %v1623_v10 }
 0x13b   :  { %78 = vst.msk [vmem:[#allocation2] sm:$0xff] %vm32_vm0, %v76_v29  ;;  %v68_v34 = vmul.f32 %v1229_v23, %v59_v30  ;;  %v1570_v29 = vmov -1.0  }
 0x13d   :  { %v77_v35 = vadd.f32 %v1230_v25, %v68_v34 }
 0x13f   :  { %79 = vst.msk [vmem:[#allocation2 + $0x8] sm:$0xff] %vm32_vm0, %v77_v35 }
 0x142   :  { %v80_v36 = vld [vmem:[#allocation2] sm:$0xff] }
 0x143   :  { %v95_v37 = vsel %vm32_vm0, %v80_v36, 0 }
 0x144   :  { %v1692_v38 = vand.u32 4294901760, %v95_v37 }
 0x146   :  { %v170_v6 = vsub.f32 %v95_v37, %v1692_v38  ;;  %v81_v39 = vld [vmem:[#allocation2 + $0x8] sm:$0xff]  ;;  %v1231_v37 = vld [vmem:[%s1763_s4] ss:$0 sm:$0xff] }
 0x147   :  { %v98_v40 = vsel %vm32_vm0, %v81_v39, 0 }
 0x148   :  { %v171_v41 = vand.u32 4294901760, %v170_v6  ;;  %v1696_v42 = vand.u32 4294901760, %v98_v40 }
 0x14a   :  { %v172_v10 = vsub.f32 %v170_v6, %v171_v41  ;;  %v180_v43 = vsub.f32 %v98_v40, %v1696_v42 }
 0x14c   :  { %v173_v44 = vand.u32 4294901760, %v172_v10  ;;  %v181_v45 = vand.u32 4294901760, %v180_v43 }
 0x14e   :  { %1313 = vmatprep.mubr.f32.mxu0 %v173_v44  ;;  %1379 = vmatprep.mubr.f32.mxu1 %v173_v44  ;;  %v182_v46 = vsub.f32 %v180_v43, %v181_v45 }
 0x150   :  { %v183_v47 = vand.u32 4294901760, %v182_v46 }
 0x152   :  { %1314 = vmatmul.mubr.f32.vlgmr.msra.gmra.mrb[0].mxu0 %v183_v47  ;;  %1380 = vmatmul.mubr.f32.vlgmr.msra.gmra.mrb[0].mxu1 %v183_v47 }
 0x153   :  { %1496 = vmatpush3.bf16.msra.mxu1 %v1493_v58  ;;  %1448 = vmatpush3.bf16.msra.mxu0 %v1445_v59 }
 0x154   :  { %1324 = vmatprep.mubr.f32.mxu0 %v1692_v38  ;;  %1390 = vmatprep.mubr.f32.mxu1 %v1692_v38 }
 0x155   :  { %1498 = vmatprep.subr.bf16.mxu1 %v1497_v4  ;;  %1450 = vmatprep.subr.bf16.mxu0 %v1449_v5 }
 0x157   :  { %1500 = vmatpush3.bf16.msra.mxu1 %v1497_v4  ;;  %1452 = vmatpush3.bf16.msra.mxu0 %v1449_v5 }
 0x158   :  { %1502 = vmatprep.subr.bf16.mxu1 %v1501_v7  ;;  %1454 = vmatprep.subr.bf16.mxu0 %v1453_v8 }
 0x15a   :  { %1325 = vmatmul.mubr.f32.vlgmr.msra.gmra.mrb[0].mxu0 %v1696_v42  ;;  %1391 = vmatmul.mubr.f32.vlgmr.msra.gmra.mrb[0].mxu1 %v1696_v42 }
 0x15b   :  { %1504 = vmatpush3.bf16.msra.mxu1 %v1501_v7  ;;  %1456 = vmatpush3.bf16.msra.mxu0 %v1453_v8 }
 0x15c   :  { %1335 = vmatprep.mubr.f32.mxu0 %v170_v6  ;;  %1401 = vmatprep.mubr.f32.mxu1 %v170_v6 }
 0x15d   :  { %1506 = vmatprep.subr.bf16.mxu1 %v1669_v9  ;;  %1458 = vmatprep.subr.bf16.mxu0 %v1671_v11 }
 0x15f   :  { %1508 = vmatpush3.bf16.msra.mxu1 %v1669_v9  ;;  %1460 = vmatpush3.bf16.msra.mxu0 %v1671_v11 }
 0x160   :  { %1510 = vmatprep.subr.bf16.mxu1 %v1653_v28  ;;  %1462 = vmatprep.subr.bf16.mxu0 %v1655_v31 }
 0x162   :  { %1336 = vmatmul.mubr.f32.vlgmr.msra.gmra.mrb[0].mxu0 %v180_v43  ;;  %1402 = vmatmul.mubr.f32.vlgmr.msra.gmra.mrb[0].mxu1 %v180_v43 }
 0x163   :  { %1512 = vmatpush3.bf16.msra.mxu1 %v1653_v28  ;;  %1464 = vmatpush3.bf16.msra.mxu0 %v1655_v31 }
 0x164   :  { %1346 = vmatprep.mubr.f32.mxu0 %v171_v41  ;;  %1412 = vmatprep.mubr.f32.mxu1 %v171_v41 }
 0x165   :  { %1514 = vmatprep.subr.bf16.mxu1 %v1657_v32  ;;  %1466 = vmatprep.subr.bf16.mxu0 %v1660_v33 }
 0x167   :  { %1516 = vmatpush3.bf16.msra.mxu1 %v1657_v32  ;;  %1468 = vmatpush3.bf16.msra.mxu0 %v1660_v33 }
 0x168   :  { %1518 = vmatprep.subr.bf16.mxu1 %v1673_v12  ;;  %1470 = vmatprep.subr.bf16.mxu0 %v1675_v13 }
 0x16a   :  { %1347 = vmatmul.mubr.f32.vlgmr.msra.gmra.mrb[0].mxu0 %v181_v45  ;;  %1413 = vmatmul.mubr.f32.vlgmr.msra.gmra.mrb[0].mxu1 %v181_v45 }
 0x16b   :  { %1520 = vmatpush3.bf16.msra.mxu1 %v1673_v12  ;;  %1472 = vmatpush3.bf16.msra.mxu0 %v1675_v13 }
 0x16c   :  { %1357 = vmatprep.mubr.f32.mxu0 %v1692_v38  ;;  %1423 = vmatprep.mubr.f32.mxu1 %v1692_v38 }
 0x16d   :  { %1522 = vmatprep.subr.bf16.mxu1 %v1677_v14  ;;  %1474 = vmatprep.subr.bf16.mxu0 %v1679_v15 }
 0x16f   :  { %1524 = vmatpush3.bf16.msra.mxu1 %v1677_v14  ;;  %1476 = vmatpush3.bf16.msra.mxu0 %v1679_v15 }
 0x170   :  { %1526 = vmatprep.subr.bf16.mxu1 %v1653_v28  ;;  %1478 = vmatprep.subr.bf16.mxu0 %v1655_v31 }
 0x172   :  { %1358 = vmatmul.mubr.f32.vlgmr.msra.gmra.mrb[0].mxu0 %v1696_v42  ;;  %1424 = vmatmul.mubr.f32.vlgmr.msra.gmra.mrb[0].mxu1 %v1696_v42 }
 0x173   :  { %1528 = vmatpush3.bf16.msra.mxu1 %v1653_v28  ;;  %1480 = vmatpush3.bf16.msra.mxu0 %v1655_v31  ;;  %v1232_v28 = vld [vmem:[%s1762_s6] ss:$0 sm:$0xff] }
 0x174   :  { %1368 = vmatprep.mubr.f32.mxu0 %v1692_v38  ;;  %1434 = vmatprep.mubr.f32.mxu1 %v1692_v38 }
 0x175   :  { %1530 = vmatprep.subr.bf16.mxu1 %v1657_v32  ;;  %1482 = vmatprep.subr.bf16.mxu0 %v1660_v33 }
 0x177   :  { %1532 = vmatpush3.bf16.msra.mxu1 %v1657_v32  ;;  %1484 = vmatpush3.bf16.msra.mxu0 %v1660_v33 }
 0x17a   :  { %1369 = vmatmul.mubr.f32.vlgmr.msra.gmra.mrb[0].mxu0 %v1696_v42  ;;  %1435 = vmatmul.mubr.f32.vlgmr.msra.gmra.mrb[0].mxu1 %v1696_v42 }
 0x24d   :  { %v1742_v31 = vpop.f32.mrb[0].mxu0  ;;  %v1436_v48 = vpop.f32.mrb[0].mxu1 }
 0x24e   :  { %v1535_v49 = vadd.f32 %v1436_v48, %v1232_v28  ;;  %v1744_v50 = vpop.f32.mrb[1].mxu0  ;;  %v1157_v51 = vpop.f32.mrb[1].mxu1  ;;  %v1533_v42 = vadd.f32 %v1742_v31, %v1231_v37 }
 0x24f   :  { %v1536_v52 = vadd.f32 %v1232_v28, %v1157_v51  ;;  %v1534_v43 = vadd.f32 %v1231_v37, %v1744_v50 }
 0x250   :  { %v1170_v53 = vmul.f32 0.70710677, %v1535_v49  ;;  %v1168_v6 = vmul.f32 0.5, %v1535_v49 }
 0x251   :  { %v1169_v32 = vmul.f32 0.70710677, %v1536_v52  ;;  %v1167_v40 = vmul.f32 0.5, %v1536_v52 }
 0x252   :  { %v1176_v54 = vand.u32 2147483647, %v1170_v53  ;;  %vm1172_vm1 = vcmp.ge.f32.partialorder %v1170_v53, 0.0 }
 0x253   :  { %v1175_v33 = vand.u32 2147483647, %v1169_v32  ;;  %vm1171_vm2 = vcmp.ge.f32.partialorder %v1169_v32, 0.0  ;;  %v1174_v30 = vsel %vm1172_vm1, 1.0, %v1570_v29 }
 0x254   :  { %v1178_v55 = vmul.f32 0.3275911, %v1176_v54  ;;  %v1204_v59 = vsub.f32 0.0, %v1176_v54  ;;  %v1173_v36 = vsel %vm1171_vm2, 1.0, %v1570_v29 }
 0x255   :  { %v1177_v56 = vmul.f32 0.3275911, %v1175_v33  ;;  %v1203_v60 = vsub.f32 0.0, %v1175_v33 }
 0x256   :  { %v1180_v57 = vadd.f32 1.0, %v1178_v55  ;;  %v1206_v62 = vmul.f32 %v1204_v59, %v1176_v54 }
 0x257   :  { %v1179_v58 = vadd.f32 1.0, %v1177_v56  ;;  %v1205_v1 = vmul.f32 %v1203_v60, %v1175_v33 }
 0x258   :  { %1562 = vrcp.f32 %v1180_v57  ;;  %v1209_v4 = vmul.f32 1.442695, %v1206_v62 }
 0x259   :  { %1564 = vrcp.f32 %v1179_v58  ;;  %v1207_v8 = vmul.f32 1.442695, %v1205_v1 }
 0x25a   :  { %1566 = vpow2.f32 %v1209_v4 }
 0x25b   :  { %1568 = vpow2.f32 %v1207_v8 }
 0x262   :  { %v1563_v61 = vpop.eup %1562 }
 0x263   :  { %v1565_v63 = vpop.eup %1564  ;;  %v1186_v0 = vmul.f32 1.0614054, %v1563_v61 }
 0x264   :  { %v1185_v2 = vmul.f32 1.0614054, %v1565_v63  ;;  %v1567_v22 = vpop.eup %1566 }
 0x265   :  { %v1188_v3 = vadd.f32 -1.4531521, %v1186_v0  ;;  %v1569_v24 = vpop.eup %1568 }
 0x266   :  { %v1187_v5 = vadd.f32 -1.4531521, %v1185_v2 }
 0x267   :  { %v1190_v7 = vmul.f32 %v1563_v61, %v1188_v3 }
 0x268   :  { %v1189_v9 = vmul.f32 %v1565_v63, %v1187_v5 }
 0x269   :  { %v1192_v11 = vadd.f32 1.4214138, %v1190_v7 }
 0x26a   :  { %v1191_v12 = vadd.f32 1.4214138, %v1189_v9 }
 0x26b   :  { %v1194_v13 = vmul.f32 %v1563_v61, %v1192_v11 }
 0x26c   :  { %v1193_v14 = vmul.f32 %v1565_v63, %v1191_v12 }
 0x26d   :  { %v1196_v15 = vadd.f32 -0.28449672, %v1194_v13 }
 0x26e   :  { %v1195_v16 = vadd.f32 -0.28449672, %v1193_v14 }
 0x26f   :  { %v1198_v17 = vmul.f32 %v1563_v61, %v1196_v15 }
 0x270   :  { %v1197_v18 = vmul.f32 %v1565_v63, %v1195_v16 }
 0x271   :  { %v1200_v19 = vadd.f32 0.2548296, %v1198_v17 }
 0x272   :  { %v1199_v20 = vadd.f32 0.2548296, %v1197_v18 }
 0x273   :  { %v1202_v21 = vmul.f32 %v1563_v61, %v1200_v19 }
 0x274   :  { %v1201_v23 = vmul.f32 %v1565_v63, %v1199_v20 }
 0x275   :  { %v1212_v25 = vmul.f32 %v1567_v22, %v1202_v21 }
 0x276   :  { %v1211_v26 = vmul.f32 %v1569_v24, %v1201_v23 }
 0x277   :  { %v1214_v27 = vsub.f32 1.0, %v1212_v25 }
 0x278   :  { %v1213_v34 = vsub.f32 1.0, %v1211_v26 }
 0x279   :  { %v1216_v35 = vmul.f32 %v1214_v27, %v1174_v30 }
 0x27a   :  { %v1215_v38 = vmul.f32 %v1213_v34, %v1173_v36 }
 0x27b   :  { %v1218_v39 = vadd.f32 1.0, %v1216_v35 }
 0x27c   :  { %v1217_v41 = vadd.f32 1.0, %v1215_v38 }
 0x27d   :  { %v1220_v10 = vmul.f32 %v1218_v39, %v1168_v6 }
 0x27e   :  { %v1219_v44 = vmul.f32 %v1217_v41, %v1167_v40 }
 0x27f   :  { %v1222_v45 = vmul.f32 %v1533_v42, %v1220_v10 }
 0x280   :  { %v1221_v46 = vmul.f32 %v1534_v43, %v1219_v44 }
 0x281   :  { %1224 = vst [vmem:[%s1764_s7 + $0x8] sm:$0xff] %v1222_v45 }
 0x282   :  { %1223 = vst [vmem:[%s1764_s7] sm:$0xff] %v1221_v46 }

// kernel: _lambda_.10
= control target key start
LH: loop header
LB: loop body
LE: loop exit
PB: predicated region body
PF: predicated region fallthrough
CT: control target
= control target key end

     0   :  { %s4779_s12 = smov 0   ;;  %s4781_s13 = smov 0   ;;  %s5098_s0 = inlined_call_operand.vmem [shape: f32[2,8,32], index: 0, kind: input, shape index: {}]   ;;  %s5099_s1 = inlined_call_operand.vmem [shape: f32[2,8,32], index: 1, kind: input, shape index: {}]   ;;  %s5100_s2 = inlined_call_operand.vmem [shape: f32[2,8,32], index: 2, kind: input, shape index: {}]   ;;  %s5101_s3 = inlined_call_operand.vmem [shape: f32[2,8,32], index: 3, kind: output, shape index: {}]  }
   0x1   :  { %s4783_s14 = smov 0  }
   0x2 LB: > { %s39_s15 = sadd.s32 1, %s4740_s13  ;;  %p4233_p0 = scmp.ge.s32.totalorder %s4744_s14, 1  ;;  %s4744_s14 = sphi %s4783_s14, %s13_s14   ;;  %s4740_s13 = sphi %s4781_s13, %s5103_s13   ;;  %s4736_s12 = sphi %s4779_s12, %s5102_s12  }
   0x3   : > { %p41_p1 = scmp.ge.s32.totalorder %s39_s15, 2  ;;  %p214_p2 = scmp.lt.s32.totalorder %s4744_s14, 3 }
   0x5   : > { %s5105_s15 = smov (%p41_p1, %s39_s15), 0  ;;  %p215_p3 = pnand %p4233_p0, %p214_p2 }
   0x6   : > { %p268_p4 = scmp.lt.s32.totalorder (!%p215_p3), %s4736_s12, 1  ;;  %v4746_v0 = vmov (!%p215_p3), 0.0   ;;  %vm4747_vm0 = vmmov (!%p215_p3), 0   ;;  %vm322_vm1 = vcmask (!%p215_p3), 64512   ;;  %vm312_vm2 = vcmask (!%p215_p3), 31744   ;;  %s4750_s23 = smov (!%p215_p3), 120  }
   0x7   : > { %218 = sbr.rel (%p215_p3) target bundleno = 1741 (0x6cd), region = 32  ;;  %4336 = vmatprep.subr.mxu0 (!%p215_p3), %v4746_v0  ;;  %4338 = vmatprep.mubr.msk.f32.mxu0 (!%p215_p3), %vm4747_vm0, %v4746_v0  ;;  %v4748_v15 = vmov (!%p215_p3), -inf   ;;  %314 = vst.msk [vmem:[#allocation3] sm:$0xff] (!%p215_p3), %vm312_vm2, %v4746_v0  ;;  %v4749_v19 = vmov (!%p215_p3), 0   ;;  %s4751_s24 = smov (!%p215_p3), 112   ;;  %vm4060_vm3 = vcmask (!%p215_p3), 7168  }
   0x8   : > { %4366 = vmatprep.subr.mxu1 (!%p215_p3), %v4746_v0  ;;  %4368 = vmatprep.mubr.msk.f32.mxu1 (!%p215_p3), %vm4747_vm0, %v4746_v0  ;;  %313 = vst.msk [vmem:[#allocation2] sm:$0xff] (!%p215_p3), %vm312_vm2, %v4748_v15  ;;  %s4752_s28 = smov (!%p215_p3), 104   ;;  %vm4062_vm4 = vcmask (!%p215_p3), 15360   ;;  %vm4064_vm5 = vcmask (!%p215_p3), 23552   ;;  %vm315_vm6 = vcmask (!%p215_p3), 261120   ;;  %s4756_s29 = smov (!%p215_p3), 8  }
   0x9   : > { %4693 = vset.pattern.permute.xlu0 (!%p215_p3), %v4749_v19  ;;  %316 = vst.msk [vmem:[#allocation4] sm:$0xff] (!%p215_p3), %vm315_vm6, %v4746_v0  ;;  %s4757_s30 = smov (!%p215_p3), 16   ;;  %s4758_s4 = smov (!%p215_p3), 24   ;;  %vm4048_vm7 = vcmask (!%p215_p3), 130048   ;;  %vm4050_vm8 = vcmask (!%p215_p3), 195584  }
   0xe   : > { %s5107_s12 = smov (!%p268_p4, %s4736_s12), 1 }
   0xf   : > { %s4803_s16 = sshll.u32 %s5107_s12, 3  ;;  %v4847_v20 = vld [vmem:[#allocation2] sm:$0xff] }
  0x10   : > { %s287_s19 = scalar_lea.vmem %s5099_s1, %s4803_s16  ;;  %s277_s22 = scalar_lea.vmem %s5098_s0, %s4803_s16 }
  0x11   : > { %v4813_v1 = vld [vmem:[%s287_s19] sm:$0xff]  ;;  %s297_s27 = scalar_lea.vmem %s5100_s2, %s4803_s16  ;;  %s307_s7 = scalar_lea.vmem %s5101_s3, %s4803_s16 }
  0x12   : > { %v317_v2 = vld [vmem:[%s277_s22] sm:$0xff]  ;;  %v327_v3 = vsel %vm322_vm1, %v4813_v1, 0 }
  0x13   : > { %v324_v4 = vsel %vm322_vm1, %v317_v2, 0  ;;  %v330_v5 = vand.u32 4294901760, %v327_v3  ;;  %1247 = vrot.lane.b32.xlu1 %v317_v2, %s4750_s23  ;;  %v4857_v23 = vld [vmem:[%s297_s27] sm:$0xff] }
  0x14   : > { %v395_v6 = vand.u32 4294901760, %v324_v4  ;;  %v797_v24 = vand.u32 4294901760, %v4857_v23 }
  0x15   : > { %4337 = vmatpush3.xpose.msra.mxu0 %v330_v5  ;;  %v407_v7 = vsub.f32 %v327_v3, %v330_v5 }
  0x16   : > { %v396_v8 = vsub.f32 %v324_v4, %v395_v6  ;;  %4341 = vmatprep.subr.mxu0 %v4746_v0  ;;  %4367 = vmatpush3.msra.mxu1 %v797_v24  ;;  %v874_v27 = vsub.f32 %v4857_v23, %v797_v24 }
  0x17   : > { %v408_v10 = vand.u32 4294901760, %v407_v7  ;;  %1249 = vrot.lane.b32.xlu1 %v4813_v1, %s4750_s23  ;;  %4371 = vmatprep.subr.mxu1 %v4746_v0 }
  0x18   : > { %v397_v9 = vand.u32 4294901760, %v396_v8  ;;  %v875_v30 = vand.u32 4294901760, %v874_v27 }
  0x19   : > { %v409_v12 = vsub.f32 %v407_v7, %v408_v10 }
  0x1a   : > { %v398_v11 = vsub.f32 %v396_v8, %v397_v9  ;;  %v876_v33 = vsub.f32 %v874_v27, %v875_v30 }
  0x1b   : > { %v410_v14 = vand.u32 4294901760, %v409_v12  ;;  %2177 = vrot.lane.b32.xlu1 %v317_v2, %s4751_s24 }
  0x1c   : > { %v399_v13 = vand.u32 4294901760, %v398_v11  ;;  %v877_v36 = vand.u32 4294901760, %v876_v33 }
  0x1e   : > { %4339 = vmatmul.mubr.f32.vlgmr.msra.gmra.mrb[0].mxu0 %v399_v13 }
  0x1f   : > { %4342 = vmatpush3.xpose.msra.mxu0 %v410_v14  ;;  %4343 = vmatprep.mubr.msk.f32.mxu0 %vm4747_vm0, %v4746_v0 }
  0x20   : > { %4346 = vmatprep.subr.mxu0 %v4746_v0  ;;  %2179 = vrot.lane.b32.xlu1 %v4813_v1, %s4751_s24 }
  0x24   : > { %3106 = vrot.lane.b32.xlu1 %v317_v2, %s4752_s28 }
  0x26   : > { %4344 = vmatmul.mubr.f32.vlgmr.msra.gmra.mrb[0].mxu0 %v395_v6 }
  0x27   : > { %4347 = vmatpush3.xpose.msra.mxu0 %v407_v7  ;;  %4348 = vmatprep.mubr.msk.f32.mxu0 %vm4747_vm0, %v4746_v0 }
  0x28   : > { %4351 = vmatprep.subr.mxu0 %v4746_v0  ;;  %3108 = vrot.lane.b32.xlu1 %v4813_v1, %s4752_s28 }
  0x2e   : > { %4349 = vmatmul.mubr.f32.vlgmr.msra.gmra.mrb[0].mxu0 %v396_v8 }
  0x2f   : > { %4352 = vmatpush3.xpose.msra.mxu0 %v330_v5  ;;  %4353 = vmatprep.mubr.msk.f32.mxu0 %vm4747_vm0, %v4746_v0 }
  0x30   : > { %4356 = vmatprep.subr.mxu0 %v4746_v0 }
  0x36   : > { %4354 = vmatmul.mubr.f32.vlgmr.msra.gmra.mrb[0].mxu0 %v397_v9 }
  0x37   : > { %4357 = vmatpush3.xpose.msra.mxu0 %v408_v10  ;;  %4358 = vmatprep.mubr.msk.f32.mxu0 %vm4747_vm0, %v4746_v0 }
  0x38   : > { %4361 = vmatprep.subr.mxu0 %v4746_v0 }
  0x3e   : > { %4359 = vmatmul.mubr.f32.vlgmr.msra.gmra.mrb[0].mxu0 %v395_v6 }
  0x3f   : > { %4362 = vmatpush3.xpose.msra.mxu0 %v330_v5  ;;  %4363 = vmatprep.mubr.msk.f32.mxu0 %vm4747_vm0, %v4746_v0 }
  0x40   : > { %4426 = vmatprep.subr.mxu0 %v4746_v0 }
  0x46   : > { %4364 = vmatmul.mubr.f32.vlgmr.msra.gmra.mrb[0].mxu0 %v395_v6 }
  0x47   : > { %4428 = vmatprep.mubr.msk.f32.mxu0 %vm4747_vm0, %v4746_v0 }
  0x85   : > { %v1248_v38 = vpop.permute.xlu1 %1247 }
  0x86   : > { %v1251_v41 = vsel %vm322_vm1, %v1248_v38, 0 }
  0x87   : > { %v1321_v43 = vand.u32 4294901760, %v1251_v41 }
  0x89   : > { %v1250_v39 = vpop.permute.xlu1 %1249  ;;  %v1322_v45 = vsub.f32 %v1251_v41, %v1321_v43 }
  0x8a   : > { %v1253_v40 = vsel %vm322_vm1, %v1250_v39, 0 }
  0x8b   : > { %v1256_v42 = vand.u32 4294901760, %v1253_v40  ;;  %v1323_v47 = vand.u32 4294901760, %v1322_v45 }
  0x8d   : > { %v1333_v44 = vsub.f32 %v1253_v40, %v1256_v42  ;;  %v1324_v49 = vsub.f32 %v1322_v45, %v1323_v47  ;;  %v2178_v52 = vpop.permute.xlu1 %2177 }
  0x8e   : > { %v2181_v54 = vsel %vm322_vm1, %v2178_v52, 0 }
  0x8f   : > { %v1334_v46 = vand.u32 4294901760, %v1333_v44  ;;  %v1325_v51 = vand.u32 4294901760, %v1324_v49  ;;  %v2251_v56 = vand.u32 4294901760, %v2181_v54 }
  0x91   : > { %v1335_v48 = vsub.f32 %v1333_v44, %v1334_v46  ;;  %v2252_v58 = vsub.f32 %v2181_v54, %v2251_v56 }
  0x92   : > { %v2180_v53 = vpop.permute.xlu1 %2179 }
  0x93   : > { %v1336_v50 = vand.u32 4294901760, %v1335_v48  ;;  %v2183_v55 = vsel %vm322_vm1, %v2180_v53, 0  ;;  %v2253_v60 = vand.u32 4294901760, %v2252_v58 }
  0x94   : > { %v2186_v57 = vand.u32 4294901760, %v2183_v55 }
  0x95   : > { %v2254_v62 = vsub.f32 %v2252_v58, %v2253_v60 }
  0x96   : > { %v2263_v59 = vsub.f32 %v2183_v55, %v2186_v57  ;;  %v3107_v3 = vpop.permute.xlu1 %3106 }
  0x97   : > { %v2255_v1 = vand.u32 4294901760, %v2254_v62  ;;  %v3110_v5 = vsel %vm322_vm1, %v3107_v3, 0 }
  0x98   : > { %v2264_v61 = vand.u32 4294901760, %v2263_v59  ;;  %v3180_v7 = vand.u32 4294901760, %v3110_v5 }
  0x9a   : > { %v2265_v63 = vsub.f32 %v2263_v59, %v2264_v61  ;;  %v3109_v4 = vpop.permute.xlu1 %3108  ;;  %v3181_v9 = vsub.f32 %v3110_v5, %v3180_v7 }
  0x9b   : > { %v3112_v6 = vsel %vm322_vm1, %v3109_v4, 0 }
  0x9c   : > { %v2266_v2 = vand.u32 4294901760, %v2265_v63  ;;  %v3115_v8 = vand.u32 4294901760, %v3112_v6  ;;  %v3182_v11 = vand.u32 4294901760, %v3181_v9 }
  0x9e   : > { %v3192_v10 = vsub.f32 %v3112_v6, %v3115_v8  ;;  %v3183_v13 = vsub.f32 %v3181_v9, %v3182_v11 }
  0xa0   : > { %v3193_v12 = vand.u32 4294901760, %v3192_v10  ;;  %v3184_v15 = vand.u32 4294901760, %v3183_v13 }
  0xa2   : > { %v3194_v14 = vsub.f32 %v3192_v10, %v3193_v12 }
 0x119   : > { %v771_v16 = vpop.f32.mrb[0].mxu0 }
 0x11a   : > { %v4365_v17 = vpop.f32.mrb[1].mxu0  ;;  %v775_v18 = vsel %vm322_vm1, %v771_v16, -inf }
 0x11b   : > { %776 = vmax.xlane.f32.xlu0 %v775_v18 }
 0x1a8   : > { %v777_v21 = vpop.xlane.xlu0 %776 }
 0x1a9   : > { %v4850_v22 = vmax.f32 %v4847_v20, %v777_v21 }
 0x1ab   : > { %783 = vperm.xlu0 %4693, %v4850_v22   ;;  %v779_v38 = vsub.f32 %v4847_v20, %v4850_v22 }
 0x22a   : > { %v784_v25 = vpop.permute.xlu0 %783 }
 0x22b   : > { %v786_v26 = vsub.f32 %v771_v16, %v784_v25  ;;  %v3195_v16 = vand.u32 4294901760, %v3194_v14 }
 0x22d   : > { %4704 = vpow2.f32 %v786_v26  ;;  %v4753_v26 = vmov 1  }
 0x22e   : > { %4694 = vset.pattern.permute.xlu1 %v4753_v26  ;;  %4706 = vpow2.f32 %v779_v38 }
 0x237   : > { %v4865_v28 = vpop.eup %4704 }
 0x238   : > { %v794_v29 = vsel %vm322_vm1, %v4865_v28, 0 }
 0x239   : > { %v862_v31 = vand.u32 4294901760, %v794_v29 }
 0x23b   : > { %v863_v32 = vsub.f32 %v794_v29, %v862_v31 }
 0x23d   : > { %v864_v34 = vand.u32 4294901760, %v863_v32 }
 0x23f   : > { %v865_v35 = vsub.f32 %v863_v32, %v864_v34 }
 0x241   : > { %v866_v37 = vand.u32 4294901760, %v865_v35 }
 0x243   : > { %4369 = vmatmul.mubr.f32.vlgmr.msra.gmra.mrb[0].mxu1 %v866_v37 }
 0x244   : > { %4372 = vmatpush3.msra.mxu1 %v877_v36  ;;  %4373 = vmatprep.mubr.msk.f32.mxu1 %vm4747_vm0, %v4746_v0 }
 0x245   : > { %4376 = vmatprep.subr.mxu1 %v4746_v0 }
 0x24b   : > { %4374 = vmatmul.mubr.f32.vlgmr.msra.gmra.mrb[0].mxu1 %v862_v31 }
 0x24c   : > { %4377 = vmatpush3.msra.mxu1 %v874_v27  ;;  %4378 = vmatprep.mubr.msk.f32.mxu1 %vm4747_vm0, %v4746_v0 }
 0x24d   : > { %4381 = vmatprep.subr.mxu1 %v4746_v0 }
 0x253   : > { %4379 = vmatmul.mubr.f32.vlgmr.msra.gmra.mrb[0].mxu1 %v863_v32 }
 0x254   : > { %4382 = vmatpush3.msra.mxu1 %v797_v24  ;;  %4383 = vmatprep.mubr.msk.f32.mxu1 %vm4747_vm0, %v4746_v0 }
 0x255   : > { %4386 = vmatprep.subr.mxu1 %v4746_v0 }
 0x25b   : > { %4384 = vmatmul.mubr.f32.vlgmr.msra.gmra.mrb[0].mxu1 %v864_v34 }
 0x25c   : > { %4387 = vmatpush3.msra.mxu1 %v875_v30  ;;  %4388 = vmatprep.mubr.msk.f32.mxu1 %vm4747_vm0, %v4746_v0 }
 0x25d   : > { %4391 = vmatprep.subr.mxu1 %v4746_v0 }
 0x263   : > { %4389 = vmatmul.mubr.f32.vlgmr.msra.gmra.mrb[0].mxu1 %v862_v31 }
 0x264   : > { %4392 = vmatpush3.msra.mxu1 %v797_v24  ;;  %4393 = vmatprep.mubr.msk.f32.mxu1 %vm4747_vm0, %v4746_v0 }
 0x265   : > { %4396 = vmatprep.subr.mxu1 %v4746_v0 }
 0x26b   : > { %4394 = vmatmul.mubr.f32.vlgmr.msra.gmra.mrb[0].mxu1 %v862_v31  ;;  %v4754_v31 = vmov 2  }
 0x26c   : > { %4397 = vmatpush3.xpose.msra.mxu1 %v1256_v42  ;;  %4398 = vmatprep.mubr.msk.f32.mxu1 %vm4747_vm0, %v4746_v0 }
 0x26d   : > { %4401 = vmatprep.subr.mxu1 %v4746_v0  ;;  %4695 = vset.pattern.permute.xlu0 %v4754_v31 }
 0x26f   : > { %4399 = vmatmul.mubr.f32.vlgmr.msra.gmra.mrb[2].mxu1 %v1325_v51 }
 0x270   : > { %4402 = vmatpush3.xpose.msra.mxu1 %v1336_v50  ;;  %4403 = vmatprep.mubr.msk.f32.mxu1 %vm4747_vm0, %v4746_v0 }
 0x271   : > { %4406 = vmatprep.subr.mxu1 %v4746_v0 }
 0x277   : > { %4404 = vmatmul.mubr.f32.vlgmr.msra.gmra.mrb[2].mxu1 %v1321_v43 }
 0x278   : > { %4407 = vmatpush3.xpose.msra.mxu1 %v1333_v44  ;;  %4408 = vmatprep.mubr.msk.f32.mxu1 %vm4747_vm0, %v4746_v0  ;;  %v4755_v44 = vmov 3  }
 0x279   : > { %4411 = vmatprep.subr.mxu1 %v4746_v0 }
 0x27f   : > { %4409 = vmatmul.mubr.f32.vlgmr.msra.gmra.mrb[2].mxu1 %v1322_v45 }
 0x280   : > { %4412 = vmatpush3.xpose.msra.mxu1 %v1256_v42  ;;  %4413 = vmatprep.mubr.msk.f32.mxu1 %vm4747_vm0, %v4746_v0 }
 0x281   : > { %4416 = vmatprep.subr.mxu1 %v4746_v0 }
 0x287   : > { %4414 = vmatmul.mubr.f32.vlgmr.msra.gmra.mrb[2].mxu1 %v1323_v47 }
 0x288   : > { %4417 = vmatpush3.xpose.msra.mxu1 %v1334_v46  ;;  %4418 = vmatprep.mubr.msk.f32.mxu1 %vm4747_vm0, %v4746_v0 }
 0x289   : > { %4421 = vmatprep.subr.mxu1 %v4746_v0 }
 0x28f   : > { %4419 = vmatmul.mubr.f32.vlgmr.msra.gmra.mrb[2].mxu1 %v1321_v43 }
 0x290   : > { %4422 = vmatpush3.xpose.msra.mxu1 %v1256_v42  ;;  %4423 = vmatprep.mubr.msk.f32.mxu1 %vm4747_vm0, %v4746_v0 }
 0x291   : > { %4456 = vmatprep.subr.mxu1 %v4746_v0 }
 0x297   : > { %4424 = vmatmul.mubr.f32.vlgmr.msra.gmra.mrb[2].mxu1 %v1321_v43 }
 0x298   : > { %4457 = vmatpush3.xpose.msra.mxu1 %v2186_v57  ;;  %4458 = vmatprep.mubr.msk.f32.mxu1 %vm4747_vm0, %v4746_v0 }
 0x299   : > { %4461 = vmatprep.subr.mxu1 %v4746_v0 }
 0x29b   : > { %4459 = vmatmul.mubr.f32.vlgmr.msra.gmra.mrb[4].mxu1 %v2255_v1 }
 0x29c   : > { %4462 = vmatpush3.xpose.msra.mxu1 %v2266_v2  ;;  %4463 = vmatprep.mubr.msk.f32.mxu1 %vm4747_vm0, %v4746_v0 }
 0x29d   : > { %4466 = vmatprep.subr.mxu1 %v4746_v0 }
 0x2a3   : > { %4464 = vmatmul.mubr.f32.vlgmr.msra.gmra.mrb[4].mxu1 %v2251_v56 }
 0x2a4   : > { %4467 = vmatpush3.xpose.msra.mxu1 %v2263_v59  ;;  %4468 = vmatprep.mubr.msk.f32.mxu1 %vm4747_vm0, %v4746_v0 }
 0x2a5   : > { %4471 = vmatprep.subr.mxu1 %v4746_v0 }
 0x2ab   : > { %4469 = vmatmul.mubr.f32.vlgmr.msra.gmra.mrb[4].mxu1 %v2252_v58 }
 0x2ac   : > { %4472 = vmatpush3.xpose.msra.mxu1 %v2186_v57  ;;  %4473 = vmatprep.mubr.msk.f32.mxu1 %vm4747_vm0, %v4746_v0 }
 0x2ad   : > { %4476 = vmatprep.subr.mxu1 %v4746_v0 }
 0x2b3   : > { %4474 = vmatmul.mubr.f32.vlgmr.msra.gmra.mrb[4].mxu1 %v2253_v60 }
 0x2b4   : > { %4477 = vmatpush3.xpose.msra.mxu1 %v2264_v61  ;;  %4478 = vmatprep.mubr.msk.f32.mxu1 %vm4747_vm0, %v4746_v0 }
 0x2b5   : > { %4481 = vmatprep.subr.mxu1 %v4746_v0 }
 0x2bb   : > { %4479 = vmatmul.mubr.f32.vlgmr.msra.gmra.mrb[4].mxu1 %v2251_v56 }
 0x2bc   : > { %4482 = vmatpush3.xpose.msra.mxu1 %v2186_v57  ;;  %4483 = vmatprep.mubr.msk.f32.mxu1 %vm4747_vm0, %v4746_v0 }
 0x2bd   : > { %4516 = vmatprep.subr.mxu1 %v4746_v0 }
 0x2c3   : > { %4484 = vmatmul.mubr.f32.vlgmr.msra.gmra.mrb[4].mxu1 %v2251_v56 }
 0x2c4   : > { %4517 = vmatpush3.xpose.msra.mxu1 %v3115_v8  ;;  %4518 = vmatprep.mubr.msk.f32.mxu1 %vm4747_vm0, %v4746_v0 }
 0x2c5   : > { %4521 = vmatprep.subr.mxu1 %v4746_v0 }
 0x2c7   : > { %4519 = vmatmul.mubr.f32.vlgmr.msra.gmra.mrb[6].mxu1 %v3184_v15 }
 0x2c8   : > { %4522 = vmatpush3.xpose.msra.mxu1 %v3195_v16  ;;  %4523 = vmatprep.mubr.msk.f32.mxu1 %vm4747_vm0, %v4746_v0 }
 0x2c9   : > { %4526 = vmatprep.subr.mxu1 %v4746_v0 }
 0x2cf   : > { %4524 = vmatmul.mubr.f32.vlgmr.msra.gmra.mrb[6].mxu1 %v3180_v7 }
 0x2d0   : > { %4527 = vmatpush3.xpose.msra.mxu1 %v3192_v10  ;;  %4528 = vmatprep.mubr.msk.f32.mxu1 %vm4747_vm0, %v4746_v0 }
 0x2d1   : > { %4531 = vmatprep.subr.mxu1 %v4746_v0 }
 0x2d7   : > { %4529 = vmatmul.mubr.f32.vlgmr.msra.gmra.mrb[6].mxu1 %v3181_v9 }
 0x2d8   : > { %4532 = vmatpush3.xpose.msra.mxu1 %v3115_v8  ;;  %4533 = vmatprep.mubr.msk.f32.mxu1 %vm4747_vm0, %v4746_v0 }
 0x2d9   : > { %4536 = vmatprep.subr.mxu1 %v4746_v0 }
 0x2df   : > { %4534 = vmatmul.mubr.f32.vlgmr.msra.gmra.mrb[6].mxu1 %v3182_v11 }
 0x2e0   : > { %4537 = vmatpush3.xpose.msra.mxu1 %v3193_v12  ;;  %4538 = vmatprep.mubr.msk.f32.mxu1 %vm4747_vm0, %v4746_v0 }
 0x2e1   : > { %4541 = vmatprep.subr.mxu1 %v4746_v0 }
 0x2e7   : > { %4539 = vmatmul.mubr.f32.vlgmr.msra.gmra.mrb[6].mxu1 %v3180_v7 }
 0x2e8   : > { %4542 = vmatpush3.xpose.msra.mxu1 %v3115_v8  ;;  %4543 = vmatprep.mubr.msk.f32.mxu1 %vm4747_vm0, %v4746_v0 }
 0x2ef   : > { %4544 = vmatmul.mubr.f32.vlgmr.msra.gmra.mrb[6].mxu1 %v3180_v7 }
 0x33e   : > { %v4943_v17 = vpop.f32.mrb[0].mxu1 }
 0x33f   : > { %v4395_v18 = vpop.f32.mrb[1].mxu1 }
 0x340   : > { %v789_v18 = vsel %vm322_vm1, %v4865_v28, 0.0 }
 0x36a   : > { %v1697_v21 = vpop.f32.mrb[2].mxu1 }
 0x36b   : > { %v4425_v24 = vpop.f32.mrb[3].mxu1  ;;  %v1701_v25 = vsel %vm322_vm1, %v1697_v21, -inf }
 0x36c   : > { %1702 = vmax.xlane.f32.xlu1 %v1701_v25 }
 0x396   : > { %v4947_v27 = vpop.f32.mrb[4].mxu1 }
 0x397   : > { %v2631_v29 = vsel %vm322_vm1, %v4947_v27, -inf  ;;  %v4485_v30 = vpop.f32.mrb[5].mxu1 }
 0x398   : > { %2632 = vmax.xlane.f32.xlu0 %v2631_v29 }
 0x3ae   : > { %1720 = vrot.lane.b32.xlu0 %v4857_v23, %s4750_s23 }
 0x3c2   : > { %v4954_v32 = vpop.f32.mrb[6].mxu1 }
 0x3c3   : > { %v4545_v33 = vpop.f32.mrb[7].mxu1  ;;  %v3560_v36 = vsel %vm322_vm1, %v4954_v32, -inf }
 0x3f9   : > { %v1703_v34 = vpop.xlane.xlu1 %1702 }
 0x3fa   : > { %v4957_v35 = vmax.f32 %v4847_v20, %v1703_v34 }
 0x3fc   : > { %1709 = vperm.xlu1 %4694, %v4957_v35   ;;  %v4061_v40 = vsel %vm4060_vm3, %v4850_v22, %v4957_v35  ;;  %v4979_v22 = vpop.eup %4706 }
 0x400   : > { %4697 = vset.pattern.permute.xlu1 %v4749_v19 }
 0x420   : > { %3561 = vmax.xlane.f32.xlu1 %v3560_v36 }
 0x425   : > { %v2633_v37 = vpop.xlane.xlu0 %2632 }
 0x426   : > { %v2634_v39 = vmax.f32 %v4847_v20, %v2633_v37 }
 0x428   : > { %v4063_v41 = vsel %vm4062_vm4, %v4061_v40, %v2634_v39  ;;  %2639 = vperm.xlu0 %4695, %v2634_v39   ;;  %v1705_v40 = vsub.f32 %v4847_v20, %v4957_v35 }
 0x429   : > { %v1721_v42 = vpop.permute.xlu0 %1720 }
 0x42a   : > { %v4970_v43 = vand.u32 4294901760, %v1721_v42 }
 0x42c   : > { %2649 = vrot.lane.b32.xlu0 %v4857_v23, %s4751_s24  ;;  %4427 = vmatpush3.msra.mxu0 %v4970_v43  ;;  %v1804_v47 = vsub.f32 %v1721_v42, %v4970_v43 }
 0x42d   : > { %4431 = vmatprep.subr.mxu0 %v4746_v0  ;;  %4696 = vset.pattern.permute.xlu0 %v4755_v44 }
 0x42e   : > { %v1805_v51 = vand.u32 4294901760, %v1804_v47 }
 0x430   : > { %v1806_v54 = vsub.f32 %v1804_v47, %v1805_v51 }
 0x431   : > { %3578 = vrot.lane.b32.xlu1 %v4857_v23, %s4752_s28  ;;  %v2635_v23 = vsub.f32 %v4847_v20, %v2634_v39 }
 0x432   : > { %v1807_v57 = vand.u32 4294901760, %v1806_v54 }
 0x435   : > { %1244 = vperm.xlu1 %4697, %v4979_v22  }
 0x439   : > { %4699 = vset.pattern.permute.xlu1 %v4754_v31 }
 0x47b   : > { %v1710_v45 = vpop.permute.xlu1 %1709 }
 0x47c   : > { %v1712_v46 = vsub.f32 %v1697_v21, %v1710_v45 }
 0x47e   : > { %4708 = vpow2.f32 %v1712_v46 }
 0x47f   : > { %4710 = vpow2.f32 %v2635_v23 }
 0x488   : > { %v4709_v48 = vpop.eup %4708 }
 0x489   : > { %v1724_v49 = vsel %vm322_vm1, %v4709_v48, 0  ;;  %v1715_v50 = vsel %vm322_vm1, %v4709_v48, 0.0  ;;  %v4990_v59 = vpop.eup %4710  ;;  %v321_v48 = vld [vmem:[#allocation3] sm:$0xff] }
 0x48a   : > { %v1792_v52 = vand.u32 4294901760, %v1724_v49  ;;  %1716 = vadd.xlane.f32.xlu1 %v1715_v50 }
 0x48c   : > { %v1793_v53 = vsub.f32 %v1724_v49, %v1792_v52  ;;  %v788_v49 = vmul.f32 %v4979_v22, %v321_v48 }
 0x48e   : > { %v1794_v55 = vand.u32 4294901760, %v1793_v53 }
 0x490   : > { %v1795_v56 = vsub.f32 %v1793_v53, %v1794_v55 }
 0x492   : > { %v1796_v58 = vand.u32 4294901760, %v1795_v56 }
 0x494   : > { %4429 = vmatmul.mubr.f32.vlgmr.msra.gmra.mrb[2].mxu0 %v1796_v58 }
 0x495   : > { %4432 = vmatpush3.msra.mxu0 %v1807_v57  ;;  %4433 = vmatprep.mubr.msk.f32.mxu0 %vm4747_vm0, %v4746_v0 }
 0x496   : > { %4436 = vmatprep.subr.mxu0 %v4746_v0 }
 0x49b   : > { %3103 = vperm.xlu1 %4699, %v4990_v59  }
 0x49c   : > { %4434 = vmatmul.mubr.f32.vlgmr.msra.gmra.mrb[2].mxu0 %v1792_v52 }
 0x49d   : > { %4437 = vmatpush3.msra.mxu0 %v1804_v47  ;;  %4438 = vmatprep.mubr.msk.f32.mxu0 %vm4747_vm0, %v4746_v0 }
 0x49e   : > { %4441 = vmatprep.subr.mxu0 %v4746_v0 }
 0x49f   : > { %4700 = vset.pattern.permute.xlu1 %v4755_v44 }
 0x4a4   : > { %4439 = vmatmul.mubr.f32.vlgmr.msra.gmra.mrb[2].mxu0 %v1793_v53 }
 0x4a5   : > { %4442 = vmatpush3.msra.mxu0 %v4970_v43  ;;  %4443 = vmatprep.mubr.msk.f32.mxu0 %vm4747_vm0, %v4746_v0 }
 0x4a6   : > { %4446 = vmatprep.subr.mxu0 %v4746_v0 }
 0x4a7   : > { %v2640_v60 = vpop.permute.xlu0 %2639 }
 0x4a8   : > { %v2642_v61 = vsub.f32 %v4947_v27, %v2640_v60 }
 0x4aa   : > { %4712 = vpow2.f32 %v2642_v61 }
 0x4ab   : > { %v2650_v62 = vpop.permute.xlu0 %2649 }
 0x4ac   : > { %4444 = vmatmul.mubr.f32.vlgmr.msra.gmra.mrb[2].mxu0 %v1794_v55  ;;  %v2656_v1 = vand.u32 4294901760, %v2650_v62 }
 0x4ad   : > { %v3562_v63 = vpop.xlane.xlu1 %3561  ;;  %4447 = vmatpush3.msra.mxu0 %v1805_v51  ;;  %4448 = vmatprep.mubr.msk.f32.mxu0 %vm4747_vm0, %v4746_v0 }
 0x4ae   : > { %v3563_v2 = vmax.f32 %v4847_v20, %v3562_v63  ;;  %4451 = vmatprep.subr.mxu0 %v4746_v0  ;;  %v2733_v5 = vsub.f32 %v2650_v62, %v2656_v1 }
 0x4b0   : > { %v3564_v3 = vsub.f32 %v4847_v20, %v3563_v2  ;;  %v4065_v4 = vsel %vm4064_vm5, %v4063_v41, %v3563_v2  ;;  %3568 = vperm.xlu0 %4696, %v3563_v2   ;;  %v2734_v8 = vand.u32 4294901760, %v2733_v5 }
 0x4b1   : > { %4067 = vst.msk [vmem:[#allocation2] sm:$0xff] %vm312_vm2, %v4065_v4 }
 0x4b2   : > { %4714 = vpow2.f32 %v3564_v3  ;;  %v2735_v11 = vsub.f32 %v2733_v5, %v2734_v8 }
 0x4b4   : > { %v4713_v6 = vpop.eup %4712  ;;  %4449 = vmatmul.mubr.f32.vlgmr.msra.gmra.mrb[2].mxu0 %v1792_v52  ;;  %4698 = vset.pattern.permute.xlu0 %v4753_v26  ;;  %v2736_v15 = vand.u32 4294901760, %v2735_v11 }
 0x4b5   : > { %v2653_v7 = vsel %vm322_vm1, %v4713_v6, 0  ;;  %4452 = vmatpush3.msra.mxu0 %v4970_v43  ;;  %4453 = vmatprep.mubr.msk.f32.mxu0 %vm4747_vm0, %v4746_v0  ;;  %v2645_v21 = vsel %vm322_vm1, %v4713_v6, 0.0 }
 0x4b6   : > { %v2721_v9 = vand.u32 4294901760, %v2653_v7  ;;  %4486 = vmatprep.subr.mxu0 %v4746_v0 }
 0x4b8   : > { %v2722_v10 = vsub.f32 %v2653_v7, %v2721_v9 }
 0x4ba   : > { %v2723_v12 = vand.u32 4294901760, %v2722_v10 }
 0x4bc   : > { %v5015_v13 = vpop.eup %4714  ;;  %4454 = vmatmul.mubr.f32.vlgmr.msra.gmra.mrb[2].mxu0 %v1792_v52  ;;  %v2724_v14 = vsub.f32 %v2722_v10, %v2723_v12  ;;  %v2644_v52 = vmul.f32 %v4990_v59, %v321_v48 }
 0x4bd   : > { %4032 = vperm.xlu1 %4700, %v5015_v13   ;;  %4487 = vmatpush3.msra.mxu0 %v2656_v1 }
 0x4be   : > { %4488 = vmatprep.mubr.msk.f32.mxu0 %vm4747_vm0, %v4746_v0  ;;  %v2725_v16 = vand.u32 4294901760, %v2724_v14  ;;  %4491 = vmatprep.subr.mxu0 %v4746_v0 }
 0x4c0   : > { %4489 = vmatmul.mubr.f32.vlgmr.msra.gmra.mrb[4].mxu0 %v2725_v16 }
 0x4c1   : > { %4492 = vmatpush3.msra.mxu0 %v2736_v15  ;;  %4493 = vmatprep.mubr.msk.f32.mxu0 %vm4747_vm0, %v4746_v0 }
 0x4c2   : > { %4496 = vmatprep.subr.mxu0 %v4746_v0  ;;  %4701 = vset.pattern.permute.xlu1 %v4749_v19  ;;  %v3579_v19 = vpop.permute.xlu1 %3578 }
 0x4c3   : > { %v3585_v28 = vand.u32 4294901760, %v3579_v19 }
 0x4c5   : > { %v3662_v26 = vsub.f32 %v3579_v19, %v3585_v28 }
 0x4c6   : > { %v1245_v47 = vpop.permute.xlu1 %1244 }
 0x4c7   : > { %v3663_v29 = vand.u32 4294901760, %v3662_v26 }
 0x4c8   : > { %4494 = vmatmul.mubr.f32.vlgmr.msra.gmra.mrb[4].mxu0 %v2721_v9 }
 0x4c9   : > { %4497 = vmatpush3.msra.mxu0 %v2733_v5  ;;  %4498 = vmatprep.mubr.msk.f32.mxu0 %vm4747_vm0, %v4746_v0  ;;  %v3664_v37 = vsub.f32 %v3662_v26, %v3663_v29 }
 0x4ca   : > { %4501 = vmatprep.subr.mxu0 %v4746_v0 }
 0x4cb   : > { %v3665_v41 = vand.u32 4294901760, %v3664_v37 }
 0x4cf   : > { %790 = vadd.xlane.f32.xlu0 %v789_v18 }
 0x4d0   : > { %4499 = vmatmul.mubr.f32.vlgmr.msra.gmra.mrb[4].mxu0 %v2722_v10 }
 0x4d1   : > { %4502 = vmatpush3.msra.mxu0 %v2656_v1  ;;  %4503 = vmatprep.mubr.msk.f32.mxu0 %vm4747_vm0, %v4746_v0 }
 0x4d2   : > { %4506 = vmatprep.subr.mxu0 %v4746_v0 }
 0x4d3   : > { %2646 = vadd.xlane.f32.xlu0 %v2645_v21 }
 0x4d8   : > { %4504 = vmatmul.mubr.f32.vlgmr.msra.gmra.mrb[4].mxu0 %v2723_v12 }
 0x4d9   : > { %4507 = vmatpush3.msra.mxu0 %v2734_v8  ;;  %4508 = vmatprep.mubr.msk.f32.mxu0 %vm4747_vm0, %v4746_v0  ;;  %v4055_v8 = vld [vmem:[#allocation4] sm:$0xff] }
 0x4da   : > { %4511 = vmatprep.subr.mxu0 %v4746_v0 }
 0x4e0   : > { %4509 = vmatmul.mubr.f32.vlgmr.msra.gmra.mrb[4].mxu0 %v2721_v9 }
 0x4e1   : > { %4512 = vmatpush3.msra.mxu0 %v2656_v1  ;;  %4513 = vmatprep.mubr.msk.f32.mxu0 %vm4747_vm0, %v4746_v0 }
 0x4e2   : > { %4546 = vmatprep.subr.mxu0 %v4746_v0 }
 0x4e8   : > { %4514 = vmatmul.mubr.f32.vlgmr.msra.gmra.mrb[4].mxu0 %v2721_v9 }
 0x4e9   : > { %4547 = vmatpush3.msra.mxu0 %v3585_v28  ;;  %4548 = vmatprep.mubr.msk.f32.mxu0 %vm4747_vm0, %v4746_v0 }
 0x4ea   : > { %4551 = vmatprep.subr.mxu0 %v4746_v0 }
 0x517   : > { %v1717_v51 = vpop.xlane.xlu1 %1716 }
 0x51b   : > { %v3104_v1 = vpop.permute.xlu1 %3103 }
 0x52f   : > { %v3569_v24 = vpop.permute.xlu0 %3568 }
 0x530   : > { %v3571_v25 = vsub.f32 %v4954_v32, %v3569_v24 }
 0x532   : > { %4716 = vpow2.f32 %v3571_v25 }
 0x533   : > { %4718 = vpow2.f32 %v1705_v40 }
 0x53c   : > { %v4717_v27 = vpop.eup %4716  ;;  %v4033_v2 = vpop.permute.xlu1 %4032 }
 0x53d   : > { %v3582_v30 = vsel %vm322_vm1, %v4717_v27, 0  ;;  %v3574_v33 = vsel %vm322_vm1, %v4717_v27, 0.0  ;;  %v4719_v20 = vpop.eup %4718 }
 0x53e   : > { %v3650_v34 = vand.u32 4294901760, %v3582_v30  ;;  %3575 = vadd.xlane.f32.xlu0 %v3574_v33  ;;  %v1714_v23 = vmul.f32 %v4719_v20, %v321_v48 }
 0x540   : > { %v3651_v36 = vsub.f32 %v3582_v30, %v3650_v34  ;;  %v1718_v55 = vadd.f32 %v1717_v51, %v1714_v23 }
 0x542   : > { %v3652_v38 = vand.u32 4294901760, %v3651_v36 }
 0x544   : > { %v3653_v39 = vsub.f32 %v3651_v36, %v3652_v38 }
 0x546   : > { %v3654_v42 = vand.u32 4294901760, %v3653_v39 }
 0x548   : > { %4549 = vmatmul.mubr.f32.vlgmr.msra.gmra.mrb[6].mxu0 %v3654_v42 }
 0x549   : > { %4552 = vmatpush3.msra.mxu0 %v3665_v41  ;;  %4553 = vmatprep.mubr.msk.f32.mxu0 %vm4747_vm0, %v4746_v0 }
 0x54a   : > { %4556 = vmatprep.subr.mxu0 %v4746_v0 }
 0x550   : > { %4554 = vmatmul.mubr.f32.vlgmr.msra.gmra.mrb[6].mxu0 %v3650_v34 }
 0x551   : > { %4557 = vmatpush3.msra.mxu0 %v3662_v26  ;;  %4558 = vmatprep.mubr.msk.f32.mxu0 %vm4747_vm0, %v4746_v0 }
 0x552   : > { %4561 = vmatprep.subr.mxu0 %v4746_v0 }
 0x554   : > { %2174 = vperm.xlu0 %4698, %v4719_v20  }
 0x558   : > { %4559 = vmatmul.mubr.f32.vlgmr.msra.gmra.mrb[6].mxu0 %v3651_v36 }
 0x559   : > { %4562 = vmatpush3.msra.mxu0 %v3585_v28  ;;  %4563 = vmatprep.mubr.msk.f32.mxu0 %vm4747_vm0, %v4746_v0 }
 0x55a   : > { %4566 = vmatprep.subr.mxu0 %v4746_v0 }
 0x55c   : > { %v791_v46 = vpop.xlane.xlu0 %790 }
 0x55d   : > { %v792_v53 = vadd.f32 %v791_v46, %v788_v49 }
 0x55f   : > { %v4068_v57 = vsel %vm4060_vm3, %v792_v53, %v1718_v55 }
 0x560   : > { %4564 = vmatmul.mubr.f32.vlgmr.msra.gmra.mrb[6].mxu0 %v3652_v38  ;;  %v2647_v50 = vpop.xlane.xlu0 %2646 }
 0x561   : > { %4567 = vmatpush3.msra.mxu0 %v3663_v29  ;;  %4568 = vmatprep.mubr.msk.f32.mxu0 %vm4747_vm0, %v4746_v0  ;;  %v2648_v54 = vadd.f32 %v2647_v50, %v2644_v52 }
 0x562   : > { %4571 = vmatprep.subr.mxu0 %v4746_v0 }
 0x563   : > { %v4069_v60 = vsel %vm4062_vm4, %v4068_v57, %v2648_v54 }
 0x568   : > { %4569 = vmatmul.mubr.f32.vlgmr.msra.gmra.mrb[6].mxu0 %v3650_v34 }
 0x569   : > { %4572 = vmatpush3.msra.mxu0 %v3585_v28  ;;  %4573 = vmatprep.mubr.msk.f32.mxu0 %vm4747_vm0, %v4746_v0  ;;  %v3573_v0 = vmul.f32 %v5015_v13, %v321_v48 }
 0x570   : > { %4574 = vmatmul.mubr.f32.vlgmr.msra.gmra.mrb[6].mxu0 %v3650_v34 }
 0x58f   : > { %v2168_v32 = vpop.f32.mrb[2].mxu0 }
 0x590   : > { %v4455_v35 = vpop.f32.mrb[3].mxu0 }
 0x5bb   : > { %v3097_v43 = vpop.f32.mrb[4].mxu0 }
 0x5bc   : > { %v4515_v45 = vpop.f32.mrb[5].mxu0 }
 0x5cb   : > { %v3576_v56 = vpop.xlane.xlu0 %3575 }
 0x5cc   : > { %v3577_v58 = vadd.f32 %v3576_v56, %v3573_v0 }
 0x5ce   : > { %v4070_v61 = vsel %vm4064_vm5, %v4069_v60, %v3577_v58 }
 0x5cf   : > { %4071 = vst.msk [vmem:[#allocation3] sm:$0xff] %vm312_vm2, %v4070_v61 }
 0x5d3   : > { %v2175_v4 = vpop.permute.xlu0 %2174 }
 0x5d6   : > { %v4075_v22 = vld [vmem:[#allocation3] sm:$0xff] }
 0x5d7   : > { %4720 = vrcp.f32 %v4075_v22 }
 0x5e1   : > { %v4721_v62 = vpop.eup %4720 }
 0x5e2   : > { %4083 = vperm.xlu0 %4698, %v4721_v62   ;;  %4079 = vperm.xlu1 %4701, %v4721_v62  }
 0x5e6   : > { %4703 = vset.pattern.permute.xlu0 %v4755_v44  ;;  %4036 = vrot.lane.b32.xlu1 %v2168_v32, %s4756_s29  ;;  %v4052_v44 = vsel %vm322_vm1, %v1245_v47, %v2175_v4 }
 0x5e7   : > { %4091 = vperm.xlu0 %4703, %v4721_v62   ;;  %4702 = vset.pattern.permute.xlu1 %v4754_v31  ;;  %v4053_v6 = vsel %vm4048_vm7, %v4052_v44, %v3104_v1 }
 0x5e8   : > { %v4054_v7 = vsel %vm4050_vm8, %v4053_v6, %v4033_v2 }
 0x5e9   : > { %v4056_v11 = vmul.f32 %v4055_v8, %v4054_v7 }
 0x5ea   : > { %4040 = vrot.lane.b32.xlu1 %v3097_v43, %s4757_s30 }
 0x643   : > { %v4026_v59 = vpop.f32.mrb[6].mxu0 }
 0x644   : > { %4044 = vrot.lane.b32.xlu1 %v4026_v59, %s4758_s4  ;;  %v4575_v63 = vpop.f32.mrb[7].mxu0 }
 0x648   : > { %4087 = vperm.xlu1 %4702, %v4721_v62  }
 0x661   : > { %v4080_v3 = vpop.permute.xlu1 %4079  ;;  %v4084_v15 = vpop.permute.xlu0 %4083 }
 0x662   : > { %v4094_v16 = vsel %vm322_vm1, %v4080_v3, %v4084_v15 }
 0x665   : > { %v4037_v5 = vpop.permute.xlu1 %4036 }
 0x666   : > { %v4047_v9 = vsel %vm322_vm1, %v4943_v17, %v4037_v5  ;;  %v4092_v21 = vpop.permute.xlu0 %4091 }
 0x669   : > { %v4041_v31 = vpop.permute.xlu1 %4040 }
 0x66a   : > { %v4049_v10 = vsel %vm4048_vm7, %v4047_v9, %v4041_v31 }
 0x6b6   : > { %v4045_v12 = vpop.permute.xlu1 %4044 }
 0x6b7   : > { %v4051_v13 = vsel %vm4050_vm8, %v4049_v10, %v4045_v12 }
 0x6b8   : > { %v4057_v14 = vadd.f32 %v4056_v11, %v4051_v13 }
 0x6ba   : > { %4059 = vst.msk [vmem:[#allocation4] sm:$0xff] %vm315_vm6, %v4057_v14 }
 0x6c1   : > { %v4097_v17 = vld [vmem:[#allocation4] sm:$0xff] }
 0x6c7   : > { %v4088_v18 = vpop.permute.xlu1 %4087 }
 0x6c8   : > { %v4095_v19 = vsel %vm4048_vm7, %v4094_v16, %v4088_v18 }
 0x6c9   : > { %v4096_v28 = vsel %vm4050_vm8, %v4095_v19, %v4092_v21 }
 0x6ca   : > { %v4098_v24 = vmul.f32 %v4097_v17, %v4096_v28 }
 0x6cc   : > { %4099 = vst.msk [vmem:[%s307_s7] sm:$0xff] %vm315_vm6, %v4098_v24 }
 0x6cd PF: > { %s13_s14 = sadd.s32 1, %s4744_s14   ;;  %s5102_s12 = smov %s4740_s13 }
 0x6ce   : > { %p10_p5 = scmp.ge.s32.totalorder %s13_s14, 4   ;;  %s5103_s13 = smov %s5105_s15 }
 0x6d0   :  { %12 = sbr.rel (!%p10_p5) target bundleno = 2 (0x2), region = 76 }

</bundles_post_ra>
